<compile_context>
chip_gen: v7x
topology: tpu7x:2x2x1
jax: 0.10.0
libtpu: 0.0.40
codegen_flags: <defaults>
</compile_context>

<pallas_src>
import functools
import math

import jax
import jax.numpy as jnp
from jax import lax
from jax.experimental import pallas as pl
from jax.experimental.pallas import tpu as pltpu


def gpn_kernel(
    # batch-tiled data
    x_ref, xall_ref, mask_ref, latent_ref, h_in_ref, c_in_ref,
    # embeddings, pre-transposed to (in, out)
    wex_ref, bex_ref, wea_ref, bea_ref,
    # lstm0: folded input projection (F,4H), folded bias (1,4H), recurrent (H,4H)
    wlin_ref, blstm_ref, whh_ref, h0_ref, c0_ref,
    # GNN context layers, fused W||agg: (3, H, 2H) weights / (3, 1, 2H) biases
    gnnw_ref, gnnb_ref,
    # encoder (peephole LSTM cell), fused by input operand
    encwx_ref, encbx_ref, encwh_ref, encbh_ref,
    encwc_ref, encbc_ref, encwco_ref, encbco_ref,
    # pointer attention
    v_ref, wref_ref, bref_ref, wq_ref, bq_ref,
    # scalars [r1, r2, r3, alpha] in SMEM
    scal_ref,
    # outputs
    probs_ref, h_out_ref, c_out_ref, latu_ref,
    # scratch (only allocated when first_turn=True): (S, tb, 4H) staged gates
    *scratch,
    batch_tile, size, dim, first_turn, compute_dtype):
  f32 = jnp.float32
  cdt = compute_dtype
  B, S, H = batch_tile, size, dim

  def linear(v, w_ref, b_ref):
    # matmul in the compute dtype (bf16 on v6e/v7x), accumulate + bias in f32
    return (jnp.dot(v.astype(cdt), w_ref[...], preferred_element_type=f32)
            + b_ref[...])

  # ---- embeddings ----
  x_emb = linear(x_ref[...], wex_ref, bex_ref)                      # (B, H)
  xall = xall_ref[...]                                              # (B, S, F)
  ctx = linear(xall.reshape(B * S, -1), wea_ref, bea_ref)           # (B*S, H)

  # ---- initial hidden state from lstm0 over the whole sequence (first turn) ----
  if first_turn:
    gx_seq_ref = scratch[0]                                         # (S, B, 4H)
    # embedding_all composed with the lstm0 input projection (folded on host, f32):
    # one wide matmul hoisted out of the recurrence.
    gates_x = (jnp.dot(xall.reshape(B * S, -1).astype(cdt), wlin_ref[...],
                       preferred_element_type=f32)
               + blstm_ref[...])                                    # (B*S, 4H)
    # leading-axis transpose to time-major; last dim (4H) is lane aligned so this
    # is sublane copies only.  TODO(synk): at large S*B chunk this staging by T
    # timesteps instead of materializing the full (S, tb, 4H) buffer.
    gx_seq_ref[...] = jnp.transpose(
        gates_x.reshape(B, S, 4 * H), (1, 0, 2)).astype(gx_seq_ref.dtype)

    h0 = jnp.broadcast_to(h0_ref[...], (B, H)).astype(f32)
    c0 = jnp.broadcast_to(c0_ref[...], (B, H)).astype(f32)
    whh = whh_ref[...]                                              # (H, 4H)

    def step(t, carry):
      h, c = carry
      gates = (gx_seq_ref[t].astype(f32)
               + jnp.dot(h.astype(cdt), whh, preferred_element_type=f32))
      # TODO(synk): at production sizes pad H to 128 (or lay gates out as (4,B,H))
      # so these slices stop splitting inside one 128-lane vreg, and keep Whh
      # resident in the MXU via matmul_push_rhs/matmul_acc_lhs.
      i = jax.nn.sigmoid(gates[:, 0 * H:1 * H])
      f = jax.nn.sigmoid(gates[:, 1 * H:2 * H])
      g = jnp.tanh(gates[:, 2 * H:3 * H])
      o = jax.nn.sigmoid(gates[:, 3 * H:4 * H])
      c = f * c + i * g
      h = o * jnp.tanh(c)
      return (h, c)

    # the recurrence is the serial critical path of turn 0 -> unroll it.
    h, c = lax.fori_loop(0, S, step, (h0, c0),
                         unroll=(True if S <= 16 else 4))
  else:
    h = h_in_ref[...]
    c = c_in_ref[...]

  # ---- graph context layers: r*W(ctx) + (1-r)*relu(agg(ctx)), W||agg fused ----
  for l in range(3):
    r = scal_ref[l]
    wa = (jnp.dot(ctx.astype(cdt), gnnw_ref[l], preferred_element_type=f32)
          + gnnb_ref[l])
    ctx = r * wa[:, :H] + (1.0 - r) * jax.nn.relu(wa[:, H:])

  # ---- encoder (custom peephole LSTM cell): 11 linears -> 4 matmuls ----
  gx = jnp.dot(x_emb.astype(cdt), encwx_ref[...],
               preferred_element_type=f32) + encbx_ref[...]
  gh = jnp.dot(h.astype(cdt), encwh_ref[...],
               preferred_element_type=f32) + encbh_ref[...]
  gc = jnp.dot(c.astype(cdt), encwc_ref[...],
               preferred_element_type=f32) + encbc_ref[...]
  s = gx + gh                                                       # (B, 4H)
  i_g = jax.nn.sigmoid(s[:, 0 * H:1 * H] + gc[:, 0 * H:1 * H])
  f_g = jax.nn.sigmoid(s[:, 1 * H:2 * H] + gc[:, 1 * H:2 * H])
  c_new = f_g * c + i_g * jnp.tanh(s[:, 2 * H:3 * H])
  gco = jnp.dot(c_new.astype(cdt), encwco_ref[...],
                preferred_element_type=f32) + encbco_ref[...]
  o_g = jax.nn.sigmoid(s[:, 3 * H:4 * H] + gco)
  h_new = o_g * jnp.tanh(c_new)

  # ---- pointer attention ----
  q = linear(h_new, wq_ref, bq_ref)                                 # (B, H)
  refm = linear(ctx, wref_ref, bref_ref).reshape(B, S, H)           # (B, S, H)
  # TODO(synk): on v6e/v7x this tanh (the EUP hot spot) could run in bf16.
  scores = jnp.tanh(q[:, None, :] + refm)
  u = jnp.sum(scores * v_ref[...].reshape(1, 1, H), axis=-1)        # (B, S)

  latu_ref[...] = u                                                 # latent_u (pre-tanh)
  alpha = scal_ref[3]
  u2 = 10.0 * jnp.tanh(u) + mask_ref[...] + alpha * latent_ref[...]

  # softmax over the city axis
  u2 = u2 - jnp.max(u2, axis=1, keepdims=True)
  e = jnp.exp(u2)
  probs_ref[...] = e / jnp.sum(e, axis=1, keepdims=True)
  h_out_ref[...] = h_new
  c_out_ref[...] = c_new


def _pack_params(p, compute_dtype):
  """Host-side repack: transpose to (in,out), fuse linears, fold the lstm0 input
  projection in f32/HIGHEST, then cast matmul-side weights to compute_dtype.
  Biases stay f32 (added after the f32-accumulated matmul)."""
  hp = jax.lax.Precision.HIGHEST
  w = lambda a: a.astype(compute_dtype)
  encW, encb = p["encW"], p["encb"]
  wih_t = p["Wih"].T                                         # (H, 4H)
  return dict(
      Wex=w(p["Wex"].T), bex=p["bex"],
      Wea=w(p["Wea"].T), bea=p["bea"],
      # embedding_all composed with lstm0 input projection (exact f32 fold,
      # cast AFTER the fold so the ctx / lstm0 paths don't diverge)
      Wlin=w(jnp.dot(p["Wea"].T, wih_t, precision=hp)),      # (F, 4H)
      blstm=jnp.dot(p["bea"], wih_t, precision=hp) + p["bih"] + p["bhh"],  # (1,4H)
      Whh=w(p["Whh"].T),                                     # (H, 4H)
      h0=p["h0"], c0=p["c0"],
      # GNN: W_l and agg_l concatenated on the output axis -> (H, 2H) each
      gnnW=w(jnp.concatenate([jnp.transpose(p["gnnW"], (0, 2, 1)),
                              jnp.transpose(p["gnnA"], (0, 2, 1))], axis=2)),
      gnnB=jnp.concatenate([p["gnnWb"], p["gnnAb"]], axis=2),
      # encoder fused by input operand: x->(H,4H), h->(H,4H), c->(H,2H), c_new->(H,H)
      encWx=w(jnp.concatenate([encW[0], encW[3], encW[6], encW[8]], axis=0).T),
      encBx=jnp.concatenate([encb[0], encb[3], encb[6], encb[8]], axis=1),
      encWh=w(jnp.concatenate([encW[1], encW[4], encW[7], encW[9]], axis=0).T),
      encBh=jnp.concatenate([encb[1], encb[4], encb[7], encb[9]], axis=1),
      encWc=w(jnp.concatenate([encW[2], encW[5]], axis=0).T),
      encBc=jnp.concatenate([encb[2], encb[5]], axis=1),
      encWco=w(encW[10].T), encBco=encb[10],
      v=p["v"], Wref=w(p["Wref"].T), bref=p["bref"],
      Wq=w(p["Wq"].T), bq=p["bq"],
      scal=p["scal"],
  )


def _batch_tile(B):
  """Pick a batch tile: whole batch for tiny / ragged batches, otherwise a
  multiple of 8 that divides B (bounds per-step VMEM, enables pipelining)."""
  if B <= 8 or B % 8 != 0:
    return B
  for cand in (32, 24, 16, 8):
    if B % cand == 0:
      return cand
  return B


def _vmem_limit_bytes():
  """Generation-aware scoped-VMEM limit with headroom for compiler scratch."""
  try:
    cap = int(pltpu.get_tpu_info().vmem_capacity_bytes)
  except Exception:
    cap = 128 * 1024 * 1024
  return int(min(cap - (16 << 20), int(cap * 0.80)))   # ~100MiB v5e/v6e, ~48MiB v7x


def gpn_forward(params, x, X_all, mask, h=None, c=None, latent=None,
                compute_dtype=jnp.float32):
  B, S, F = X_all.shape
  H = params["h0"].shape[-1]
  first_turn = (h is None) or (c is None)
  if h is None:
    h = jnp.zeros((B, H), jnp.float32)
  if c is None:
    c = jnp.zeros((B, H), jnp.float32)
  if latent is None:
    latent = jnp.zeros((B, S), jnp.float32)

  pk = _pack_params(params, compute_dtype)
  tb = _batch_tile(B)
  grid = (pl.cdiv(B, tb),)

  kernel = functools.partial(
      gpn_kernel, batch_tile=tb, size=S, dim=H,
      first_turn=first_turn, compute_dtype=compute_dtype)

  def batch_spec(*rest):
    nrest = len(rest)
    return pl.BlockSpec((tb,) + tuple(rest),
                        lambda i, nrest=nrest: (i,) + (0,) * nrest)

  def weight_spec(arr):
    nd = arr.ndim
    return pl.BlockSpec(tuple(arr.shape), lambda i, nd=nd: (0,) * nd)

  smem_spec = pl.BlockSpec(memory_space=pltpu.MemorySpace.SMEM)

  data_inputs = (x, X_all, mask, latent, h, c)
  weight_keys = ("Wex", "bex", "Wea", "bea",
                 "Wlin", "blstm", "Whh", "h0", "c0",
                 "gnnW", "gnnB",
                 "encWx", "encBx", "encWh", "encBh",
                 "encWc", "encBc", "encWco", "encBco",
                 "v", "Wref", "bref", "Wq", "bq")
  weight_inputs = tuple(pk[k] for k in weight_keys)
  inputs = data_inputs + weight_inputs + (pk["scal"],)

  in_specs = (
      [batch_spec(F), batch_spec(S, F), batch_spec(S), batch_spec(S),
       batch_spec(H), batch_spec(H)]
      + [weight_spec(a) for a in weight_inputs]      # constant index_map: resident
      + [smem_spec])

  out_shape = (
      jax.ShapeDtypeStruct((B, S), jnp.float32),   # softmax probs
      jax.ShapeDtypeStruct((B, H), jnp.float32),   # h
      jax.ShapeDtypeStruct((B, H), jnp.float32),   # c
      jax.ShapeDtypeStruct((B, S), jnp.float32),   # latent_u
  )
  # TODO(synk): at production shapes pad S and H to multiples of 128 (lane-dense
  # outputs; padded cities carry mask=-1e8).
  out_specs = (batch_spec(S), batch_spec(H), batch_spec(H), batch_spec(S))

  # first-turn lstm0 staging, bounded by the batch tile (bf16 when compute=bf16)
  scratch_shapes = ([pltpu.VMEM((S, tb, 4 * H), compute_dtype)]
                    if first_turn else [])

  # advisory cost hints for the XLA scheduler
  flops = 2 * B * (F * H + S * F * H + 3 * S * H * 2 * H
                   + H * (4 * H + 4 * H + 2 * H + H)
                   + S * H * H + H * H)
  if first_turn:
    flops += 2 * B * S * (F * 4 * H + H * 4 * H)
  trans = B * S * H + 12 * B * H + 3 * B * S + (4 * B * S * H if first_turn else 0)
  in_bytes = sum(int(a.size) * a.dtype.itemsize for a in inputs)
  out_bytes = 4 * (2 * B * S + 2 * B * H)

  # TODO(synk): if the decode loop is latency-bound, prefetch the next turn's
  # weights cross-call (semaphore-typed output + has_side_effects).
  return pl.pallas_call(
      kernel,
      out_shape=out_shape,
      grid_spec=pltpu.PrefetchScalarGridSpec(
          num_scalar_prefetch=0,
          grid=grid,
          in_specs=in_specs,
          out_specs=out_specs,
          scratch_shapes=scratch_shapes),
      compiler_params=pltpu.CompilerParams(
          dimension_semantics=("parallel",),          # megacore sharding on v7x
          vmem_limit_bytes=_vmem_limit_bytes()),
      cost_estimate=pl.CostEstimate(flops=flops, transcendentals=trans,
                                    bytes_accessed=in_bytes + out_bytes),
  )(*inputs)


def init_params(key, n_feature, n_hidden):
  H, F = n_hidden, n_feature
  bh = 1.0 / math.sqrt(H)
  bf = 1.0 / math.sqrt(F)
  ks = iter(jax.random.split(key, 32))

  def u(shape, b=bh):
    return jax.random.uniform(next(ks), shape, jnp.float32, -b, b)

  return dict(
      Wex=u((H, F), bf), bex=u((1, H), bf),
      Wea=u((H, F), bf), bea=u((1, H), bf),
      Wih=u((4 * H, H)), Whh=u((4 * H, H)),
      bih=u((1, 4 * H)), bhh=u((1, 4 * H)),
      h0=u((1, H)), c0=u((1, H)),
      gnnW=u((3, H, H)), gnnWb=u((3, 1, H)),
      gnnA=u((3, H, H)), gnnAb=u((3, 1, H)),
      encW=u((11, H, H)), encb=u((11, 1, H)),
      v=u((1, H)),
      Wref=u((H, H)), bref=u((1, H)),
      Wq=u((H, H)), bq=u((1, H)),
      scal=jnp.array([0.6, 0.7, 0.8, 0.5], jnp.float32),  # r1, r2, r3, alpha
  )


def gpn_reference(params, x, X_all, mask, h=None, c=None, latent=None):
  """Plain-JAX mirror of the PyTorch forward (used only to verify the kernel)."""
  B, S, F = X_all.shape
  H = params["h0"].shape[-1]
  pdot = functools.partial(jnp.dot, precision=jax.lax.Precision.HIGHEST)
  lin = lambda v, w, b: pdot(v, w.T) + b

  x_emb = lin(x, params["Wex"], params["bex"])
  ctx = lin(X_all.reshape(B * S, F), params["Wea"], params["bea"])
  context = ctx.reshape(B, S, H)

  if h is None or c is None:
    hh = jnp.broadcast_to(params["h0"], (B, H))
    cc = jnp.broadcast_to(params["c0"], (B, H))
    for t in range(S):
      x_t = context[:, t, :]
      gates = (lin(x_t, params["Wih"], params["bih"])
               + lin(hh, params["Whh"], params["bhh"]))
      i = jax.nn.sigmoid(gates[:, :H])
      f = jax.nn.sigmoid(gates[:, H:2 * H])
      g = jnp.tanh(gates[:, 2 * H:3 * H])
      o = jax.nn.sigmoid(gates[:, 3 * H:])
      cc = f * cc + i * g
      hh = o * jnp.tanh(cc)
    h, c = hh, cc

  for l in range(3):
    r = params["scal"][l]
    ctx = (r * lin(ctx, params["gnnW"][l], params["gnnWb"][l])
           + (1.0 - r) * jax.nn.relu(lin(ctx, params["gnnA"][l], params["gnnAb"][l])))

  ew, eb = params["encW"], params["encb"]
  el = lambda v, k: lin(v, ew[k], eb[k])
  i_g = jax.nn.sigmoid(el(x_emb, 0) + el(h, 1) + el(c, 2))
  f_g = jax.nn.sigmoid(el(x_emb, 3) + el(h, 4) + el(c, 5))
  c_new = f_g * c + i_g * jnp.tanh(el(x_emb, 6) + el(h, 7))
  o_g = jax.nn.sigmoid(el(x_emb, 8) + el(h, 9) + el(c_new, 10))
  h_new = o_g * jnp.tanh(c_new)

  q = lin(h_new, params["Wq"], params["bq"])
  ref = lin(ctx, params["Wref"], params["bref"]).reshape(B, S, H)
  u = jnp.sum(jnp.tanh(q[:, None, :] + ref) * params["v"].reshape(1, 1, H), axis=-1)
  latent_u = u
  u2 = 10.0 * jnp.tanh(u) + mask
  if latent is not None:
    u2 = u2 + params["scal"][3] * latent
  probs = jax.nn.softmax(u2, axis=1)
  return probs, h_new, c_new, latent_u


if __name__ == "__main__":
  B, S, F, H = 2, 8, 2, 32
  key = jax.random.PRNGKey(0)
  kp, kx, ka = jax.random.split(key, 3)
  params = init_params(kp, F, H)

  x = jax.random.uniform(kx, (B, F), jnp.float32)
  X_all = jax.random.uniform(ka, (B, S, F), jnp.float32)
  mask = jnp.zeros((B, S), jnp.float32).at[:, 0].set(-1e8)

  # --- first turn (f32): h/c/latent are None (runs the in-kernel lstm0 encoder) ---
  probs, h, c, latent_u = gpn_forward(params, x, X_all, mask)
  jax.block_until_ready((probs, h, c, latent_u))
  rp, rh, rc, rl = gpn_reference(params, x, X_all, mask)
  assert jnp.allclose(probs, rp, atol=1e-3, rtol=1e-2)
  assert jnp.allclose(h, rh, atol=1e-3, rtol=1e-2)
  assert jnp.allclose(c, rc, atol=1e-3, rtol=1e-2)
  assert jnp.allclose(latent_u, rl, atol=1e-3, rtol=1e-2)

  # --- second turn (f32): reuse h, c and feed latent_u back as latent ---
  x2 = X_all[:, 1, :]
  probs2, h2, c2, lat2 = gpn_forward(params, x2, X_all, mask,
                                     h=h, c=c, latent=latent_u)
  jax.block_until_ready((probs2, h2, c2, lat2))
  rp2, rh2, rc2, rl2 = gpn_reference(params, x2, X_all, mask,
                                     h=rh, c=rc, latent=rl)
  assert jnp.allclose(probs2, rp2, atol=1e-3, rtol=1e-2)
  assert jnp.allclose(h2, rh2, atol=1e-3, rtol=1e-2)
  assert jnp.allclose(c2, rc2, atol=1e-3, rtol=1e-2)
  assert jnp.allclose(lat2, rl2, atol=1e-3, rtol=1e-2)

  # --- bf16 matmul-operand path (production config): smoke check only ---
  bp, bhid, bcell, blat = gpn_forward(params, x, X_all, mask,
                                      compute_dtype=jnp.bfloat16)
  jax.block_until_ready((bp, bhid, bcell, blat))
  assert bool(jnp.isfinite(bp).all() & jnp.isfinite(bhid).all()
              & jnp.isfinite(bcell).all() & jnp.isfinite(blat).all())
  assert jnp.allclose(jnp.sum(bp, axis=1), jnp.ones((B,)), atol=1e-2)

  print("KERNEL_OK")
</pallas_src>

<mosaic_0001>
module attributes {stable_mosaic.version = 11 : i64} {
  func.func @gpn_kernel(%arg0: i32, %arg1: memref<2x2xf32, #tpu.memory_space<vmem>>, %arg2: memref<2x8x2xf32, #tpu.memory_space<vmem>>, %arg3: memref<2x8xf32, #tpu.memory_space<vmem>>, %arg4: memref<2x8xf32, #tpu.memory_space<vmem>>, %arg5: memref<2x32xf32, #tpu.memory_space<vmem>>, %arg6: memref<2x32xf32, #tpu.memory_space<vmem>>, %arg7: memref<2x32xf32, #tpu.memory_space<vmem>>, %arg8: memref<1x32xf32, #tpu.memory_space<vmem>>, %arg9: memref<2x32xf32, #tpu.memory_space<vmem>>, %arg10: memref<1x32xf32, #tpu.memory_space<vmem>>, %arg11: memref<2x128xf32, #tpu.memory_space<vmem>>, %arg12: memref<1x128xf32, #tpu.memory_space<vmem>>, %arg13: memref<32x128xf32, #tpu.memory_space<vmem>>, %arg14: memref<1x32xf32, #tpu.memory_space<vmem>>, %arg15: memref<1x32xf32, #tpu.memory_space<vmem>>, %arg16: memref<3x32x64xf32, #tpu.memory_space<vmem>>, %arg17: memref<3x1x64xf32, #tpu.memory_space<vmem>>, %arg18: memref<32x128xf32, #tpu.memory_space<vmem>>, %arg19: memref<1x128xf32, #tpu.memory_space<vmem>>, %arg20: memref<32x128xf32, #tpu.memory_space<vmem>>, %arg21: memref<1x128xf32, #tpu.memory_space<vmem>>, %arg22: memref<32x64xf32, #tpu.memory_space<vmem>>, %arg23: memref<1x64xf32, #tpu.memory_space<vmem>>, %arg24: memref<32x32xf32, #tpu.memory_space<vmem>>, %arg25: memref<1x32xf32, #tpu.memory_space<vmem>>, %arg26: memref<1x32xf32, #tpu.memory_space<vmem>>, %arg27: memref<32x32xf32, #tpu.memory_space<vmem>>, %arg28: memref<1x32xf32, #tpu.memory_space<vmem>>, %arg29: memref<32x32xf32, #tpu.memory_space<vmem>>, %arg30: memref<1x32xf32, #tpu.memory_space<vmem>>, %arg31: memref<4xf32, #tpu.memory_space<smem>>, %arg32: memref<2x8xf32, #tpu.memory_space<vmem>>, %arg33: memref<2x32xf32, #tpu.memory_space<vmem>>, %arg34: memref<2x32xf32, #tpu.memory_space<vmem>>, %arg35: memref<2x8xf32, #tpu.memory_space<vmem>>, %arg36: memref<8x2x128xf32, #tpu.memory_space<vmem>>) attributes {dimension_semantics = [#tpu.dimension_semantics<parallel>], iteration_bounds = array<i64: 1>, scalar_prefetch = 0 : i64, scratch_operands = 1 : i64, tpu.core_type = #tpu.core_type<tc>, window_params = [{transform_indices = @transform_0, window_bounds = array<i64: 2, 2>}, {transform_indices = @transform_1, window_bounds = array<i64: 2, 8, 2>}, {transform_indices = @transform_2, window_bounds = array<i64: 2, 8>}, {transform_indices = @transform_3, window_bounds = array<i64: 2, 8>}, {transform_indices = @transform_4, window_bounds = array<i64: 2, 32>}, {transform_indices = @transform_5, window_bounds = array<i64: 2, 32>}, {pipeline_mode = #tpu.pipeline_mode<synchronous>, transform_indices = @transform_6, window_bounds = array<i64: 2, 32>}, {pipeline_mode = #tpu.pipeline_mode<synchronous>, transform_indices = @transform_7, window_bounds = array<i64: 1, 32>}, {pipeline_mode = #tpu.pipeline_mode<synchronous>, transform_indices = @transform_8, window_bounds = array<i64: 2, 32>}, {pipeline_mode = #tpu.pipeline_mode<synchronous>, transform_indices = @transform_9, window_bounds = array<i64: 1, 32>}, {pipeline_mode = #tpu.pipeline_mode<synchronous>, transform_indices = @transform_10, window_bounds = array<i64: 2, 128>}, {pipeline_mode = #tpu.pipeline_mode<synchronous>, transform_indices = @transform_11, window_bounds = array<i64: 1, 128>}, {pipeline_mode = #tpu.pipeline_mode<synchronous>, transform_indices = @transform_12, window_bounds = array<i64: 32, 128>}, {pipeline_mode = #tpu.pipeline_mode<synchronous>, transform_indices = @transform_13, window_bounds = array<i64: 1, 32>}, {pipeline_mode = #tpu.pipeline_mode<synchronous>, transform_indices = @transform_14, window_bounds = array<i64: 1, 32>}, {pipeline_mode = #tpu.pipeline_mode<synchronous>, transform_indices = @transform_15, window_bounds = array<i64: 3, 32, 64>}, {pipeline_mode = #tpu.pipeline_mode<synchronous>, transform_indices = @transform_16, window_bounds = array<i64: 3, 1, 64>}, {pipeline_mode = #tpu.pipeline_mode<synchronous>, transform_indices = @transform_17, window_bounds = array<i64: 32, 128>}, {pipeline_mode = #tpu.pipeline_mode<synchronous>, transform_indices = @transform_18, window_bounds = array<i64: 1, 128>}, {pipeline_mode = #tpu.pipeline_mode<synchronous>, transform_indices = @transform_19, window_bounds = array<i64: 32, 128>}, {pipeline_mode = #tpu.pipeline_mode<synchronous>, transform_indices = @transform_20, window_bounds = array<i64: 1, 128>}, {pipeline_mode = #tpu.pipeline_mode<synchronous>, transform_indices = @transform_21, window_bounds = array<i64: 32, 64>}, {pipeline_mode = #tpu.pipeline_mode<synchronous>, transform_indices = @transform_22, window_bounds = array<i64: 1, 64>}, {pipeline_mode = #tpu.pipeline_mode<synchronous>, transform_indices = @transform_23, window_bounds = array<i64: 32, 32>}, {pipeline_mode = #tpu.pipeline_mode<synchronous>, transform_indices = @transform_24, window_bounds = array<i64: 1, 32>}, {pipeline_mode = #tpu.pipeline_mode<synchronous>, transform_indices = @transform_25, window_bounds = array<i64: 1, 32>}, {pipeline_mode = #tpu.pipeline_mode<synchronous>, transform_indices = @transform_26, window_bounds = array<i64: 32, 32>}, {pipeline_mode = #tpu.pipeline_mode<synchronous>, transform_indices = @transform_27, window_bounds = array<i64: 1, 32>}, {pipeline_mode = #tpu.pipeline_mode<synchronous>, transform_indices = @transform_28, window_bounds = array<i64: 32, 32>}, {pipeline_mode = #tpu.pipeline_mode<synchronous>, transform_indices = @transform_29, window_bounds = array<i64: 1, 32>}, {transform_indices = @transform_30, window_bounds = array<i64: 4>}, {transform_indices = @transform_31, window_bounds = array<i64: 2, 8>}, {transform_indices = @transform_32, window_bounds = array<i64: 2, 32>}, {transform_indices = @transform_33, window_bounds = array<i64: 2, 32>}, {transform_indices = @transform_34, window_bounds = array<i64: 2, 8>}]} {
    %c0 = arith.constant 0 : index
    %c0_0 = arith.constant 0 : index
    %0 = vector.load %arg1[%c0, %c0_0] : memref<2x2xf32, #tpu.memory_space<vmem>>, vector<2x2xf32>
    %c0_1 = arith.constant 0 : index
    %c0_2 = arith.constant 0 : index
    %1 = vector.load %arg7[%c0_1, %c0_2] : memref<2x32xf32, #tpu.memory_space<vmem>>, vector<2x32xf32>
    %cst = arith.constant dense<0.000000e+00> : vector<2x32xf32>
    %2 = tpu.matmul %0, %1, %cst {dimension_numbers = #tpu.dot_dimension_numbers<[1], [0], [0], [1], [0, 0, 1, 1], [], []>} : vector<2x2xf32>, vector<2x32xf32>, vector<2x32xf32> -> vector<2x32xf32>
    %c0_3 = arith.constant 0 : index
    %c0_4 = arith.constant 0 : index
    %3 = vector.load %arg8[%c0_3, %c0_4] : memref<1x32xf32, #tpu.memory_space<vmem>>, vector<1x32xf32>
    %4 = vector.broadcast %3 : vector<1x32xf32> to vector<2x32xf32>
    %5 = arith.addf %2, %4 : vector<2x32xf32>
    %c0_5 = arith.constant 0 : index
    %c0_6 = arith.constant 0 : index
    %c0_7 = arith.constant 0 : index
    %6 = vector.load %arg2[%c0_5, %c0_6, %c0_7] : memref<2x8x2xf32, #tpu.memory_space<vmem>>, vector<2x8x2xf32>
    %7 = vector.shape_cast %6 : vector<2x8x2xf32> to vector<16x2xf32>
    %c0_8 = arith.constant 0 : index
    %c0_9 = arith.constant 0 : index
    %8 = vector.load %arg9[%c0_8, %c0_9] : memref<2x32xf32, #tpu.memory_space<vmem>>, vector<2x32xf32>
    %cst_10 = arith.constant dense<0.000000e+00> : vector<16x32xf32>
    %9 = tpu.matmul %7, %8, %cst_10 {dimension_numbers = #tpu.dot_dimension_numbers<[1], [0], [0], [1], [0, 0, 1, 1], [], []>} : vector<16x2xf32>, vector<2x32xf32>, vector<16x32xf32> -> vector<16x32xf32>
    %c0_11 = arith.constant 0 : index
    %c0_12 = arith.constant 0 : index
    %10 = vector.load %arg10[%c0_11, %c0_12] : memref<1x32xf32, #tpu.memory_space<vmem>>, vector<1x32xf32>
    %11 = vector.broadcast %10 : vector<1x32xf32> to vector<16x32xf32>
    %12 = arith.addf %9, %11 : vector<16x32xf32>
    %13 = vector.shape_cast %6 : vector<2x8x2xf32> to vector<16x2xf32>
    %c0_13 = arith.constant 0 : index
    %c0_14 = arith.constant 0 : index
    %14 = vector.load %arg11[%c0_13, %c0_14] : memref<2x128xf32, #tpu.memory_space<vmem>>, vector<2x128xf32>
    %cst_15 = arith.constant dense<0.000000e+00> : vector<16x128xf32>
    %15 = tpu.matmul %13, %14, %cst_15 {dimension_numbers = #tpu.dot_dimension_numbers<[1], [0], [0], [1], [0, 0, 1, 1], [], []>} : vector<16x2xf32>, vector<2x128xf32>, vector<16x128xf32> -> vector<16x128xf32>
    %c0_16 = arith.constant 0 : index
    %c0_17 = arith.constant 0 : index
    %16 = vector.load %arg12[%c0_16, %c0_17] : memref<1x128xf32, #tpu.memory_space<vmem>>, vector<1x128xf32>
    %17 = vector.broadcast %16 : vector<1x128xf32> to vector<16x128xf32>
    %18 = arith.addf %15, %17 : vector<16x128xf32>
    %19 = vector.shape_cast %18 : vector<16x128xf32> to vector<2x8x128xf32>
    %20 = tpu.transpose %19, [1, 0, 2] : vector<2x8x128xf32> -> vector<8x2x128xf32>
    %c0_18 = arith.constant 0 : index
    %c0_19 = arith.constant 0 : index
    %c0_20 = arith.constant 0 : index
    %21 = vector.load %arg36[%c0_18, %c0_19, %c0_20] : memref<8x2x128xf32, #tpu.memory_space<vmem>>, vector<8x2x128xf32>
    tpu.vector_store %arg36[%c0_18, %c0_19, %c0_20], %20 {strides = array<i32>} : memref<8x2x128xf32, #tpu.memory_space<vmem>>, vector<8x2x128xf32>,
    %c0_21 = arith.constant 0 : index
    %c0_22 = arith.constant 0 : index
    %22 = vector.load %arg14[%c0_21, %c0_22] : memref<1x32xf32, #tpu.memory_space<vmem>>, vector<1x32xf32>
    %23 = vector.shape_cast %22 : vector<1x32xf32> to vector<1x32xf32>
    %24 = vector.broadcast %23 : vector<1x32xf32> to vector<2x32xf32>
    %c0_23 = arith.constant 0 : index
    %c0_24 = arith.constant 0 : index
    %25 = vector.load %arg15[%c0_23, %c0_24] : memref<1x32xf32, #tpu.memory_space<vmem>>, vector<1x32xf32>
    %26 = vector.shape_cast %25 : vector<1x32xf32> to vector<1x32xf32>
    %27 = vector.broadcast %26 : vector<1x32xf32> to vector<2x32xf32>
    %c0_25 = arith.constant 0 : index
    %c0_26 = arith.constant 0 : index
    %28 = vector.load %arg13[%c0_25, %c0_26] : memref<32x128xf32, #tpu.memory_space<vmem>>, vector<32x128xf32>
    %c0_i32 = arith.constant 0 : i32
    %29 = arith.index_cast %c0_i32 : i32 to index
    %c0_27 = arith.constant 0 : index
    %c0_28 = arith.constant 0 : index
    %30 = vector.load %arg36[%29, %c0_27, %c0_28] : memref<8x2x128xf32, #tpu.memory_space<vmem>>, vector<1x2x128xf32>
    %31 = vector.shape_cast %30 : vector<1x2x128xf32> to vector<2x128xf32>
    %cst_29 = arith.constant dense<0.000000e+00> : vector<2x128xf32>
    %32 = tpu.matmul %24, %28, %cst_29 {dimension_numbers = #tpu.dot_dimension_numbers<[1], [0], [0], [1], [0, 0, 1, 1], [], []>} : vector<2x32xf32>, vector<32x128xf32>, vector<2x128xf32> -> vector<2x128xf32>
    %33 = arith.addf %31, %32 : vector<2x128xf32>
    %34 = vector.extract_strided_slice %33 {offsets = [0, 0], sizes = [2, 32], strides = [1, 1]} : vector<2x128xf32> to vector<2x32xf32>
    %35 = arith.negf %34 : vector<2x32xf32>
    %36 = math.exp %35 : vector<2x32xf32>
    %cst_30 = arith.constant 1.000000e+00 : f32
    %37 = vector.broadcast %cst_30 : f32 to vector<2x32xf32>
    %38 = arith.addf %37, %36 : vector<2x32xf32>
    %39 = arith.divf %37, %38 : vector<2x32xf32>
    %40 = vector.extract_strided_slice %33 {offsets = [0, 32], sizes = [2, 32], strides = [1, 1]} : vector<2x128xf32> to vector<2x32xf32>
    %41 = arith.negf %40 : vector<2x32xf32>
    %42 = math.exp %41 : vector<2x32xf32>
    %cst_31 = arith.constant 1.000000e+00 : f32
    %43 = vector.broadcast %cst_31 : f32 to vector<2x32xf32>
    %44 = arith.addf %43, %42 : vector<2x32xf32>
    %45 = arith.divf %43, %44 : vector<2x32xf32>
    %46 = vector.extract_strided_slice %33 {offsets = [0, 64], sizes = [2, 32], strides = [1, 1]} : vector<2x128xf32> to vector<2x32xf32>
    %47 = math.tanh %46 : vector<2x32xf32>
    %48 = vector.extract_strided_slice %33 {offsets = [0, 96], sizes = [2, 32], strides = [1, 1]} : vector<2x128xf32> to vector<2x32xf32>
    %49 = arith.negf %48 : vector<2x32xf32>
    %50 = math.exp %49 : vector<2x32xf32>
    %cst_32 = arith.constant 1.000000e+00 : f32
    %51 = vector.broadcast %cst_32 : f32 to vector<2x32xf32>
    %52 = arith.addf %51, %50 : vector<2x32xf32>
    %53 = arith.divf %51, %52 : vector<2x32xf32>
    %54 = arith.mulf %45, %27 : vector<2x32xf32>
    %55 = arith.mulf %39, %47 : vector<2x32xf32>
    %56 = arith.addf %54, %55 : vector<2x32xf32>
    %57 = math.tanh %56 : vector<2x32xf32>
    %58 = arith.mulf %53, %57 : vector<2x32xf32>
    %c1_i32 = arith.constant 1 : i32
    %59 = arith.index_cast %c1_i32 : i32 to index
    %c0_33 = arith.constant 0 : index
    %c0_34 = arith.constant 0 : index
    %60 = vector.load %arg36[%59, %c0_33, %c0_34] : memref<8x2x128xf32, #tpu.memory_space<vmem>>, vector<1x2x128xf32>
    %61 = vector.shape_cast %60 : vector<1x2x128xf32> to vector<2x128xf32>
    %cst_35 = arith.constant dense<0.000000e+00> : vector<2x128xf32>
    %62 = tpu.matmul %58, %28, %cst_35 {dimension_numbers = #tpu.dot_dimension_numbers<[1], [0], [0], [1], [0, 0, 1, 1], [], []>} : vector<2x32xf32>, vector<32x128xf32>, vector<2x128xf32> -> vector<2x128xf32>
    %63 = arith.addf %61, %62 : vector<2x128xf32>
    %64 = vector.extract_strided_slice %63 {offsets = [0, 0], sizes = [2, 32], strides = [1, 1]} : vector<2x128xf32> to vector<2x32xf32>
    %65 = arith.negf %64 : vector<2x32xf32>
    %66 = math.exp %65 : vector<2x32xf32>
    %cst_36 = arith.constant 1.000000e+00 : f32
    %67 = vector.broadcast %cst_36 : f32 to vector<2x32xf32>
    %68 = arith.addf %67, %66 : vector<2x32xf32>
    %69 = arith.divf %67, %68 : vector<2x32xf32>
    %70 = vector.extract_strided_slice %63 {offsets = [0, 32], sizes = [2, 32], strides = [1, 1]} : vector<2x128xf32> to vector<2x32xf32>
    %71 = arith.negf %70 : vector<2x32xf32>
    %72 = math.exp %71 : vector<2x32xf32>
    %cst_37 = arith.constant 1.000000e+00 : f32
    %73 = vector.broadcast %cst_37 : f32 to vector<2x32xf32>
    %74 = arith.addf %73, %72 : vector<2x32xf32>
    %75 = arith.divf %73, %74 : vector<2x32xf32>
    %76 = vector.extract_strided_slice %63 {offsets = [0, 64], sizes = [2, 32], strides = [1, 1]} : vector<2x128xf32> to vector<2x32xf32>
    %77 = math.tanh %76 : vector<2x32xf32>
    %78 = vector.extract_strided_slice %63 {offsets = [0, 96], sizes = [2, 32], strides = [1, 1]} : vector<2x128xf32> to vector<2x32xf32>
    %79 = arith.negf %78 : vector<2x32xf32>
    %80 = math.exp %79 : vector<2x32xf32>
    %cst_38 = arith.constant 1.000000e+00 : f32
    %81 = vector.broadcast %cst_38 : f32 to vector<2x32xf32>
    %82 = arith.addf %81, %80 : vector<2x32xf32>
    %83 = arith.divf %81, %82 : vector<2x32xf32>
    %84 = arith.mulf %75, %56 : vector<2x32xf32>
    %85 = arith.mulf %69, %77 : vector<2x32xf32>
    %86 = arith.addf %84, %85 : vector<2x32xf32>
    %87 = math.tanh %86 : vector<2x32xf32>
    %88 = arith.mulf %83, %87 : vector<2x32xf32>
    %c2_i32 = arith.constant 2 : i32
    %89 = arith.index_cast %c2_i32 : i32 to index
    %c0_39 = arith.constant 0 : index
    %c0_40 = arith.constant 0 : index
    %90 = vector.load %arg36[%89, %c0_39, %c0_40] : memref<8x2x128xf32, #tpu.memory_space<vmem>>, vector<1x2x128xf32>
    %91 = vector.shape_cast %90 : vector<1x2x128xf32> to vector<2x128xf32>
    %cst_41 = arith.constant dense<0.000000e+00> : vector<2x128xf32>
    %92 = tpu.matmul %88, %28, %cst_41 {dimension_numbers = #tpu.dot_dimension_numbers<[1], [0], [0], [1], [0, 0, 1, 1], [], []>} : vector<2x32xf32>, vector<32x128xf32>, vector<2x128xf32> -> vector<2x128xf32>
    %93 = arith.addf %91, %92 : vector<2x128xf32>
    %94 = vector.extract_strided_slice %93 {offsets = [0, 0], sizes = [2, 32], strides = [1, 1]} : vector<2x128xf32> to vector<2x32xf32>
    %95 = arith.negf %94 : vector<2x32xf32>
    %96 = math.exp %95 : vector<2x32xf32>
    %cst_42 = arith.constant 1.000000e+00 : f32
    %97 = vector.broadcast %cst_42 : f32 to vector<2x32xf32>
    %98 = arith.addf %97, %96 : vector<2x32xf32>
    %99 = arith.divf %97, %98 : vector<2x32xf32>
    %100 = vector.extract_strided_slice %93 {offsets = [0, 32], sizes = [2, 32], strides = [1, 1]} : vector<2x128xf32> to vector<2x32xf32>
    %101 = arith.negf %100 : vector<2x32xf32>
    %102 = math.exp %101 : vector<2x32xf32>
    %cst_43 = arith.constant 1.000000e+00 : f32
    %103 = vector.broadcast %cst_43 : f32 to vector<2x32xf32>
    %104 = arith.addf %103, %102 : vector<2x32xf32>
    %105 = arith.divf %103, %104 : vector<2x32xf32>
    %106 = vector.extract_strided_slice %93 {offsets = [0, 64], sizes = [2, 32], strides = [1, 1]} : vector<2x128xf32> to vector<2x32xf32>
    %107 = math.tanh %106 : vector<2x32xf32>
    %108 = vector.extract_strided_slice %93 {offsets = [0, 96], sizes = [2, 32], strides = [1, 1]} : vector<2x128xf32> to vector<2x32xf32>
    %109 = arith.negf %108 : vector<2x32xf32>
    %110 = math.exp %109 : vector<2x32xf32>
    %cst_44 = arith.constant 1.000000e+00 : f32
    %111 = vector.broadcast %cst_44 : f32 to vector<2x32xf32>
    %112 = arith.addf %111, %110 : vector<2x32xf32>
    %113 = arith.divf %111, %112 : vector<2x32xf32>
    %114 = arith.mulf %105, %86 : vector<2x32xf32>
    %115 = arith.mulf %99, %107 : vector<2x32xf32>
    %116 = arith.addf %114, %115 : vector<2x32xf32>
    %117 = math.tanh %116 : vector<2x32xf32>
    %118 = arith.mulf %113, %117 : vector<2x32xf32>
    %c3_i32 = arith.constant 3 : i32
    %119 = arith.index_cast %c3_i32 : i32 to index
    %c0_45 = arith.constant 0 : index
    %c0_46 = arith.constant 0 : index
    %120 = vector.load %arg36[%119, %c0_45, %c0_46] : memref<8x2x128xf32, #tpu.memory_space<vmem>>, vector<1x2x128xf32>
    %121 = vector.shape_cast %120 : vector<1x2x128xf32> to vector<2x128xf32>
    %cst_47 = arith.constant dense<0.000000e+00> : vector<2x128xf32>
    %122 = tpu.matmul %118, %28, %cst_47 {dimension_numbers = #tpu.dot_dimension_numbers<[1], [0], [0], [1], [0, 0, 1, 1], [], []>} : vector<2x32xf32>, vector<32x128xf32>, vector<2x128xf32> -> vector<2x128xf32>
    %123 = arith.addf %121, %122 : vector<2x128xf32>
    %124 = vector.extract_strided_slice %123 {offsets = [0, 0], sizes = [2, 32], strides = [1, 1]} : vector<2x128xf32> to vector<2x32xf32>
    %125 = arith.negf %124 : vector<2x32xf32>
    %126 = math.exp %125 : vector<2x32xf32>
    %cst_48 = arith.constant 1.000000e+00 : f32
    %127 = vector.broadcast %cst_48 : f32 to vector<2x32xf32>
    %128 = arith.addf %127, %126 : vector<2x32xf32>
    %129 = arith.divf %127, %128 : vector<2x32xf32>
    %130 = vector.extract_strided_slice %123 {offsets = [0, 32], sizes = [2, 32], strides = [1, 1]} : vector<2x128xf32> to vector<2x32xf32>
    %131 = arith.negf %130 : vector<2x32xf32>
    %132 = math.exp %131 : vector<2x32xf32>
    %cst_49 = arith.constant 1.000000e+00 : f32
    %133 = vector.broadcast %cst_49 : f32 to vector<2x32xf32>
    %134 = arith.addf %133, %132 : vector<2x32xf32>
    %135 = arith.divf %133, %134 : vector<2x32xf32>
    %136 = vector.extract_strided_slice %123 {offsets = [0, 64], sizes = [2, 32], strides = [1, 1]} : vector<2x128xf32> to vector<2x32xf32>
    %137 = math.tanh %136 : vector<2x32xf32>
    %138 = vector.extract_strided_slice %123 {offsets = [0, 96], sizes = [2, 32], strides = [1, 1]} : vector<2x128xf32> to vector<2x32xf32>
    %139 = arith.negf %138 : vector<2x32xf32>
    %140 = math.exp %139 : vector<2x32xf32>
    %cst_50 = arith.constant 1.000000e+00 : f32
    %141 = vector.broadcast %cst_50 : f32 to vector<2x32xf32>
    %142 = arith.addf %141, %140 : vector<2x32xf32>
    %143 = arith.divf %141, %142 : vector<2x32xf32>
    %144 = arith.mulf %135, %116 : vector<2x32xf32>
    %145 = arith.mulf %129, %137 : vector<2x32xf32>
    %146 = arith.addf %144, %145 : vector<2x32xf32>
    %147 = math.tanh %146 : vector<2x32xf32>
    %148 = arith.mulf %143, %147 : vector<2x32xf32>
    %c4_i32 = arith.constant 4 : i32
    %149 = arith.index_cast %c4_i32 : i32 to index
    %c0_51 = arith.constant 0 : index
    %c0_52 = arith.constant 0 : index
    %150 = vector.load %arg36[%149, %c0_51, %c0_52] : memref<8x2x128xf32, #tpu.memory_space<vmem>>, vector<1x2x128xf32>
    %151 = vector.shape_cast %150 : vector<1x2x128xf32> to vector<2x128xf32>
    %cst_53 = arith.constant dense<0.000000e+00> : vector<2x128xf32>
    %152 = tpu.matmul %148, %28, %cst_53 {dimension_numbers = #tpu.dot_dimension_numbers<[1], [0], [0], [1], [0, 0, 1, 1], [], []>} : vector<2x32xf32>, vector<32x128xf32>, vector<2x128xf32> -> vector<2x128xf32>
    %153 = arith.addf %151, %152 : vector<2x128xf32>
    %154 = vector.extract_strided_slice %153 {offsets = [0, 0], sizes = [2, 32], strides = [1, 1]} : vector<2x128xf32> to vector<2x32xf32>
    %155 = arith.negf %154 : vector<2x32xf32>
    %156 = math.exp %155 : vector<2x32xf32>
    %cst_54 = arith.constant 1.000000e+00 : f32
    %157 = vector.broadcast %cst_54 : f32 to vector<2x32xf32>
    %158 = arith.addf %157, %156 : vector<2x32xf32>
    %159 = arith.divf %157, %158 : vector<2x32xf32>
    %160 = vector.extract_strided_slice %153 {offsets = [0, 32], sizes = [2, 32], strides = [1, 1]} : vector<2x128xf32> to vector<2x32xf32>
    %161 = arith.negf %160 : vector<2x32xf32>
    %162 = math.exp %161 : vector<2x32xf32>
    %cst_55 = arith.constant 1.000000e+00 : f32
    %163 = vector.broadcast %cst_55 : f32 to vector<2x32xf32>
    %164 = arith.addf %163, %162 : vector<2x32xf32>
    %165 = arith.divf %163, %164 : vector<2x32xf32>
    %166 = vector.extract_strided_slice %153 {offsets = [0, 64], sizes = [2, 32], strides = [1, 1]} : vector<2x128xf32> to vector<2x32xf32>
    %167 = math.tanh %166 : vector<2x32xf32>
    %168 = vector.extract_strided_slice %153 {offsets = [0, 96], sizes = [2, 32], strides = [1, 1]} : vector<2x128xf32> to vector<2x32xf32>
    %169 = arith.negf %168 : vector<2x32xf32>
    %170 = math.exp %169 : vector<2x32xf32>
    %cst_56 = arith.constant 1.000000e+00 : f32
    %171 = vector.broadcast %cst_56 : f32 to vector<2x32xf32>
    %172 = arith.addf %171, %170 : vector<2x32xf32>
    %173 = arith.divf %171, %172 : vector<2x32xf32>
    %174 = arith.mulf %165, %146 : vector<2x32xf32>
    %175 = arith.mulf %159, %167 : vector<2x32xf32>
    %176 = arith.addf %174, %175 : vector<2x32xf32>
    %177 = math.tanh %176 : vector<2x32xf32>
    %178 = arith.mulf %173, %177 : vector<2x32xf32>
    %c5_i32 = arith.constant 5 : i32
    %179 = arith.index_cast %c5_i32 : i32 to index
    %c0_57 = arith.constant 0 : index
    %c0_58 = arith.constant 0 : index
    %180 = vector.load %arg36[%179, %c0_57, %c0_58] : memref<8x2x128xf32, #tpu.memory_space<vmem>>, vector<1x2x128xf32>
    %181 = vector.shape_cast %180 : vector<1x2x128xf32> to vector<2x128xf32>
    %cst_59 = arith.constant dense<0.000000e+00> : vector<2x128xf32>
    %182 = tpu.matmul %178, %28, %cst_59 {dimension_numbers = #tpu.dot_dimension_numbers<[1], [0], [0], [1], [0, 0, 1, 1], [], []>} : vector<2x32xf32>, vector<32x128xf32>, vector<2x128xf32> -> vector<2x128xf32>
    %183 = arith.addf %181, %182 : vector<2x128xf32>
    %184 = vector.extract_strided_slice %183 {offsets = [0, 0], sizes = [2, 32], strides = [1, 1]} : vector<2x128xf32> to vector<2x32xf32>
    %185 = arith.negf %184 : vector<2x32xf32>
    %186 = math.exp %185 : vector<2x32xf32>
    %cst_60 = arith.constant 1.000000e+00 : f32
    %187 = vector.broadcast %cst_60 : f32 to vector<2x32xf32>
    %188 = arith.addf %187, %186 : vector<2x32xf32>
    %189 = arith.divf %187, %188 : vector<2x32xf32>
    %190 = vector.extract_strided_slice %183 {offsets = [0, 32], sizes = [2, 32], strides = [1, 1]} : vector<2x128xf32> to vector<2x32xf32>
    %191 = arith.negf %190 : vector<2x32xf32>
    %192 = math.exp %191 : vector<2x32xf32>
    %cst_61 = arith.constant 1.000000e+00 : f32
    %193 = vector.broadcast %cst_61 : f32 to vector<2x32xf32>
    %194 = arith.addf %193, %192 : vector<2x32xf32>
    %195 = arith.divf %193, %194 : vector<2x32xf32>
    %196 = vector.extract_strided_slice %183 {offsets = [0, 64], sizes = [2, 32], strides = [1, 1]} : vector<2x128xf32> to vector<2x32xf32>
    %197 = math.tanh %196 : vector<2x32xf32>
    %198 = vector.extract_strided_slice %183 {offsets = [0, 96], sizes = [2, 32], strides = [1, 1]} : vector<2x128xf32> to vector<2x32xf32>
    %199 = arith.negf %198 : vector<2x32xf32>
    %200 = math.exp %199 : vector<2x32xf32>
    %cst_62 = arith.constant 1.000000e+00 : f32
    %201 = vector.broadcast %cst_62 : f32 to vector<2x32xf32>
    %202 = arith.addf %201, %200 : vector<2x32xf32>
    %203 = arith.divf %201, %202 : vector<2x32xf32>
    %204 = arith.mulf %195, %176 : vector<2x32xf32>
    %205 = arith.mulf %189, %197 : vector<2x32xf32>
    %206 = arith.addf %204, %205 : vector<2x32xf32>
    %207 = math.tanh %206 : vector<2x32xf32>
    %208 = arith.mulf %203, %207 : vector<2x32xf32>
    %c6_i32 = arith.constant 6 : i32
    %209 = arith.index_cast %c6_i32 : i32 to index
    %c0_63 = arith.constant 0 : index
    %c0_64 = arith.constant 0 : index
    %210 = vector.load %arg36[%209, %c0_63, %c0_64] : memref<8x2x128xf32, #tpu.memory_space<vmem>>, vector<1x2x128xf32>
    %211 = vector.shape_cast %210 : vector<1x2x128xf32> to vector<2x128xf32>
    %cst_65 = arith.constant dense<0.000000e+00> : vector<2x128xf32>
    %212 = tpu.matmul %208, %28, %cst_65 {dimension_numbers = #tpu.dot_dimension_numbers<[1], [0], [0], [1], [0, 0, 1, 1], [], []>} : vector<2x32xf32>, vector<32x128xf32>, vector<2x128xf32> -> vector<2x128xf32>
    %213 = arith.addf %211, %212 : vector<2x128xf32>
    %214 = vector.extract_strided_slice %213 {offsets = [0, 0], sizes = [2, 32], strides = [1, 1]} : vector<2x128xf32> to vector<2x32xf32>
    %215 = arith.negf %214 : vector<2x32xf32>
    %216 = math.exp %215 : vector<2x32xf32>
    %cst_66 = arith.constant 1.000000e+00 : f32
    %217 = vector.broadcast %cst_66 : f32 to vector<2x32xf32>
    %218 = arith.addf %217, %216 : vector<2x32xf32>
    %219 = arith.divf %217, %218 : vector<2x32xf32>
    %220 = vector.extract_strided_slice %213 {offsets = [0, 32], sizes = [2, 32], strides = [1, 1]} : vector<2x128xf32> to vector<2x32xf32>
    %221 = arith.negf %220 : vector<2x32xf32>
    %222 = math.exp %221 : vector<2x32xf32>
    %cst_67 = arith.constant 1.000000e+00 : f32
    %223 = vector.broadcast %cst_67 : f32 to vector<2x32xf32>
    %224 = arith.addf %223, %222 : vector<2x32xf32>
    %225 = arith.divf %223, %224 : vector<2x32xf32>
    %226 = vector.extract_strided_slice %213 {offsets = [0, 64], sizes = [2, 32], strides = [1, 1]} : vector<2x128xf32> to vector<2x32xf32>
    %227 = math.tanh %226 : vector<2x32xf32>
    %228 = vector.extract_strided_slice %213 {offsets = [0, 96], sizes = [2, 32], strides = [1, 1]} : vector<2x128xf32> to vector<2x32xf32>
    %229 = arith.negf %228 : vector<2x32xf32>
    %230 = math.exp %229 : vector<2x32xf32>
    %cst_68 = arith.constant 1.000000e+00 : f32
    %231 = vector.broadcast %cst_68 : f32 to vector<2x32xf32>
    %232 = arith.addf %231, %230 : vector<2x32xf32>
    %233 = arith.divf %231, %232 : vector<2x32xf32>
    %234 = arith.mulf %225, %206 : vector<2x32xf32>
    %235 = arith.mulf %219, %227 : vector<2x32xf32>
    %236 = arith.addf %234, %235 : vector<2x32xf32>
    %237 = math.tanh %236 : vector<2x32xf32>
    %238 = arith.mulf %233, %237 : vector<2x32xf32>
    %c7_i32 = arith.constant 7 : i32
    %239 = arith.index_cast %c7_i32 : i32 to index
    %c0_69 = arith.constant 0 : index
    %c0_70 = arith.constant 0 : index
    %240 = vector.load %arg36[%239, %c0_69, %c0_70] : memref<8x2x128xf32, #tpu.memory_space<vmem>>, vector<1x2x128xf32>
    %241 = vector.shape_cast %240 : vector<1x2x128xf32> to vector<2x128xf32>
    %cst_71 = arith.constant dense<0.000000e+00> : vector<2x128xf32>
    %242 = tpu.matmul %238, %28, %cst_71 {dimension_numbers = #tpu.dot_dimension_numbers<[1], [0], [0], [1], [0, 0, 1, 1], [], []>} : vector<2x32xf32>, vector<32x128xf32>, vector<2x128xf32> -> vector<2x128xf32>
    %243 = arith.addf %241, %242 : vector<2x128xf32>
    %244 = vector.extract_strided_slice %243 {offsets = [0, 0], sizes = [2, 32], strides = [1, 1]} : vector<2x128xf32> to vector<2x32xf32>
    %245 = arith.negf %244 : vector<2x32xf32>
    %246 = math.exp %245 : vector<2x32xf32>
    %cst_72 = arith.constant 1.000000e+00 : f32
    %247 = vector.broadcast %cst_72 : f32 to vector<2x32xf32>
    %248 = arith.addf %247, %246 : vector<2x32xf32>
    %249 = arith.divf %247, %248 : vector<2x32xf32>
    %250 = vector.extract_strided_slice %243 {offsets = [0, 32], sizes = [2, 32], strides = [1, 1]} : vector<2x128xf32> to vector<2x32xf32>
    %251 = arith.negf %250 : vector<2x32xf32>
    %252 = math.exp %251 : vector<2x32xf32>
    %cst_73 = arith.constant 1.000000e+00 : f32
    %253 = vector.broadcast %cst_73 : f32 to vector<2x32xf32>
    %254 = arith.addf %253, %252 : vector<2x32xf32>
    %255 = arith.divf %253, %254 : vector<2x32xf32>
    %256 = vector.extract_strided_slice %243 {offsets = [0, 64], sizes = [2, 32], strides = [1, 1]} : vector<2x128xf32> to vector<2x32xf32>
    %257 = math.tanh %256 : vector<2x32xf32>
    %258 = vector.extract_strided_slice %243 {offsets = [0, 96], sizes = [2, 32], strides = [1, 1]} : vector<2x128xf32> to vector<2x32xf32>
    %259 = arith.negf %258 : vector<2x32xf32>
    %260 = math.exp %259 : vector<2x32xf32>
    %cst_74 = arith.constant 1.000000e+00 : f32
    %261 = vector.broadcast %cst_74 : f32 to vector<2x32xf32>
    %262 = arith.addf %261, %260 : vector<2x32xf32>
    %263 = arith.divf %261, %262 : vector<2x32xf32>
    %264 = arith.mulf %255, %236 : vector<2x32xf32>
    %265 = arith.mulf %249, %257 : vector<2x32xf32>
    %266 = arith.addf %264, %265 : vector<2x32xf32>
    %267 = math.tanh %266 : vector<2x32xf32>
    %268 = arith.mulf %263, %267 : vector<2x32xf32>
    %c8_i32 = arith.constant 8 : i32
    %c0_75 = arith.constant 0 : index
    %269 = memref.load %arg31[%c0_75] : memref<4xf32, #tpu.memory_space<smem>>
    %c0_76 = arith.constant 0 : index
    %c0_77 = arith.constant 0 : index
    %c0_78 = arith.constant 0 : index
    %270 = vector.load %arg16[%c0_76, %c0_77, %c0_78] : memref<3x32x64xf32, #tpu.memory_space<vmem>>, vector<1x32x64xf32>
    %271 = vector.shape_cast %270 : vector<1x32x64xf32> to vector<32x64xf32>
    %cst_79 = arith.constant dense<0.000000e+00> : vector<16x64xf32>
    %272 = tpu.matmul %12, %271, %cst_79 {dimension_numbers = #tpu.dot_dimension_numbers<[1], [0], [0], [1], [0, 0, 1, 1], [], []>} : vector<16x32xf32>, vector<32x64xf32>, vector<16x64xf32> -> vector<16x64xf32>
    %c0_80 = arith.constant 0 : index
    %c0_81 = arith.constant 0 : index
    %c0_82 = arith.constant 0 : index
    %273 = vector.load %arg17[%c0_80, %c0_81, %c0_82] : memref<3x1x64xf32, #tpu.memory_space<vmem>>, vector<1x1x64xf32>
    %274 = vector.shape_cast %273 : vector<1x1x64xf32> to vector<1x64xf32>
    %275 = vector.broadcast %274 : vector<1x64xf32> to vector<16x64xf32>
    %276 = arith.addf %272, %275 : vector<16x64xf32>
    %277 = vector.extract_strided_slice %276 {offsets = [0, 0], sizes = [16, 32], strides = [1, 1]} : vector<16x64xf32> to vector<16x32xf32>
    %278 = vector.broadcast %269 : f32 to vector<16x32xf32>
    %279 = arith.mulf %278, %277 : vector<16x32xf32>
    %cst_83 = arith.constant 1.000000e+00 : f32
    %280 = arith.subf %cst_83, %269 : f32
    %281 = vector.extract_strided_slice %276 {offsets = [0, 32], sizes = [16, 32], strides = [1, 1]} : vector<16x64xf32> to vector<16x32xf32>
    %cst_84 = arith.constant 0.000000e+00 : f32
    %282 = vector.broadcast %cst_84 : f32 to vector<16x32xf32>
    %283 = arith.maximumf %281, %282 : vector<16x32xf32>
    %284 = vector.broadcast %280 : f32 to vector<16x32xf32>
    %285 = arith.mulf %284, %283 : vector<16x32xf32>
    %286 = arith.addf %279, %285 : vector<16x32xf32>
    %c1 = arith.constant 1 : index
    %287 = memref.load %arg31[%c1] : memref<4xf32, #tpu.memory_space<smem>>
    %c1_85 = arith.constant 1 : index
    %c0_86 = arith.constant 0 : index
    %c0_87 = arith.constant 0 : index
    %288 = vector.load %arg16[%c1_85, %c0_86, %c0_87] : memref<3x32x64xf32, #tpu.memory_space<vmem>>, vector<1x32x64xf32>
    %289 = vector.shape_cast %288 : vector<1x32x64xf32> to vector<32x64xf32>
    %cst_88 = arith.constant dense<0.000000e+00> : vector<16x64xf32>
    %290 = tpu.matmul %286, %289, %cst_88 {dimension_numbers = #tpu.dot_dimension_numbers<[1], [0], [0], [1], [0, 0, 1, 1], [], []>} : vector<16x32xf32>, vector<32x64xf32>, vector<16x64xf32> -> vector<16x64xf32>
    %c1_89 = arith.constant 1 : index
    %c0_90 = arith.constant 0 : index
    %c0_91 = arith.constant 0 : index
    %291 = vector.load %arg17[%c1_89, %c0_90, %c0_91] : memref<3x1x64xf32, #tpu.memory_space<vmem>>, vector<1x1x64xf32>
    %292 = vector.shape_cast %291 : vector<1x1x64xf32> to vector<1x64xf32>
    %293 = vector.broadcast %292 : vector<1x64xf32> to vector<16x64xf32>
    %294 = arith.addf %290, %293 : vector<16x64xf32>
    %295 = vector.extract_strided_slice %294 {offsets = [0, 0], sizes = [16, 32], strides = [1, 1]} : vector<16x64xf32> to vector<16x32xf32>
    %296 = vector.broadcast %287 : f32 to vector<16x32xf32>
    %297 = arith.mulf %296, %295 : vector<16x32xf32>
    %cst_92 = arith.constant 1.000000e+00 : f32
    %298 = arith.subf %cst_92, %287 : f32
    %299 = vector.extract_strided_slice %294 {offsets = [0, 32], sizes = [16, 32], strides = [1, 1]} : vector<16x64xf32> to vector<16x32xf32>
    %cst_93 = arith.constant 0.000000e+00 : f32
    %300 = vector.broadcast %cst_93 : f32 to vector<16x32xf32>
    %301 = arith.maximumf %299, %300 : vector<16x32xf32>
    %302 = vector.broadcast %298 : f32 to vector<16x32xf32>
    %303 = arith.mulf %302, %301 : vector<16x32xf32>
    %304 = arith.addf %297, %303 : vector<16x32xf32>
    %c2 = arith.constant 2 : index
    %305 = memref.load %arg31[%c2] : memref<4xf32, #tpu.memory_space<smem>>
    %c2_94 = arith.constant 2 : index
    %c0_95 = arith.constant 0 : index
    %c0_96 = arith.constant 0 : index
    %306 = vector.load %arg16[%c2_94, %c0_95, %c0_96] : memref<3x32x64xf32, #tpu.memory_space<vmem>>, vector<1x32x64xf32>
    %307 = vector.shape_cast %306 : vector<1x32x64xf32> to vector<32x64xf32>
    %cst_97 = arith.constant dense<0.000000e+00> : vector<16x64xf32>
    %308 = tpu.matmul %304, %307, %cst_97 {dimension_numbers = #tpu.dot_dimension_numbers<[1], [0], [0], [1], [0, 0, 1, 1], [], []>} : vector<16x32xf32>, vector<32x64xf32>, vector<16x64xf32> -> vector<16x64xf32>
    %c2_98 = arith.constant 2 : index
    %c0_99 = arith.constant 0 : index
    %c0_100 = arith.constant 0 : index
    %309 = vector.load %arg17[%c2_98, %c0_99, %c0_100] : memref<3x1x64xf32, #tpu.memory_space<vmem>>, vector<1x1x64xf32>
    %310 = vector.shape_cast %309 : vector<1x1x64xf32> to vector<1x64xf32>
    %311 = vector.broadcast %310 : vector<1x64xf32> to vector<16x64xf32>
    %312 = arith.addf %308, %311 : vector<16x64xf32>
    %313 = vector.extract_strided_slice %312 {offsets = [0, 0], sizes = [16, 32], strides = [1, 1]} : vector<16x64xf32> to vector<16x32xf32>
    %314 = vector.broadcast %305 : f32 to vector<16x32xf32>
    %315 = arith.mulf %314, %313 : vector<16x32xf32>
    %cst_101 = arith.constant 1.000000e+00 : f32
    %316 = arith.subf %cst_101, %305 : f32
    %317 = vector.extract_strided_slice %312 {offsets = [0, 32], sizes = [16, 32], strides = [1, 1]} : vector<16x64xf32> to vector<16x32xf32>
    %cst_102 = arith.constant 0.000000e+00 : f32
    %318 = vector.broadcast %cst_102 : f32 to vector<16x32xf32>
    %319 = arith.maximumf %317, %318 : vector<16x32xf32>
    %320 = vector.broadcast %316 : f32 to vector<16x32xf32>
    %321 = arith.mulf %320, %319 : vector<16x32xf32>
    %322 = arith.addf %315, %321 : vector<16x32xf32>
    %c0_103 = arith.constant 0 : index
    %c0_104 = arith.constant 0 : index
    %323 = vector.load %arg18[%c0_103, %c0_104] : memref<32x128xf32, #tpu.memory_space<vmem>>, vector<32x128xf32>
    %cst_105 = arith.constant dense<0.000000e+00> : vector<2x128xf32>
    %324 = tpu.matmul %5, %323, %cst_105 {dimension_numbers = #tpu.dot_dimension_numbers<[1], [0], [0], [1], [0, 0, 1, 1], [], []>} : vector<2x32xf32>, vector<32x128xf32>, vector<2x128xf32> -> vector<2x128xf32>
    %c0_106 = arith.constant 0 : index
    %c0_107 = arith.constant 0 : index
    %325 = vector.load %arg19[%c0_106, %c0_107] : memref<1x128xf32, #tpu.memory_space<vmem>>, vector<1x128xf32>
    %326 = vector.broadcast %325 : vector<1x128xf32> to vector<2x128xf32>
    %327 = arith.addf %324, %326 : vector<2x128xf32>
    %c0_108 = arith.constant 0 : index
    %c0_109 = arith.constant 0 : index
    %328 = vector.load %arg20[%c0_108, %c0_109] : memref<32x128xf32, #tpu.memory_space<vmem>>, vector<32x128xf32>
    %cst_110 = arith.constant dense<0.000000e+00> : vector<2x128xf32>
    %329 = tpu.matmul %268, %328, %cst_110 {dimension_numbers = #tpu.dot_dimension_numbers<[1], [0], [0], [1], [0, 0, 1, 1], [], []>} : vector<2x32xf32>, vector<32x128xf32>, vector<2x128xf32> -> vector<2x128xf32>
    %c0_111 = arith.constant 0 : index
    %c0_112 = arith.constant 0 : index
    %330 = vector.load %arg21[%c0_111, %c0_112] : memref<1x128xf32, #tpu.memory_space<vmem>>, vector<1x128xf32>
    %331 = vector.broadcast %330 : vector<1x128xf32> to vector<2x128xf32>
    %332 = arith.addf %329, %331 : vector<2x128xf32>
    %c0_113 = arith.constant 0 : index
    %c0_114 = arith.constant 0 : index
    %333 = vector.load %arg22[%c0_113, %c0_114] : memref<32x64xf32, #tpu.memory_space<vmem>>, vector<32x64xf32>
    %cst_115 = arith.constant dense<0.000000e+00> : vector<2x64xf32>
    %334 = tpu.matmul %266, %333, %cst_115 {dimension_numbers = #tpu.dot_dimension_numbers<[1], [0], [0], [1], [0, 0, 1, 1], [], []>} : vector<2x32xf32>, vector<32x64xf32>, vector<2x64xf32> -> vector<2x64xf32>
    %c0_116 = arith.constant 0 : index
    %c0_117 = arith.constant 0 : index
    %335 = vector.load %arg23[%c0_116, %c0_117] : memref<1x64xf32, #tpu.memory_space<vmem>>, vector<1x64xf32>
    %336 = vector.broadcast %335 : vector<1x64xf32> to vector<2x64xf32>
    %337 = arith.addf %334, %336 : vector<2x64xf32>
    %338 = arith.addf %327, %332 : vector<2x128xf32>
    %339 = vector.extract_strided_slice %338 {offsets = [0, 0], sizes = [2, 32], strides = [1, 1]} : vector<2x128xf32> to vector<2x32xf32>
    %340 = vector.extract_strided_slice %337 {offsets = [0, 0], sizes = [2, 32], strides = [1, 1]} : vector<2x64xf32> to vector<2x32xf32>
    %341 = arith.addf %339, %340 : vector<2x32xf32>
    %342 = arith.negf %341 : vector<2x32xf32>
    %343 = math.exp %342 : vector<2x32xf32>
    %cst_118 = arith.constant 1.000000e+00 : f32
    %344 = vector.broadcast %cst_118 : f32 to vector<2x32xf32>
    %345 = arith.addf %344, %343 : vector<2x32xf32>
    %346 = arith.divf %344, %345 : vector<2x32xf32>
    %347 = vector.extract_strided_slice %338 {offsets = [0, 32], sizes = [2, 32], strides = [1, 1]} : vector<2x128xf32> to vector<2x32xf32>
    %348 = vector.extract_strided_slice %337 {offsets = [0, 32], sizes = [2, 32], strides = [1, 1]} : vector<2x64xf32> to vector<2x32xf32>
    %349 = arith.addf %347, %348 : vector<2x32xf32>
    %350 = arith.negf %349 : vector<2x32xf32>
    %351 = math.exp %350 : vector<2x32xf32>
    %cst_119 = arith.constant 1.000000e+00 : f32
    %352 = vector.broadcast %cst_119 : f32 to vector<2x32xf32>
    %353 = arith.addf %352, %351 : vector<2x32xf32>
    %354 = arith.divf %352, %353 : vector<2x32xf32>
    %355 = arith.mulf %354, %266 : vector<2x32xf32>
    %356 = vector.extract_strided_slice %338 {offsets = [0, 64], sizes = [2, 32], strides = [1, 1]} : vector<2x128xf32> to vector<2x32xf32>
    %357 = math.tanh %356 : vector<2x32xf32>
    %358 = arith.mulf %346, %357 : vector<2x32xf32>
    %359 = arith.addf %355, %358 : vector<2x32xf32>
    %c0_120 = arith.constant 0 : index
    %c0_121 = arith.constant 0 : index
    %360 = vector.load %arg24[%c0_120, %c0_121] : memref<32x32xf32, #tpu.memory_space<vmem>>, vector<32x32xf32>
    %cst_122 = arith.constant dense<0.000000e+00> : vector<2x32xf32>
    %361 = tpu.matmul %359, %360, %cst_122 {dimension_numbers = #tpu.dot_dimension_numbers<[1], [0], [0], [1], [0, 0, 1, 1], [], []>} : vector<2x32xf32>, vector<32x32xf32>, vector<2x32xf32> -> vector<2x32xf32>
    %c0_123 = arith.constant 0 : index
    %c0_124 = arith.constant 0 : index
    %362 = vector.load %arg25[%c0_123, %c0_124] : memref<1x32xf32, #tpu.memory_space<vmem>>, vector<1x32xf32>
    %363 = vector.broadcast %362 : vector<1x32xf32> to vector<2x32xf32>
    %364 = arith.addf %361, %363 : vector<2x32xf32>
    %365 = vector.extract_strided_slice %338 {offsets = [0, 96], sizes = [2, 32], strides = [1, 1]} : vector<2x128xf32> to vector<2x32xf32>
    %366 = arith.addf %365, %364 : vector<2x32xf32>
    %367 = arith.negf %366 : vector<2x32xf32>
    %368 = math.exp %367 : vector<2x32xf32>
    %cst_125 = arith.constant 1.000000e+00 : f32
    %369 = vector.broadcast %cst_125 : f32 to vector<2x32xf32>
    %370 = arith.addf %369, %368 : vector<2x32xf32>
    %371 = arith.divf %369, %370 : vector<2x32xf32>
    %372 = math.tanh %359 : vector<2x32xf32>
    %373 = arith.mulf %371, %372 : vector<2x32xf32>
    %c0_126 = arith.constant 0 : index
    %c0_127 = arith.constant 0 : index
    %374 = vector.load %arg29[%c0_126, %c0_127] : memref<32x32xf32, #tpu.memory_space<vmem>>, vector<32x32xf32>
    %cst_128 = arith.constant dense<0.000000e+00> : vector<2x32xf32>
    %375 = tpu.matmul %373, %374, %cst_128 {dimension_numbers = #tpu.dot_dimension_numbers<[1], [0], [0], [1], [0, 0, 1, 1], [], []>} : vector<2x32xf32>, vector<32x32xf32>, vector<2x32xf32> -> vector<2x32xf32>
    %c0_129 = arith.constant 0 : index
    %c0_130 = arith.constant 0 : index
    %376 = vector.load %arg30[%c0_129, %c0_130] : memref<1x32xf32, #tpu.memory_space<vmem>>, vector<1x32xf32>
    %377 = vector.broadcast %376 : vector<1x32xf32> to vector<2x32xf32>
    %378 = arith.addf %375, %377 : vector<2x32xf32>
    %c0_131 = arith.constant 0 : index
    %c0_132 = arith.constant 0 : index
    %379 = vector.load %arg27[%c0_131, %c0_132] : memref<32x32xf32, #tpu.memory_space<vmem>>, vector<32x32xf32>
    %cst_133 = arith.constant dense<0.000000e+00> : vector<16x32xf32>
    %380 = tpu.matmul %322, %379, %cst_133 {dimension_numbers = #tpu.dot_dimension_numbers<[1], [0], [0], [1], [0, 0, 1, 1], [], []>} : vector<16x32xf32>, vector<32x32xf32>, vector<16x32xf32> -> vector<16x32xf32>
    %c0_134 = arith.constant 0 : index
    %c0_135 = arith.constant 0 : index
    %381 = vector.load %arg28[%c0_134, %c0_135] : memref<1x32xf32, #tpu.memory_space<vmem>>, vector<1x32xf32>
    %382 = vector.broadcast %381 : vector<1x32xf32> to vector<16x32xf32>
    %383 = arith.addf %380, %382 : vector<16x32xf32>
    %384 = vector.shape_cast %383 : vector<16x32xf32> to vector<2x8x32xf32>
    %385 = vector.shape_cast %378 : vector<2x32xf32> to vector<2x1x32xf32>
    %386 = vector.broadcast %385 : vector<2x1x32xf32> to vector<2x8x32xf32>
    %387 = arith.addf %386, %384 : vector<2x8x32xf32>
    %388 = math.tanh %387 : vector<2x8x32xf32>
    %c0_136 = arith.constant 0 : index
    %c0_137 = arith.constant 0 : index
    %389 = vector.load %arg26[%c0_136, %c0_137] : memref<1x32xf32, #tpu.memory_space<vmem>>, vector<1x32xf32>
    %390 = vector.shape_cast %389 : vector<1x32xf32> to vector<1x1x32xf32>
    %391 = vector.broadcast %390 : vector<1x1x32xf32> to vector<2x8x32xf32>
    %392 = arith.mulf %388, %391 : vector<2x8x32xf32>
    %cst_138 = arith.constant dense<0.000000e+00> : vector<2x8xf32>
    %393 = vector.multi_reduction <add>, %392, %cst_138 [2] : vector<2x8x32xf32> to vector<2x8xf32>
    %c0_139 = arith.constant 0 : index
    %c0_140 = arith.constant 0 : index
    %394 = vector.load %arg35[%c0_139, %c0_140] : memref<2x8xf32, #tpu.memory_space<vmem>>, vector<2x8xf32>
    tpu.vector_store %arg35[%c0_139, %c0_140], %393 {strides = array<i32>} : memref<2x8xf32, #tpu.memory_space<vmem>>, vector<2x8xf32>,
    %c3 = arith.constant 3 : index
    %395 = memref.load %arg31[%c3] : memref<4xf32, #tpu.memory_space<smem>>
    %396 = math.tanh %393 : vector<2x8xf32>
    %cst_141 = arith.constant 1.000000e+01 : f32
    %397 = vector.broadcast %cst_141 : f32 to vector<2x8xf32>
    %398 = arith.mulf %397, %396 : vector<2x8xf32>
    %c0_142 = arith.constant 0 : index
    %c0_143 = arith.constant 0 : index
    %399 = vector.load %arg3[%c0_142, %c0_143] : memref<2x8xf32, #tpu.memory_space<vmem>>, vector<2x8xf32>
    %400 = arith.addf %398, %399 : vector<2x8xf32>
    %c0_144 = arith.constant 0 : index
    %c0_145 = arith.constant 0 : index
    %401 = vector.load %arg4[%c0_144, %c0_145] : memref<2x8xf32, #tpu.memory_space<vmem>>, vector<2x8xf32>
    %402 = vector.broadcast %395 : f32 to vector<2x8xf32>
    %403 = arith.mulf %402, %401 : vector<2x8xf32>
    %404 = arith.addf %400, %403 : vector<2x8xf32>
    %cst_146 = arith.constant dense<0xFF800000> : vector<2xf32>
    %405 = vector.multi_reduction <maximumf>, %404, %cst_146 [1] : vector<2x8xf32> to vector<2xf32>
    %406 = vector.shape_cast %405 : vector<2xf32> to vector<2x1xf32>
    %407 = vector.broadcast %406 : vector<2x1xf32> to vector<2x8xf32>
    %408 = arith.subf %404, %407 : vector<2x8xf32>
    %409 = math.exp %408 : vector<2x8xf32>
    %cst_147 = arith.constant dense<0.000000e+00> : vector<2xf32>
    %410 = vector.multi_reduction <add>, %409, %cst_147 [1] : vector<2x8xf32> to vector<2xf32>
    %411 = vector.shape_cast %410 : vector<2xf32> to vector<2x1xf32>
    %412 = vector.broadcast %411 : vector<2x1xf32> to vector<2x8xf32>
    %413 = arith.divf %409, %412 : vector<2x8xf32>
    %c0_148 = arith.constant 0 : index
    %c0_149 = arith.constant 0 : index
    %414 = vector.load %arg32[%c0_148, %c0_149] : memref<2x8xf32, #tpu.memory_space<vmem>>, vector<2x8xf32>
    tpu.vector_store %arg32[%c0_148, %c0_149], %413 {strides = array<i32>} : memref<2x8xf32, #tpu.memory_space<vmem>>, vector<2x8xf32>,
    %c0_150 = arith.constant 0 : index
    %c0_151 = arith.constant 0 : index
    %415 = vector.load %arg33[%c0_150, %c0_151] : memref<2x32xf32, #tpu.memory_space<vmem>>, vector<2x32xf32>
    tpu.vector_store %arg33[%c0_150, %c0_151], %373 {strides = array<i32>} : memref<2x32xf32, #tpu.memory_space<vmem>>, vector<2x32xf32>,
    %c0_152 = arith.constant 0 : index
    %c0_153 = arith.constant 0 : index
    %416 = vector.load %arg34[%c0_152, %c0_153] : memref<2x32xf32, #tpu.memory_space<vmem>>, vector<2x32xf32>
    tpu.vector_store %arg34[%c0_152, %c0_153], %359 {strides = array<i32>} : memref<2x32xf32, #tpu.memory_space<vmem>>, vector<2x32xf32>,
    return
  }
  func.func @transform_0(%arg0: i32) -> (i32, i32) {
    %c0_i32 = arith.constant 0 : i32
    %c0_i32_0 = arith.constant 0 : i32
    return %arg0, %c0_i32 : i32, i32
  }
  func.func @transform_1(%arg0: i32) -> (i32, i32, i32) {
    %c0_i32 = arith.constant 0 : i32
    %c0_i32_0 = arith.constant 0 : i32
    %c0_i32_1 = arith.constant 0 : i32
    return %arg0, %c0_i32, %c0_i32_0 : i32, i32, i32
  }
  func.func @transform_2(%arg0: i32) -> (i32, i32) {
    %c0_i32 = arith.constant 0 : i32
    %c0_i32_0 = arith.constant 0 : i32
    return %arg0, %c0_i32 : i32, i32
  }
  func.func @transform_3(%arg0: i32) -> (i32, i32) {
    %c0_i32 = arith.constant 0 : i32
    %c0_i32_0 = arith.constant 0 : i32
    return %arg0, %c0_i32 : i32, i32
  }
  func.func @transform_4(%arg0: i32) -> (i32, i32) {
    %c0_i32 = arith.constant 0 : i32
    %c0_i32_0 = arith.constant 0 : i32
    return %arg0, %c0_i32 : i32, i32
  }
  func.func @transform_5(%arg0: i32) -> (i32, i32) {
    %c0_i32 = arith.constant 0 : i32
    %c0_i32_0 = arith.constant 0 : i32
    return %arg0, %c0_i32 : i32, i32
  }
  func.func @transform_6(%arg0: i32) -> (i32, i32) {
    %c0_i32 = arith.constant 0 : i32
    %c0_i32_0 = arith.constant 0 : i32
    %c0_i32_1 = arith.constant 0 : i32
    return %c0_i32, %c0_i32_0 : i32, i32
  }
  func.func @transform_7(%arg0: i32) -> (i32, i32) {
    %c0_i32 = arith.constant 0 : i32
    %c0_i32_0 = arith.constant 0 : i32
    %c0_i32_1 = arith.constant 0 : i32
    return %c0_i32, %c0_i32_0 : i32, i32
  }
  func.func @transform_8(%arg0: i32) -> (i32, i32) {
    %c0_i32 = arith.constant 0 : i32
    %c0_i32_0 = arith.constant 0 : i32
    %c0_i32_1 = arith.constant 0 : i32
    return %c0_i32, %c0_i32_0 : i32, i32
  }
  func.func @transform_9(%arg0: i32) -> (i32, i32) {
    %c0_i32 = arith.constant 0 : i32
    %c0_i32_0 = arith.constant 0 : i32
    %c0_i32_1 = arith.constant 0 : i32
    return %c0_i32, %c0_i32_0 : i32, i32
  }
  func.func @transform_10(%arg0: i32) -> (i32, i32) {
    %c0_i32 = arith.constant 0 : i32
    %c0_i32_0 = arith.constant 0 : i32
    %c0_i32_1 = arith.constant 0 : i32
    return %c0_i32, %c0_i32_0 : i32, i32
  }
  func.func @transform_11(%arg0: i32) -> (i32, i32) {
    %c0_i32 = arith.constant 0 : i32
    %c0_i32_0 = arith.constant 0 : i32
    %c0_i32_1 = arith.constant 0 : i32
    return %c0_i32, %c0_i32_0 : i32, i32
  }
  func.func @transform_12(%arg0: i32) -> (i32, i32) {
    %c0_i32 = arith.constant 0 : i32
    %c0_i32_0 = arith.constant 0 : i32
    %c0_i32_1 = arith.constant 0 : i32
    return %c0_i32, %c0_i32_0 : i32, i32
  }
  func.func @transform_13(%arg0: i32) -> (i32, i32) {
    %c0_i32 = arith.constant 0 : i32
    %c0_i32_0 = arith.constant 0 : i32
    %c0_i32_1 = arith.constant 0 : i32
    return %c0_i32, %c0_i32_0 : i32, i32
  }
  func.func @transform_14(%arg0: i32) -> (i32, i32) {
    %c0_i32 = arith.constant 0 : i32
    %c0_i32_0 = arith.constant 0 : i32
    %c0_i32_1 = arith.constant 0 : i32
    return %c0_i32, %c0_i32_0 : i32, i32
  }
  func.func @transform_15(%arg0: i32) -> (i32, i32, i32) {
    %c0_i32 = arith.constant 0 : i32
    %c0_i32_0 = arith.constant 0 : i32
    %c0_i32_1 = arith.constant 0 : i32
    %c0_i32_2 = arith.constant 0 : i32
    return %c0_i32, %c0_i32_0, %c0_i32_1 : i32, i32, i32
  }
  func.func @transform_16(%arg0: i32) -> (i32, i32, i32) {
    %c0_i32 = arith.constant 0 : i32
    %c0_i32_0 = arith.constant 0 : i32
    %c0_i32_1 = arith.constant 0 : i32
    %c0_i32_2 = arith.constant 0 : i32
    return %c0_i32, %c0_i32_0, %c0_i32_1 : i32, i32, i32
  }
  func.func @transform_17(%arg0: i32) -> (i32, i32) {
    %c0_i32 = arith.constant 0 : i32
    %c0_i32_0 = arith.constant 0 : i32
    %c0_i32_1 = arith.constant 0 : i32
    return %c0_i32, %c0_i32_0 : i32, i32
  }
  func.func @transform_18(%arg0: i32) -> (i32, i32) {
    %c0_i32 = arith.constant 0 : i32
    %c0_i32_0 = arith.constant 0 : i32
    %c0_i32_1 = arith.constant 0 : i32
    return %c0_i32, %c0_i32_0 : i32, i32
  }
  func.func @transform_19(%arg0: i32) -> (i32, i32) {
    %c0_i32 = arith.constant 0 : i32
    %c0_i32_0 = arith.constant 0 : i32
    %c0_i32_1 = arith.constant 0 : i32
    return %c0_i32, %c0_i32_0 : i32, i32
  }
  func.func @transform_20(%arg0: i32) -> (i32, i32) {
    %c0_i32 = arith.constant 0 : i32
    %c0_i32_0 = arith.constant 0 : i32
    %c0_i32_1 = arith.constant 0 : i32
    return %c0_i32, %c0_i32_0 : i32, i32
  }
  func.func @transform_21(%arg0: i32) -> (i32, i32) {
    %c0_i32 = arith.constant 0 : i32
    %c0_i32_0 = arith.constant 0 : i32
    %c0_i32_1 = arith.constant 0 : i32
    return %c0_i32, %c0_i32_0 : i32, i32
  }
  func.func @transform_22(%arg0: i32) -> (i32, i32) {
    %c0_i32 = arith.constant 0 : i32
    %c0_i32_0 = arith.constant 0 : i32
    %c0_i32_1 = arith.constant 0 : i32
    return %c0_i32, %c0_i32_0 : i32, i32
  }
  func.func @transform_23(%arg0: i32) -> (i32, i32) {
    %c0_i32 = arith.constant 0 : i32
    %c0_i32_0 = arith.constant 0 : i32
    %c0_i32_1 = arith.constant 0 : i32
    return %c0_i32, %c0_i32_0 : i32, i32
  }
  func.func @transform_24(%arg0: i32) -> (i32, i32) {
    %c0_i32 = arith.constant 0 : i32
    %c0_i32_0 = arith.constant 0 : i32
    %c0_i32_1 = arith.constant 0 : i32
    return %c0_i32, %c0_i32_0 : i32, i32
  }
  func.func @transform_25(%arg0: i32) -> (i32, i32) {
    %c0_i32 = arith.constant 0 : i32
    %c0_i32_0 = arith.constant 0 : i32
    %c0_i32_1 = arith.constant 0 : i32
    return %c0_i32, %c0_i32_0 : i32, i32
  }
  func.func @transform_26(%arg0: i32) -> (i32, i32) {
    %c0_i32 = arith.constant 0 : i32
    %c0_i32_0 = arith.constant 0 : i32
    %c0_i32_1 = arith.constant 0 : i32
    return %c0_i32, %c0_i32_0 : i32, i32
  }
  func.func @transform_27(%arg0: i32) -> (i32, i32) {
    %c0_i32 = arith.constant 0 : i32
    %c0_i32_0 = arith.constant 0 : i32
    %c0_i32_1 = arith.constant 0 : i32
    return %c0_i32, %c0_i32_0 : i32, i32
  }
  func.func @transform_28(%arg0: i32) -> (i32, i32) {
    %c0_i32 = arith.constant 0 : i32
    %c0_i32_0 = arith.constant 0 : i32
    %c0_i32_1 = arith.constant 0 : i32
    return %c0_i32, %c0_i32_0 : i32, i32
  }
  func.func @transform_29(%arg0: i32) -> (i32, i32) {
    %c0_i32 = arith.constant 0 : i32
    %c0_i32_0 = arith.constant 0 : i32
    %c0_i32_1 = arith.constant 0 : i32
    return %c0_i32, %c0_i32_0 : i32, i32
  }
  func.func @transform_30(%arg0: i32) -> i32 {
    %c0_i32 = arith.constant 0 : i32
    %c0_i32_0 = arith.constant 0 : i32
    return %c0_i32 : i32
  }
  func.func @transform_31(%arg0: i32) -> (i32, i32) {
    %c0_i32 = arith.constant 0 : i32
    %c0_i32_0 = arith.constant 0 : i32
    return %arg0, %c0_i32 : i32, i32
  }
  func.func @transform_32(%arg0: i32) -> (i32, i32) {
    %c0_i32 = arith.constant 0 : i32
    %c0_i32_0 = arith.constant 0 : i32
    return %arg0, %c0_i32 : i32, i32
  }
  func.func @transform_33(%arg0: i32) -> (i32, i32) {
    %c0_i32 = arith.constant 0 : i32
    %c0_i32_0 = arith.constant 0 : i32
    return %arg0, %c0_i32 : i32, i32
  }
  func.func @transform_34(%arg0: i32) -> (i32, i32) {
    %c0_i32 = arith.constant 0 : i32
    %c0_i32_0 = arith.constant 0 : i32
    return %arg0, %c0_i32 : i32, i32
  }
}

</mosaic_0001>

<bundles_post_ra>
// kernel: tpu_custom_call.1
= control target key start
LH: loop header
LB: loop body
LE: loop exit
PB: predicated region body
PF: predicated region fallthrough
CT: control target
= control target key end

     0   :  { %s4356_s6 = smov 1   ;;  %s4357_s10 = smov 2   ;;  %s5019_s0 = inlined_call_operand.smem [shape: u32[35], index: -1, kind: input, shape index: {}] }
   0x1   :  { %s4447_s5 = sld [smem:[%s5019_s0]]   ;;  %s4358_s14 = smov 3  }
   0x2   :  { %s4452_s9 = sld [smem:[%s5019_s0 + %s4356_s6]]   ;;  %s4359_s18 = smov 4  }
   0x3   :  { %s4457_s13 = sld [smem:[%s5019_s0 + %s4357_s10]]   ;;  %s4360_s22 = smov 5  }
   0x4   :  { %s4462_s17 = sld [smem:[%s5019_s0 + %s4358_s14]]   ;;  %s4361_s26 = smov 6  }
   0x5   :  { %s4467_s21 = sld [smem:[%s5019_s0 + %s4359_s18]]   ;;  %s4362_s30 = smov 7  }
   0x6   :  { %s4472_s25 = sld [smem:[%s5019_s0 + %s4360_s22]]   ;;  %s4363_s4 = smov 8  }
   0x7   :  { %5037 = sst [smem:[#allocation78_spill]] %s4447_s5  ;;  %s4364_s10 = smov 9  }
   0x8   :  { %s4477_s29 = sld [smem:[%s5019_s0 + %s4361_s26]]   ;;  %s4365_s15 = smov 10  }
   0x9   :  { %5038 = sst [smem:[#allocation79_spill]] %s4457_s13  ;;  %s4366_s20 = smov 11  }
   0xa   :  { %s4482_s3 = sld [smem:[%s5019_s0 + %s4362_s30]]   ;;  %s4367_s26 = smov 12  }
   0xb   :  { %5039 = sst [smem:[#allocation80_spill]] %s4467_s21  ;;  %s4368_s1 = smov 13  }
   0xc   :  { %s4487_s8 = sld [smem:[%s5019_s0 + %s4363_s4]]   ;;  %s4369_s7 = smov 14  }
   0xd   :  { %s4492_s14 = sld [smem:[%s5019_s0 + %s4364_s10]]   ;;  %s4371_s22 = smov 16  }
   0xe   :  { %5040 = sst [smem:[#allocation81_spill]] %s4477_s29  ;;  %s4372_s28 = smov 17  }
   0xf   :  { %s4497_s19 = sld [smem:[%s5019_s0 + %s4365_s15]]   ;;  %s4370_s15 = smov 15  }
  0x10   :  { %s4502_s24 = sld [smem:[%s5019_s0 + %s4366_s20]]  }
  0x11   :  { %s4507_s30 = sld [smem:[%s5019_s0 + %s4367_s26]]  }
  0x12   :  { %5041 = sst [smem:[#allocation82_spill]] %s4487_s8 }
  0x13   :  { %s4512_s6 = sld [smem:[%s5019_s0 + %s4368_s1]]  }
  0x14   :  { %s4517_s12 = sld [smem:[%s5019_s0 + %s4369_s7]]   ;;  %s4373_s7 = smov 18  }
  0x15   :  { %5042 = sst [smem:[#allocation83_spill]] %s4497_s19 }
  0x16   :  { %s4522_s20 = sld [smem:[%s5019_s0 + %s4370_s15]]   ;;  %s4374_s15 = smov 19  }
  0x17   :  { %5043 = sst [smem:[#allocation84_spill]] %s4507_s30 }
  0x18   :  { %s4527_s27 = sld [smem:[%s5019_s0 + %s4371_s22]]   ;;  %s4375_s22 = smov 20  }
  0x19   :  { %s4532_s4 = sld [smem:[%s5019_s0 + %s4372_s28]]   ;;  %s4376_s28 = smov 21  }
  0x1a   :  { %5044 = sst [smem:[#allocation85_spill]] %s4517_s12 }
  0x1b   :  { %s4537_s12 = sld [smem:[%s5019_s0 + %s4373_s7]]   ;;  %s4377_s7 = smov 22  }
  0x1c   :  { %s4542_s30 = sld [smem:[%s5019_s0 + %s4374_s15]]   ;;  %s4378_s15 = smov 23  }
  0x1d   :  { %s4552_s19 = sld [smem:[%s5019_s0 + %s4376_s28]]   ;;  %s4380_s28 = smov 25  }
  0x1e   :  { %5045 = sst [smem:[#allocation86_spill]] %s4527_s27 }
  0x1f   :  { %s4547_s27 = sld [smem:[%s5019_s0 + %s4375_s22]]   ;;  %s4379_s22 = smov 24  }
  0x20   :  { %s4562_s8 = sld [smem:[%s5019_s0 + %s4378_s15]]   ;;  %s4382_s15 = smov 27  }
  0x21   :  { %5046 = sst [smem:[#allocation87_spill]] %s4537_s12 }
  0x22   :  { %s4557_s12 = sld [smem:[%s5019_s0 + %s4377_s7]]   ;;  %s4381_s7 = smov 26  }
  0x23   :  { %s4572_s29 = sld [smem:[%s5019_s0 + %s4380_s28]]   ;;  %s4384_s28 = smov 29  }
  0x24   :  { %s4582_s21 = sld [smem:[%s5019_s0 + %s4382_s15]]   ;;  %s4386_s15 = smov 31  }
  0x25   :  { %5047 = sst [smem:[#allocation88_spill]] %s4547_s27 }
  0x26   :  { %s4567_s27 = sld [smem:[%s5019_s0 + %s4379_s22]]   ;;  %s4383_s22 = smov 28  }
  0x27   :  { %s4592_s13 = sld [smem:[%s5019_s0 + %s4384_s28]]   ;;  %s4388_s28 = smov 33  }
  0x28   :  { %5048 = sst [smem:[#allocation89_spill]] %s4557_s12 }
  0x29   :  { %s4577_s12 = sld [smem:[%s5019_s0 + %s4381_s7]]   ;;  %s4385_s7 = smov 30  }
  0x2a   :  { %s4602_s5 = sld [smem:[%s5019_s0 + %s4386_s15]]  }
  0x2c   :  { %5049 = sst [smem:[#allocation90_spill]] %s4567_s27 }
  0x2d   :  { %s4587_s27 = sld [smem:[%s5019_s0 + %s4383_s22]]   ;;  %s4387_s22 = smov 32  }
  0x2e   :  { %5052 = sst [smem:[#allocation93_spill]] %s4592_s13 }
  0x2f   :  { %5050 = sst [smem:[#allocation91_spill]] %s4577_s12 }
  0x30   :  { %s4597_s12 = sld [smem:[%s5019_s0 + %s4385_s7]]   ;;  %s4389_s7 = smov 34  }
  0x31   :  { %s4612_s13 = sld [smem:[%s5019_s0 + %s4388_s28]]  }
  0x33   :  { %5051 = sst [smem:[#allocation92_spill]] %s4587_s27 }
  0x34   :  { %s4607_s27 = sld [smem:[%s5019_s0 + %s4387_s22]]  }
  0x36   :  { %5053 = sst [smem:[#allocation94_spill]] %s4597_s12 }
  0x37   :  { %s4617_s12 = sld [smem:[%s5019_s0 + %s4389_s7]]  }
  0x38   :  { %75 = vsyncpa [#allocation4], 0 }
  0x39   :  { %76 = vsyncpa [#allocation8], 0 }
  0x3a   :  { %77 = vsyncpa [#allocation11], 0 }
  0x3b   :  { %78 = vsyncpa [#allocation14], 0 }
  0x3c   :  { %79 = vsyncpa [#allocation17], 0 }
  0x3d   :  { %80 = vsyncpa [#allocation20], 0 }
  0x3e   :  { %81 = vsyncpa [#allocation23], 0 }
  0x3f   :  { %82 = vsyncpa [#allocation26], 0 }
  0x40   :  { %83 = vsyncpa [#allocation29], 0 }
  0x41   :  { %84 = vsyncpa [#allocation32], 0 }
  0x42   :  { %85 = vsyncpa [#allocation35], 0 }
  0x43   :  { %86 = vsyncpa [#allocation38], 0 }
  0x44   :  { %87 = vsyncpa [#allocation41], 0 }
  0x45   :  { %88 = vsyncpa [#allocation44], 0 }
  0x46   :  { %89 = vsyncpa [#allocation47], 0 }
  0x47   :  { %90 = vsyncpa [#allocation50], 0 }
  0x48   :  { %91 = vsyncpa [#allocation6], 0 }
  0x49   :  { %92 = vsyncpa [#allocation5], 0 }
  0x4a   :  { %93 = vsyncpa [#allocation54], 0 }
  0x4b   :  { %94 = vsyncpa [#allocation57], 0  ;;  %s4390_s0 = smov [#allocation7]   ;;  %s3558_s16 = scalar_lea.hbm %s4452_s9, 256 }
  0x4c   :  { %s110_s15 = sshll.u32 %s4390_s0, 4  ;;  %p3559_p0 = scmp.ne.s32.totalorder %s4452_s9, %s3558_s16  ;;  %s111_s15 = int_to_ptr.vmem [resolvable:$true] %s110_s15 }
  0x4d   :  { %p3562_p1 = scmp.lt.u32.totalorder %s3558_s16, %s4452_s9 }
  0x4f   :  { %p3564_p2 = pnand %p3562_p1, %p3559_p0 }
  0x51   :  { %3567 = shalt.err (!%p3564_p2)
}
  0x52   :  { %s3568_s18 = scalar_lea.vmem %s111_s15, 256  ;;  %p3573_p4 = scmp.lt.s32.totalorder %s111_s15, %s111_s15 }
  0x53   :  { %p3569_p3 = scmp.ne.s32.totalorder %s111_s15, %s3568_s18  ;;  %p3574_p5 = scmp.lt.s32.totalorder %s3568_s18, %s3568_s18 }
  0x55   :  { %p3575_p6 = por %p3574_p5, %p3573_p4 }
  0x57   :  { %p3576_p7 = pnand %p3575_p6, %p3569_p3 }
  0x59   :  { %3579 = shalt.err (!%p3576_p7)
}
  0x5a   :  { %s4391_s22 = smov 128   ;;  %s4392_s23 = smov 8  }
  0x5b   :  { %116 = dma.hbm_to_vmem [thread:$0]  %s4452_s9, 256, %s111_s15, [#allocation8], %s4391_s22, %s4391_s22, %s4392_s23  }
  0x5c   :  { %s4393_s26 = smov [#allocation10]   ;;  %s4394_s1 = smov [#allocation13]  }
  0x5d   :  { %s133_s28 = sshll.u32 %s4393_s26, 4  ;;  %s153_s2 = sshll.u32 %s4394_s1, 4  ;;  %s134_s28 = int_to_ptr.vmem [resolvable:$true] %s133_s28  ;;  %s154_s2 = int_to_ptr.vmem [resolvable:$true] %s153_s2 }
  0x5e   :  { %s3580_s7 = scalar_lea.hbm %s4462_s17, 32 }
  0x5f   :  { %p3581_p8 = scmp.ne.s32.totalorder %s4462_s17, %s3580_s7  ;;  %p3584_p9 = scmp.lt.u32.totalorder %s3580_s7, %s4462_s17 }
  0x61   :  { %p3586_p10 = pnand %p3584_p9, %p3581_p8 }
  0x63   :  { %3589 = shalt.err (!%p3586_p10)
}
  0x64   :  { %s3590_s10 = scalar_lea.vmem %s134_s28, 32  ;;  %p3595_p12 = scmp.lt.s32.totalorder %s134_s28, %s134_s28 }
  0x65   :  { %p3591_p11 = scmp.ne.s32.totalorder %s134_s28, %s3590_s10  ;;  %p3596_p13 = scmp.lt.s32.totalorder %s3590_s10, %s3590_s10 }
  0x67   :  { %p3597_p0 = por %p3596_p13, %p3595_p12 }
  0x69   :  { %p3598_p1 = pnand %p3597_p0, %p3591_p11 }
  0x6b   :  { %3601 = shalt.err (!%p3598_p1)
}
  0x6c   :  { %136 = dma.hbm_to_vmem [thread:$0]  %s4462_s17, 32, %s134_s28, [#allocation11]  }
  0x6d   :  { %s3602_s9 = scalar_lea.hbm %s4472_s25, 32 }
  0x6e   :  { %p3603_p2 = scmp.ne.s32.totalorder %s4472_s25, %s3602_s9  ;;  %p3606_p3 = scmp.lt.u32.totalorder %s3602_s9, %s4472_s25 }
  0x70   :  { %p3608_p4 = pnand %p3606_p3, %p3603_p2 }
  0x72   :  { %3611 = shalt.err (!%p3608_p4)
}
  0x73   :  { %s3612_s11 = scalar_lea.vmem %s154_s2, 32  ;;  %p3617_p6 = scmp.lt.s32.totalorder %s154_s2, %s154_s2 }
  0x74   :  { %p3613_p5 = scmp.ne.s32.totalorder %s154_s2, %s3612_s11  ;;  %p3618_p7 = scmp.lt.s32.totalorder %s3612_s11, %s3612_s11 }
  0x76   :  { %p3619_p8 = por %p3618_p7, %p3617_p6 }
  0x78   :  { %p3620_p9 = pnand %p3619_p8, %p3613_p5 }
  0x7a   :  { %3623 = shalt.err (!%p3620_p9)
}
  0x7b   :  { %156 = dma.hbm_to_vmem [thread:$0]  %s4472_s25, 32, %s154_s2, [#allocation14]  }
  0x7c   :  { %s4395_s0 = smov [#allocation16]   ;;  %s4396_s15 = smov [#allocation19]  }
  0x7d   :  { %s173_s17 = sshll.u32 %s4395_s0, 4  ;;  %s193_s16 = sshll.u32 %s4396_s15, 4  ;;  %s174_s17 = int_to_ptr.vmem [resolvable:$true] %s173_s17  ;;  %s194_s16 = int_to_ptr.vmem [resolvable:$true] %s193_s16 }
  0x7e   :  { %s3624_s18 = scalar_lea.hbm %s4482_s3, 16 }
  0x7f   :  { %p3625_p10 = scmp.ne.s32.totalorder %s4482_s3, %s3624_s18  ;;  %p3628_p11 = scmp.lt.u32.totalorder %s3624_s18, %s4482_s3 }
  0x81   :  { %p3630_p12 = pnand %p3628_p11, %p3625_p10 }
  0x83   :  { %3633 = shalt.err (!%p3630_p12)
}
  0x84   :  { %s3634_s26 = scalar_lea.vmem %s174_s17, 16  ;;  %s3638_s28 = scalar_lea.vmem %s174_s17, 32 }
  0x85   :  { %p3635_p13 = scmp.ne.s32.totalorder %s174_s17, %s3634_s26  ;;  %p3639_p0 = scmp.lt.s32.totalorder %s174_s17, %s174_s17 }
  0x86   :  { %p3640_p1 = scmp.lt.s32.totalorder %s3638_s28, %s3634_s26 }
  0x88   :  { %p3641_p2 = por %p3640_p1, %p3639_p0 }
  0x8a   :  { %p3642_p3 = pnand %p3641_p2, %p3635_p13 }
  0x8c   :  { %3645 = shalt.err (!%p3642_p3)
}
  0x8d   :  { %176 = dma.hbm_to_vmem [thread:$0]  %s4482_s3, 16, %s174_s17, [#allocation17]  }
  0x8e   :  { %s3646_s25 = scalar_lea.hbm %s4492_s14, 16 }
  0x8f   :  { %p3647_p4 = scmp.ne.s32.totalorder %s4492_s14, %s3646_s25  ;;  %p3650_p5 = scmp.lt.u32.totalorder %s3646_s25, %s4492_s14 }
  0x91   :  { %p3652_p6 = pnand %p3650_p5, %p3647_p4 }
  0x93   :  { %3655 = shalt.err (!%p3652_p6)
}
  0x94   :  { %s3656_s1 = scalar_lea.vmem %s194_s16, 16  ;;  %s3660_s2 = scalar_lea.vmem %s194_s16, 32 }
  0x95   :  { %p3657_p7 = scmp.ne.s32.totalorder %s194_s16, %s3656_s1  ;;  %p3661_p8 = scmp.lt.s32.totalorder %s194_s16, %s194_s16 }
  0x96   :  { %p3662_p9 = scmp.lt.s32.totalorder %s3660_s2, %s3656_s1 }
  0x98   :  { %p3663_p10 = por %p3662_p9, %p3661_p8 }
  0x9a   :  { %p3664_p11 = pnand %p3663_p10, %p3657_p7 }
  0x9c   :  { %3667 = shalt.err (!%p3664_p11)
}
  0x9d   :  { %196 = dma.hbm_to_vmem [thread:$0]  %s4492_s14, 16, %s194_s16, [#allocation20]  }
  0x9e   :  { %s4397_s3 = smov [#allocation22]   ;;  %s4398_s10 = smov [#allocation25]  }
  0x9f   :  { %s213_s7 = sshll.u32 %s4397_s3, 4  ;;  %s235_s9 = sshll.u32 %s4398_s10, 4  ;;  %s214_s7 = int_to_ptr.vmem [resolvable:$true] %s213_s7  ;;  %s236_s9 = int_to_ptr.vmem [resolvable:$true] %s235_s9 }
  0xa0   :  { %s3668_s11 = scalar_lea.hbm %s4502_s24, 16 }
  0xa1   :  { %p3669_p12 = scmp.ne.s32.totalorder %s4502_s24, %s3668_s11  ;;  %p3672_p13 = scmp.lt.u32.totalorder %s3668_s11, %s4502_s24 }
  0xa3   :  { %p3674_p0 = pnand %p3672_p13, %p3669_p12 }
  0xa5   :  { %3677 = shalt.err (!%p3674_p0)
}
  0xa6   :  { %s3678_s0 = scalar_lea.vmem %s214_s7, 16  ;;  %s3682_s17 = scalar_lea.vmem %s214_s7, 32 }
  0xa7   :  { %p3679_p1 = scmp.ne.s32.totalorder %s214_s7, %s3678_s0  ;;  %p3683_p2 = scmp.lt.s32.totalorder %s214_s7, %s214_s7 }
  0xa8   :  { %p3684_p3 = scmp.lt.s32.totalorder %s3682_s17, %s3678_s0 }
  0xaa   :  { %p3685_p4 = por %p3684_p3, %p3683_p2 }
  0xac   :  { %p3686_p5 = pnand %p3685_p4, %p3679_p1 }
  0xae   :  { %3689 = shalt.err (!%p3686_p5)
}
  0xaf   :  { %216 = dma.hbm_to_vmem [thread:$0]  %s4502_s24, 16, %s214_s7, [#allocation23]  }
  0xb0   :  { %s3690_s14 = scalar_lea.hbm %s4512_s6, 16 }
  0xb1   :  { %p3691_p6 = scmp.ne.s32.totalorder %s4512_s6, %s3690_s14  ;;  %p3694_p7 = scmp.lt.u32.totalorder %s3690_s14, %s4512_s6 }
  0xb3   :  { %p3696_p8 = pnand %p3694_p7, %p3691_p6 }
  0xb5   :  { %3699 = shalt.err (!%p3696_p8)
}
  0xb6   :  { %s3700_s15 = scalar_lea.vmem %s236_s9, 16  ;;  %s3704_s16 = scalar_lea.vmem %s236_s9, 32 }
  0xb7   :  { %p3701_p9 = scmp.ne.s32.totalorder %s236_s9, %s3700_s15  ;;  %p3705_p10 = scmp.lt.s32.totalorder %s236_s9, %s236_s9 }
  0xb8   :  { %p3706_p11 = scmp.lt.s32.totalorder %s3704_s16, %s3700_s15 }
  0xba   :  { %p3707_p12 = por %p3706_p11, %p3705_p10 }
  0xbc   :  { %p3708_p13 = pnand %p3707_p12, %p3701_p9 }
  0xbe   :  { %3711 = shalt.err (!%p3708_p13)
}
  0xbf   :  { %238 = dma.hbm_to_vmem [thread:$0]  %s4512_s6, 16, %s236_s9, [#allocation26]  }
  0xc0   :  { %s4399_s24 = smov [#allocation28]   ;;  %s4400_s26 = smov [#allocation31]  }
  0xc1   :  { %s254_s18 = sshll.u32 %s4399_s24, 4  ;;  %s278_s28 = sshll.u32 %s4400_s26, 4  ;;  %s255_s18 = int_to_ptr.vmem [resolvable:$true] %s254_s18  ;;  %s279_s28 = int_to_ptr.vmem [resolvable:$true] %s278_s28 }
  0xc2   :  { %s3712_s25 = scalar_lea.hbm %s4522_s20, 1536 }
  0xc3   :  { %p3713_p0 = scmp.ne.s32.totalorder %s4522_s20, %s3712_s25  ;;  %p3716_p1 = scmp.lt.u32.totalorder %s3712_s25, %s4522_s20 }
  0xc5   :  { %p3718_p2 = pnand %p3716_p1, %p3713_p0 }
  0xc7   :  { %3721 = shalt.err (!%p3718_p2)
}
  0xc8   :  { %s3722_s1 = scalar_lea.vmem %s255_s18, 1536  ;;  %p3727_p4 = scmp.lt.s32.totalorder %s255_s18, %s255_s18 }
  0xc9   :  { %p3723_p3 = scmp.ne.s32.totalorder %s255_s18, %s3722_s1  ;;  %p3728_p5 = scmp.lt.s32.totalorder %s3722_s1, %s3722_s1 }
  0xcb   :  { %p3729_p6 = por %p3728_p5, %p3727_p4 }
  0xcd   :  { %p3730_p7 = pnand %p3729_p6, %p3723_p3 }
  0xcf   :  { %3733 = shalt.err (!%p3730_p7)
}
  0xd0   :  { %260 = dma.hbm_to_vmem [thread:$0]  %s4522_s20, 1536, %s255_s18, [#allocation29], %s4391_s22, %s4391_s22, %s4392_s23  }
  0xd1   :  { %s3734_s6 = scalar_lea.hbm %s4532_s4, 512 }
  0xd2   :  { %p3735_p8 = scmp.ne.s32.totalorder %s4532_s4, %s3734_s6  ;;  %p3738_p9 = scmp.lt.u32.totalorder %s3734_s6, %s4532_s4 }
  0xd4   :  { %p3740_p10 = pnand %p3738_p9, %p3735_p8 }
  0xd6   :  { %3743 = shalt.err (!%p3740_p10)
}
  0xd7   :  { %s3744_s2 = scalar_lea.vmem %s279_s28, 512  ;;  %p3749_p12 = scmp.lt.s32.totalorder %s279_s28, %s279_s28 }
  0xd8   :  { %p3745_p11 = scmp.ne.s32.totalorder %s279_s28, %s3744_s2  ;;  %p3750_p13 = scmp.lt.s32.totalorder %s3744_s2, %s3744_s2 }
  0xda   :  { %p3751_p0 = por %p3750_p13, %p3749_p12 }
  0xdc   :  { %p3752_p1 = pnand %p3751_p0, %p3745_p11 }
  0xde   :  { %3755 = shalt.err (!%p3752_p1)
}
  0xdf   :  { %284 = dma.hbm_to_vmem [thread:$0]  %s4532_s4, 512, %s279_s28, [#allocation32], %s4391_s22, %s4391_s22, %s4392_s23  }
  0xe0   :  { %s4401_s20 = smov [#allocation34]   ;;  %s4402_s7 = smov [#allocation37]  }
  0xe1   :  { %s300_s3 = sshll.u32 %s4401_s20, 4  ;;  %s322_s10 = sshll.u32 %s4402_s7, 4  ;;  %s301_s3 = int_to_ptr.vmem [resolvable:$true] %s300_s3  ;;  %s323_s10 = int_to_ptr.vmem [resolvable:$true] %s322_s10 }
  0xe2   :  { %s3756_s9 = scalar_lea.hbm %s4542_s30, 512 }
  0xe3   :  { %p3757_p2 = scmp.ne.s32.totalorder %s4542_s30, %s3756_s9  ;;  %p3760_p3 = scmp.lt.u32.totalorder %s3756_s9, %s4542_s30 }
  0xe5   :  { %p3762_p4 = pnand %p3760_p3, %p3757_p2 }
  0xe7   :  { %3765 = shalt.err (!%p3762_p4)
}
  0xe8   :  { %s3766_s11 = scalar_lea.vmem %s301_s3, 512  ;;  %p3771_p6 = scmp.lt.s32.totalorder %s301_s3, %s301_s3 }
  0xe9   :  { %p3767_p5 = scmp.ne.s32.totalorder %s301_s3, %s3766_s11  ;;  %p3772_p7 = scmp.lt.s32.totalorder %s3766_s11, %s3766_s11 }
  0xeb   :  { %p3773_p8 = por %p3772_p7, %p3771_p6 }
  0xed   :  { %p3774_p9 = pnand %p3773_p8, %p3767_p5 }
  0xef   :  { %3777 = shalt.err (!%p3774_p9)
}
  0xf0   :  { %306 = dma.hbm_to_vmem [thread:$0]  %s4542_s30, 512, %s301_s3, [#allocation35], %s4391_s22, %s4391_s22, %s4392_s23  }
  0xf1   :  { %s3778_s4 = scalar_lea.hbm %s4552_s19, 512 }
  0xf2   :  { %p3779_p10 = scmp.ne.s32.totalorder %s4552_s19, %s3778_s4  ;;  %p3782_p11 = scmp.lt.u32.totalorder %s3778_s4, %s4552_s19 }
  0xf4   :  { %p3784_p12 = pnand %p3782_p11, %p3779_p10 }
  0xf6   :  { %3787 = shalt.err (!%p3784_p12)
}
  0xf7   :  { %s3788_s0 = scalar_lea.vmem %s323_s10, 512  ;;  %p3793_p0 = scmp.lt.s32.totalorder %s323_s10, %s323_s10 }
  0xf8   :  { %p3789_p13 = scmp.ne.s32.totalorder %s323_s10, %s3788_s0  ;;  %p3794_p1 = scmp.lt.s32.totalorder %s3788_s0, %s3788_s0 }
  0xfa   :  { %p3795_p2 = por %p3794_p1, %p3793_p0 }
  0xfc   :  { %p3796_p3 = pnand %p3795_p2, %p3789_p13 }
  0xfe   :  { %3799 = shalt.err (!%p3796_p3)
}
  0xff   :  { %328 = dma.hbm_to_vmem [thread:$0]  %s4552_s19, 512, %s323_s10, [#allocation38], %s4391_s22, %s4391_s22, %s4392_s23  }
 0x100   :  { %s4403_s30 = smov [#allocation40]   ;;  %s4404_s14 = smov [#allocation43]  }
 0x101   :  { %s344_s17 = sshll.u32 %s4403_s30, 4  ;;  %s367_s15 = sshll.u32 %s4404_s14, 4  ;;  %s345_s17 = int_to_ptr.vmem [resolvable:$true] %s344_s17  ;;  %s368_s15 = int_to_ptr.vmem [resolvable:$true] %s367_s15 }
 0x102   :  { %s3800_s16 = scalar_lea.hbm %s4562_s8, 512 }
 0x103   :  { %p3801_p4 = scmp.ne.s32.totalorder %s4562_s8, %s3800_s16  ;;  %p3804_p5 = scmp.lt.u32.totalorder %s3800_s16, %s4562_s8 }
 0x105   :  { %p3806_p6 = pnand %p3804_p5, %p3801_p4 }
 0x107   :  { %3809 = shalt.err (!%p3806_p6)
}
 0x108   :  { %s3810_s24 = scalar_lea.vmem %s345_s17, 512  ;;  %p3815_p8 = scmp.lt.s32.totalorder %s345_s17, %s345_s17 }
 0x109   :  { %p3811_p7 = scmp.ne.s32.totalorder %s345_s17, %s3810_s24  ;;  %p3816_p9 = scmp.lt.s32.totalorder %s3810_s24, %s3810_s24 }
 0x10b   :  { %p3817_p10 = por %p3816_p9, %p3815_p8 }
 0x10d   :  { %p3818_p11 = pnand %p3817_p10, %p3811_p7 }
 0x10f   :  { %3821 = shalt.err (!%p3818_p11)
}
 0x110   :  { %350 = dma.hbm_to_vmem [thread:$0]  %s4562_s8, 512, %s345_s17, [#allocation41], %s4391_s22, %s4391_s22, %s4392_s23  }
 0x111   :  { %s3822_s19 = scalar_lea.hbm %s4572_s29, 16 }
 0x112   :  { %p3823_p12 = scmp.ne.s32.totalorder %s4572_s29, %s3822_s19  ;;  %p3826_p13 = scmp.lt.u32.totalorder %s3822_s19, %s4572_s29 }
 0x114   :  { %p3828_p0 = pnand %p3826_p13, %p3823_p12 }
 0x116   :  { %3831 = shalt.err (!%p3828_p0)
}
 0x117   :  { %s3832_s18 = scalar_lea.vmem %s368_s15, 16  ;;  %s3836_s26 = scalar_lea.vmem %s368_s15, 32 }
 0x118   :  { %p3833_p1 = scmp.ne.s32.totalorder %s368_s15, %s3832_s18  ;;  %p3837_p2 = scmp.lt.s32.totalorder %s368_s15, %s368_s15 }
 0x119   :  { %p3838_p3 = scmp.lt.s32.totalorder %s3836_s26, %s3832_s18 }
 0x11b   :  { %p3839_p4 = por %p3838_p3, %p3837_p2 }
 0x11d   :  { %p3840_p5 = pnand %p3839_p4, %p3833_p1 }
 0x11f   :  { %3843 = shalt.err (!%p3840_p5)
}
 0x120   :  { %370 = dma.hbm_to_vmem [thread:$0]  %s4572_s29, 16, %s368_s15, [#allocation44]  }
 0x121   :  { %s4405_s8 = smov [#allocation46]   ;;  %s4406_s25 = smov [#allocation3]  }
 0x122   :  { %s389_s28 = sshll.u32 %s4405_s8, 4  ;;  %s101_s1 = sshll.u32 %s4406_s25, 4  ;;  %s390_s28 = int_to_ptr.vmem [resolvable:$true] %s389_s28  ;;  %s102_s1 = int_to_ptr.vmem [resolvable:$true] %s101_s1 }
 0x123   :  { %s3844_s6 = scalar_lea.hbm %s4582_s21, 16 }
 0x124   :  { %p3845_p6 = scmp.ne.s32.totalorder %s4582_s21, %s3844_s6  ;;  %p3848_p7 = scmp.lt.u32.totalorder %s3844_s6, %s4582_s21 }
 0x126   :  { %p3850_p8 = pnand %p3848_p7, %p3845_p6 }
 0x128   :  { %3853 = shalt.err (!%p3850_p8)
}
 0x129   :  { %s3854_s2 = scalar_lea.vmem %s390_s28, 16  ;;  %s3858_s20 = scalar_lea.vmem %s390_s28, 32 }
 0x12a   :  { %p3855_p9 = scmp.ne.s32.totalorder %s390_s28, %s3854_s2  ;;  %p3859_p10 = scmp.lt.s32.totalorder %s390_s28, %s390_s28 }
 0x12b   :  { %p3860_p11 = scmp.lt.s32.totalorder %s3858_s20, %s3854_s2 }
 0x12d   :  { %p3861_p12 = por %p3860_p11, %p3859_p10 }
 0x12f   :  { %p3862_p13 = pnand %p3861_p12, %p3855_p9 }
 0x131   :  { %3865 = shalt.err (!%p3862_p13)
}
 0x132   :  { %s5054_s29 = sld [smem:[#allocation78_spill]] }
 0x133   :  { %392 = dma.hbm_to_vmem [thread:$0]  %s4582_s21, 16, %s390_s28, [#allocation47]  }
 0x138   :  { %s3866_s3 = scalar_lea.hbm %s5054_s29, 32 }
 0x139   :  { %p3867_p0 = scmp.ne.s32.totalorder %s5054_s29, %s3866_s3  ;;  %p3870_p1 = scmp.lt.u32.totalorder %s3866_s3, %s5054_s29 }
 0x13b   :  { %p3872_p2 = pnand %p3870_p1, %p3867_p0 }
 0x13d   :  { %3875 = shalt.err (!%p3872_p2)
}
 0x13e   :  { %s3876_s7 = scalar_lea.vmem %s102_s1, 32  ;;  %p3881_p4 = scmp.lt.s32.totalorder %s102_s1, %s102_s1 }
 0x13f   :  { %p3877_p3 = scmp.ne.s32.totalorder %s102_s1, %s3876_s7  ;;  %p3882_p5 = scmp.lt.s32.totalorder %s3876_s7, %s3876_s7 }
 0x141   :  { %p3883_p6 = por %p3882_p5, %p3881_p4 }
 0x143   :  { %p3884_p7 = pnand %p3883_p6, %p3877_p3 }
 0x145   :  { %3887 = shalt.err (!%p3884_p7)
}
 0x146   :  { %s5055_s10 = sld [smem:[#allocation79_spill]]  ;;  %s4407_s9 = smov [#allocation9]  }
 0x147   :  { %104 = dma.hbm_to_vmem [thread:$0]  %s5054_s29, 32, %s102_s1, [#allocation4]  }
 0x148   :  { %s123_s21 = sshll.u32 %s4407_s9, 4  ;;  %s4408_s11 = smov [#allocation12]   ;;  %s124_s21 = int_to_ptr.vmem [resolvable:$true] %s123_s21 }
 0x149   :  { %s143_s4 = sshll.u32 %s4408_s11, 4  ;;  %s144_s4 = int_to_ptr.vmem [resolvable:$true] %s143_s4 }
 0x14c   :  { %s3888_s0 = scalar_lea.hbm %s5055_s10, 32 }
 0x14d   :  { %p3889_p8 = scmp.ne.s32.totalorder %s5055_s10, %s3888_s0  ;;  %p3892_p9 = scmp.lt.u32.totalorder %s3888_s0, %s5055_s10 }
 0x14f   :  { %p3894_p10 = pnand %p3892_p9, %p3889_p8 }
 0x151   :  { %3897 = shalt.err (!%p3894_p10)
}
 0x152   :  { %s3898_s30 = scalar_lea.vmem %s124_s21, 32  ;;  %p3903_p12 = scmp.lt.s32.totalorder %s124_s21, %s124_s21 }
 0x153   :  { %p3899_p11 = scmp.ne.s32.totalorder %s124_s21, %s3898_s30  ;;  %p3904_p13 = scmp.lt.s32.totalorder %s3898_s30, %s3898_s30 }
 0x155   :  { %p3905_p0 = por %p3904_p13, %p3903_p12 }
 0x157   :  { %p3906_p1 = pnand %p3905_p0, %p3899_p11 }
 0x159   :  { %3909 = shalt.err (!%p3906_p1)
}
 0x15a   :  { %s5056_s17 = sld [smem:[#allocation80_spill]] }
 0x15b   :  { %126 = dma.hbm_to_vmem [thread:$0]  %s5055_s10, 32, %s124_s21, [#allocation8]  }
 0x160   :  { %s3910_s14 = scalar_lea.hbm %s5056_s17, 32 }
 0x161   :  { %p3911_p2 = scmp.ne.s32.totalorder %s5056_s17, %s3910_s14  ;;  %p3914_p3 = scmp.lt.u32.totalorder %s3910_s14, %s5056_s17 }
 0x163   :  { %p3916_p4 = pnand %p3914_p3, %p3911_p2 }
 0x165   :  { %3919 = shalt.err (!%p3916_p4)
}
 0x166   :  { %s3920_s15 = scalar_lea.vmem %s144_s4, 32  ;;  %p3925_p6 = scmp.lt.s32.totalorder %s144_s4, %s144_s4 }
 0x167   :  { %p3921_p5 = scmp.ne.s32.totalorder %s144_s4, %s3920_s15  ;;  %p3926_p7 = scmp.lt.s32.totalorder %s3920_s15, %s3920_s15 }
 0x169   :  { %p3927_p8 = por %p3926_p7, %p3925_p6 }
 0x16b   :  { %p3928_p9 = pnand %p3927_p8, %p3921_p5 }
 0x16d   :  { %3931 = shalt.err (!%p3928_p9)
}
 0x16e   :  { %s5057_s16 = sld [smem:[#allocation81_spill]]  ;;  %s4409_s24 = smov [#allocation15]  }
 0x16f   :  { %146 = dma.hbm_to_vmem [thread:$0]  %s5056_s17, 32, %s144_s4, [#allocation11]  }
 0x170   :  { %s163_s19 = sshll.u32 %s4409_s24, 4  ;;  %s4410_s18 = smov [#allocation18]   ;;  %s164_s19 = int_to_ptr.vmem [resolvable:$true] %s163_s19 }
 0x171   :  { %s183_s26 = sshll.u32 %s4410_s18, 4  ;;  %s184_s26 = int_to_ptr.vmem [resolvable:$true] %s183_s26 }
 0x174   :  { %s3932_s8 = scalar_lea.hbm %s5057_s16, 32 }
 0x175   :  { %p3933_p10 = scmp.ne.s32.totalorder %s5057_s16, %s3932_s8  ;;  %p3936_p11 = scmp.lt.u32.totalorder %s3932_s8, %s5057_s16 }
 0x177   :  { %p3938_p12 = pnand %p3936_p11, %p3933_p10 }
 0x179   :  { %3941 = shalt.err (!%p3938_p12)
}
 0x17a   :  { %s3942_s28 = scalar_lea.vmem %s164_s19, 32  ;;  %p3947_p0 = scmp.lt.s32.totalorder %s164_s19, %s164_s19 }
 0x17b   :  { %p3943_p13 = scmp.ne.s32.totalorder %s164_s19, %s3942_s28  ;;  %p3948_p1 = scmp.lt.s32.totalorder %s3942_s28, %s3942_s28 }
 0x17d   :  { %p3949_p2 = por %p3948_p1, %p3947_p0 }
 0x17f   :  { %p3950_p3 = pnand %p3949_p2, %p3943_p13 }
 0x181   :  { %3953 = shalt.err (!%p3950_p3)
}
 0x182   :  { %s5058_s25 = sld [smem:[#allocation82_spill]] }
 0x183   :  { %166 = dma.hbm_to_vmem [thread:$0]  %s5057_s16, 32, %s164_s19, [#allocation14]  }
 0x188   :  { %s3954_s1 = scalar_lea.hbm %s5058_s25, 32 }
 0x189   :  { %p3955_p4 = scmp.ne.s32.totalorder %s5058_s25, %s3954_s1  ;;  %p3958_p5 = scmp.lt.u32.totalorder %s3954_s1, %s5058_s25 }
 0x18b   :  { %p3960_p6 = pnand %p3958_p5, %p3955_p4 }
 0x18d   :  { %3963 = shalt.err (!%p3960_p6)
}
 0x18e   :  { %s3964_s6 = scalar_lea.vmem %s184_s26, 32  ;;  %p3969_p8 = scmp.lt.s32.totalorder %s184_s26, %s184_s26 }
 0x18f   :  { %p3965_p7 = scmp.ne.s32.totalorder %s184_s26, %s3964_s6  ;;  %p3970_p9 = scmp.lt.s32.totalorder %s3964_s6, %s3964_s6 }
 0x191   :  { %p3971_p10 = por %p3970_p9, %p3969_p8 }
 0x193   :  { %p3972_p11 = pnand %p3971_p10, %p3965_p7 }
 0x195   :  { %3975 = shalt.err (!%p3972_p11)
}
 0x196   :  { %s5059_s2 = sld [smem:[#allocation83_spill]]  ;;  %s4411_s20 = smov [#allocation21]  }
 0x197   :  { %186 = dma.hbm_to_vmem [thread:$0]  %s5058_s25, 32, %s184_s26, [#allocation17]  }
 0x198   :  { %s203_s29 = sshll.u32 %s4411_s20, 4  ;;  %s4412_s3 = smov [#allocation24]   ;;  %s204_s29 = int_to_ptr.vmem [resolvable:$true] %s203_s29 }
 0x199   :  { %s222_s7 = sshll.u32 %s4412_s3, 4  ;;  %s223_s7 = int_to_ptr.vmem [resolvable:$true] %s222_s7 }
 0x19c   :  { %s3976_s10 = scalar_lea.hbm %s5059_s2, 32 }
 0x19d   :  { %p3977_p12 = scmp.ne.s32.totalorder %s5059_s2, %s3976_s10  ;;  %p3980_p13 = scmp.lt.u32.totalorder %s3976_s10, %s5059_s2 }
 0x19f   :  { %p3982_p0 = pnand %p3980_p13, %p3977_p12 }
 0x1a1   :  { %3985 = shalt.err (!%p3982_p0)
}
 0x1a2   :  { %s3986_s9 = scalar_lea.vmem %s204_s29, 32  ;;  %p3991_p2 = scmp.lt.s32.totalorder %s204_s29, %s204_s29 }
 0x1a3   :  { %p3987_p1 = scmp.ne.s32.totalorder %s204_s29, %s3986_s9  ;;  %p3992_p3 = scmp.lt.s32.totalorder %s3986_s9, %s3986_s9 }
 0x1a5   :  { %p3993_p4 = por %p3992_p3, %p3991_p2 }
 0x1a7   :  { %p3994_p5 = pnand %p3993_p4, %p3987_p1 }
 0x1a9   :  { %3997 = shalt.err (!%p3994_p5)
}
 0x1aa   :  { %s5060_s21 = sld [smem:[#allocation84_spill]] }
 0x1ab   :  { %206 = dma.hbm_to_vmem [thread:$0]  %s5059_s2, 32, %s204_s29, [#allocation20]  }
 0x1b0   :  { %s3998_s11 = scalar_lea.hbm %s5060_s21, 512 }
 0x1b1   :  { %p3999_p6 = scmp.ne.s32.totalorder %s5060_s21, %s3998_s11  ;;  %p4002_p7 = scmp.lt.u32.totalorder %s3998_s11, %s5060_s21 }
 0x1b3   :  { %p4004_p8 = pnand %p4002_p7, %p3999_p6 }
 0x1b5   :  { %4007 = shalt.err (!%p4004_p8)
}
 0x1b6   :  { %s4008_s4 = scalar_lea.vmem %s223_s7, 512  ;;  %p4013_p10 = scmp.lt.s32.totalorder %s223_s7, %s223_s7 }
 0x1b7   :  { %p4009_p9 = scmp.ne.s32.totalorder %s223_s7, %s4008_s4  ;;  %p4014_p11 = scmp.lt.s32.totalorder %s4008_s4, %s4008_s4 }
 0x1b9   :  { %p4015_p12 = por %p4014_p11, %p4013_p10 }
 0x1bb   :  { %p4016_p13 = pnand %p4015_p12, %p4009_p9 }
 0x1bd   :  { %4019 = shalt.err (!%p4016_p13)
}
 0x1be   :  { %s5061_s0 = sld [smem:[#allocation85_spill]]  ;;  %s4413_s30 = smov [#allocation27]  }
 0x1bf   :  { %228 = dma.hbm_to_vmem [thread:$0]  %s5060_s21, 512, %s223_s7, [#allocation23], %s4391_s22, %s4391_s22, %s4392_s23  }
 0x1c0   :  { %s245_s17 = sshll.u32 %s4413_s30, 4  ;;  %s4414_s14 = smov [#allocation30]   ;;  %s246_s17 = int_to_ptr.vmem [resolvable:$true] %s245_s17 }
 0x1c1   :  { %s266_s15 = sshll.u32 %s4414_s14, 4  ;;  %s267_s15 = int_to_ptr.vmem [resolvable:$true] %s266_s15 }
 0x1c4   :  { %s4020_s16 = scalar_lea.hbm %s5061_s0, 16 }
 0x1c5   :  { %p4021_p0 = scmp.ne.s32.totalorder %s5061_s0, %s4020_s16  ;;  %p4024_p1 = scmp.lt.u32.totalorder %s4020_s16, %s5061_s0 }
 0x1c7   :  { %p4026_p2 = pnand %p4024_p1, %p4021_p0 }
 0x1c9   :  { %4029 = shalt.err (!%p4026_p2)
}
 0x1ca   :  { %s4030_s24 = scalar_lea.vmem %s246_s17, 16  ;;  %s4034_s19 = scalar_lea.vmem %s246_s17, 32 }
 0x1cb   :  { %p4031_p3 = scmp.ne.s32.totalorder %s246_s17, %s4030_s24  ;;  %p4035_p4 = scmp.lt.s32.totalorder %s246_s17, %s246_s17 }
 0x1cc   :  { %p4036_p5 = scmp.lt.s32.totalorder %s4034_s19, %s4030_s24 }
 0x1ce   :  { %p4037_p6 = por %p4036_p5, %p4035_p4 }
 0x1d0   :  { %p4038_p7 = pnand %p4037_p6, %p4031_p3 }
 0x1d2   :  { %4041 = shalt.err (!%p4038_p7)
}
 0x1d3   :  { %s5062_s18 = sld [smem:[#allocation86_spill]] }
 0x1d4   :  { %248 = dma.hbm_to_vmem [thread:$0]  %s5061_s0, 16, %s246_s17, [#allocation26]  }
 0x1d9   :  { %s4042_s26 = scalar_lea.hbm %s5062_s18, 48 }
 0x1da   :  { %p4043_p8 = scmp.ne.s32.totalorder %s5062_s18, %s4042_s26  ;;  %p4046_p9 = scmp.lt.u32.totalorder %s4042_s26, %s5062_s18 }
 0x1dc   :  { %p4048_p10 = pnand %p4046_p9, %p4043_p8 }
 0x1de   :  { %4051 = shalt.err (!%p4048_p10)
}
 0x1df   :  { %s4052_s8 = scalar_lea.vmem %s267_s15, 48  ;;  %s4056_s28 = scalar_lea.vmem %s267_s15, 64 }
 0x1e0   :  { %p4053_p11 = scmp.ne.s32.totalorder %s267_s15, %s4052_s8  ;;  %p4057_p12 = scmp.lt.s32.totalorder %s267_s15, %s267_s15 }
 0x1e1   :  { %p4058_p13 = scmp.lt.s32.totalorder %s4056_s28, %s4052_s8 }
 0x1e3   :  { %p4059_p0 = por %p4058_p13, %p4057_p12 }
 0x1e5   :  { %p4060_p1 = pnand %p4059_p0, %p4053_p11 }
 0x1e7   :  { %4063 = shalt.err (!%p4060_p1)
}
 0x1e8   :  { %s4415_s25 = smov 16   ;;  %s5063_s1 = sld [smem:[#allocation87_spill]] }
 0x1e9   :  { %s4416_s6 = smov 1   ;;  %s4417_s2 = smov [#allocation33]  }
 0x1ea   :  { %272 = dma.hbm_to_vmem [thread:$0]  %s5062_s18, 48, %s267_s15, [#allocation29], %s4415_s25, %s4415_s25, %s4416_s6  }
 0x1eb   :  { %s291_s20 = sshll.u32 %s4417_s2, 4  ;;  %s4418_s29 = smov [#allocation36]   ;;  %s292_s20 = int_to_ptr.vmem [resolvable:$true] %s291_s20 }
 0x1ec   :  { %s313_s3 = sshll.u32 %s4418_s29, 4  ;;  %s314_s3 = int_to_ptr.vmem [resolvable:$true] %s313_s3 }
 0x1ee   :  { %s4064_s7 = scalar_lea.hbm %s5063_s1, 16 }
 0x1ef   :  { %p4065_p2 = scmp.ne.s32.totalorder %s5063_s1, %s4064_s7  ;;  %p4068_p3 = scmp.lt.u32.totalorder %s4064_s7, %s5063_s1 }
 0x1f1   :  { %p4070_p4 = pnand %p4068_p3, %p4065_p2 }
 0x1f3   :  { %4073 = shalt.err (!%p4070_p4)
}
 0x1f4   :  { %s4074_s10 = scalar_lea.vmem %s292_s20, 16  ;;  %s4078_s9 = scalar_lea.vmem %s292_s20, 32 }
 0x1f5   :  { %p4075_p5 = scmp.ne.s32.totalorder %s292_s20, %s4074_s10  ;;  %p4079_p6 = scmp.lt.s32.totalorder %s292_s20, %s292_s20 }
 0x1f6   :  { %p4080_p7 = scmp.lt.s32.totalorder %s4078_s9, %s4074_s10 }
 0x1f8   :  { %p4081_p8 = por %p4080_p7, %p4079_p6 }
 0x1fa   :  { %p4082_p9 = pnand %p4081_p8, %p4075_p5 }
 0x1fc   :  { %4085 = shalt.err (!%p4082_p9)
}
 0x1fd   :  { %s5064_s21 = sld [smem:[#allocation88_spill]] }
 0x1fe   :  { %294 = dma.hbm_to_vmem [thread:$0]  %s5063_s1, 16, %s292_s20, [#allocation32]  }
 0x203   :  { %s4086_s11 = scalar_lea.hbm %s5064_s21, 16 }
 0x204   :  { %p4087_p10 = scmp.ne.s32.totalorder %s5064_s21, %s4086_s11  ;;  %p4090_p11 = scmp.lt.u32.totalorder %s4086_s11, %s5064_s21 }
 0x206   :  { %p4092_p12 = pnand %p4090_p11, %p4087_p10 }
 0x208   :  { %4095 = shalt.err (!%p4092_p12)
}
 0x209   :  { %s4096_s4 = scalar_lea.vmem %s314_s3, 16  ;;  %s4100_s0 = scalar_lea.vmem %s314_s3, 32 }
 0x20a   :  { %p4097_p13 = scmp.ne.s32.totalorder %s314_s3, %s4096_s4  ;;  %p4101_p0 = scmp.lt.s32.totalorder %s314_s3, %s314_s3 }
 0x20b   :  { %p4102_p1 = scmp.lt.s32.totalorder %s4100_s0, %s4096_s4 }
 0x20d   :  { %p4103_p2 = por %p4102_p1, %p4101_p0 }
 0x20f   :  { %p4104_p3 = pnand %p4103_p2, %p4097_p13 }
 0x211   :  { %4107 = shalt.err (!%p4104_p3)
}
 0x212   :  { %s5065_s30 = sld [smem:[#allocation89_spill]]  ;;  %s4419_s17 = smov [#allocation39]  }
 0x213   :  { %316 = dma.hbm_to_vmem [thread:$0]  %s5064_s21, 16, %s314_s3, [#allocation35]  }
 0x214   :  { %s335_s14 = sshll.u32 %s4419_s17, 4  ;;  %s4420_s15 = smov [#allocation42]   ;;  %s336_s14 = int_to_ptr.vmem [resolvable:$true] %s335_s14 }
 0x215   :  { %s357_s16 = sshll.u32 %s4420_s15, 4  ;;  %s358_s16 = int_to_ptr.vmem [resolvable:$true] %s357_s16 }
 0x218   :  { %s4108_s24 = scalar_lea.hbm %s5065_s30, 16 }
 0x219   :  { %p4109_p4 = scmp.ne.s32.totalorder %s5065_s30, %s4108_s24  ;;  %p4112_p5 = scmp.lt.u32.totalorder %s4108_s24, %s5065_s30 }
 0x21b   :  { %p4114_p6 = pnand %p4112_p5, %p4109_p4 }
 0x21d   :  { %4117 = shalt.err (!%p4114_p6)
}
 0x21e   :  { %s4118_s19 = scalar_lea.vmem %s336_s14, 16  ;;  %s4122_s18 = scalar_lea.vmem %s336_s14, 32 }
 0x21f   :  { %p4119_p7 = scmp.ne.s32.totalorder %s336_s14, %s4118_s19  ;;  %p4123_p8 = scmp.lt.s32.totalorder %s336_s14, %s336_s14 }
 0x220   :  { %p4124_p9 = scmp.lt.s32.totalorder %s4122_s18, %s4118_s19 }
 0x222   :  { %p4125_p10 = por %p4124_p9, %p4123_p8 }
 0x224   :  { %p4126_p11 = pnand %p4125_p10, %p4119_p7 }
 0x226   :  { %4129 = shalt.err (!%p4126_p11)
}
 0x227   :  { %s5066_s26 = sld [smem:[#allocation90_spill]] }
 0x228   :  { %338 = dma.hbm_to_vmem [thread:$0]  %s5065_s30, 16, %s336_s14, [#allocation38]  }
 0x22d   :  { %s4130_s8 = scalar_lea.hbm %s5066_s26, 16 }
 0x22e   :  { %p4131_p12 = scmp.ne.s32.totalorder %s5066_s26, %s4130_s8  ;;  %p4134_p13 = scmp.lt.u32.totalorder %s4130_s8, %s5066_s26 }
 0x230   :  { %p4136_p0 = pnand %p4134_p13, %p4131_p12 }
 0x232   :  { %4139 = shalt.err (!%p4136_p0)
}
 0x233   :  { %s4140_s28 = scalar_lea.vmem %s358_s16, 16  ;;  %s4144_s25 = scalar_lea.vmem %s358_s16, 32 }
 0x234   :  { %p4141_p1 = scmp.ne.s32.totalorder %s358_s16, %s4140_s28  ;;  %p4145_p2 = scmp.lt.s32.totalorder %s358_s16, %s358_s16 }
 0x235   :  { %p4146_p3 = scmp.lt.s32.totalorder %s4144_s25, %s4140_s28 }
 0x237   :  { %p4147_p4 = por %p4146_p3, %p4145_p2 }
 0x239   :  { %p4148_p5 = pnand %p4147_p4, %p4141_p1 }
 0x23b   :  { %4151 = shalt.err (!%p4148_p5)
}
 0x23c   :  { %s5067_s1 = sld [smem:[#allocation91_spill]]  ;;  %s4421_s6 = smov [#allocation45]  }
 0x23d   :  { %360 = dma.hbm_to_vmem [thread:$0]  %s5066_s26, 16, %s358_s16, [#allocation41]  }
 0x23e   :  { %s376_s2 = sshll.u32 %s4421_s6, 4  ;;  %s4422_s20 = smov [#allocation48]   ;;  %s377_s2 = int_to_ptr.vmem [resolvable:$true] %s376_s2 }
 0x23f   :  { %s398_s29 = sshll.u32 %s4422_s20, 4  ;;  %s399_s29 = int_to_ptr.vmem [resolvable:$true] %s398_s29 }
 0x242   :  { %s4152_s3 = scalar_lea.hbm %s5067_s1, 512 }
 0x243   :  { %p4153_p6 = scmp.ne.s32.totalorder %s5067_s1, %s4152_s3  ;;  %p4156_p7 = scmp.lt.u32.totalorder %s4152_s3, %s5067_s1 }
 0x245   :  { %p4158_p8 = pnand %p4156_p7, %p4153_p6 }
 0x247   :  { %4161 = shalt.err (!%p4158_p8)
}
 0x248   :  { %s4162_s7 = scalar_lea.vmem %s377_s2, 512  ;;  %p4167_p10 = scmp.lt.s32.totalorder %s377_s2, %s377_s2 }
 0x249   :  { %p4163_p9 = scmp.ne.s32.totalorder %s377_s2, %s4162_s7  ;;  %p4168_p11 = scmp.lt.s32.totalorder %s4162_s7, %s4162_s7 }
 0x24b   :  { %p4169_p12 = por %p4168_p11, %p4167_p10 }
 0x24d   :  { %p4170_p13 = pnand %p4169_p12, %p4163_p9 }
 0x24f   :  { %4173 = shalt.err (!%p4170_p13)
}
 0x250   :  { %s5068_s10 = sld [smem:[#allocation92_spill]] }
 0x251   :  { %382 = dma.hbm_to_vmem [thread:$0]  %s5067_s1, 512, %s377_s2, [#allocation44], %s4391_s22, %s4391_s22, %s4392_s23  }
 0x256   :  { %s4174_s9 = scalar_lea.hbm %s5068_s10, 512 }
 0x257   :  { %p4175_p0 = scmp.ne.s32.totalorder %s5068_s10, %s4174_s9  ;;  %p4178_p1 = scmp.lt.u32.totalorder %s4174_s9, %s5068_s10 }
 0x259   :  { %p4180_p2 = pnand %p4178_p1, %p4175_p0 }
 0x25b   :  { %4183 = shalt.err (!%p4180_p2)
}
 0x25c   :  { %s4184_s21 = scalar_lea.vmem %s399_s29, 512  ;;  %p4189_p4 = scmp.lt.s32.totalorder %s399_s29, %s399_s29 }
 0x25d   :  { %p4185_p3 = scmp.ne.s32.totalorder %s399_s29, %s4184_s21  ;;  %p4190_p5 = scmp.lt.s32.totalorder %s4184_s21, %s4184_s21 }
 0x25f   :  { %p4191_p6 = por %p4190_p5, %p4189_p4 }
 0x261   :  { %p4192_p7 = pnand %p4191_p6, %p4185_p3 }
 0x263   :  { %4195 = shalt.err (!%p4192_p7)
}
 0x264   :  { %s5069_s11 = sld [smem:[#allocation93_spill]]  ;;  %s4423_s4 = smov [#allocation49]  }
 0x265   :  { %404 = dma.hbm_to_vmem [thread:$0]  %s5068_s10, 512, %s399_s29, [#allocation47], %s4391_s22, %s4391_s22, %s4392_s23  }
 0x266   :  { %s411_s0 = sshll.u32 %s4423_s4, 4  ;;  %s412_s0 = int_to_ptr.vmem [resolvable:$true] %s411_s0 }
 0x26a   :  { %s4196_s30 = scalar_lea.hbm %s5069_s11, 16 }
 0x26b   :  { %p4197_p8 = scmp.ne.s32.totalorder %s5069_s11, %s4196_s30  ;;  %p4200_p9 = scmp.lt.u32.totalorder %s4196_s30, %s5069_s11 }
 0x26d   :  { %p4202_p10 = pnand %p4200_p9, %p4197_p8 }
 0x26f   :  { %4205 = shalt.err (!%p4202_p10)
}
 0x270   :  { %s4206_s17 = scalar_lea.vmem %s412_s0, 16  ;;  %s4210_s14 = scalar_lea.vmem %s412_s0, 32 }
 0x271   :  { %p4207_p11 = scmp.ne.s32.totalorder %s412_s0, %s4206_s17  ;;  %p4211_p12 = scmp.lt.s32.totalorder %s412_s0, %s412_s0 }
 0x272   :  { %p4212_p13 = scmp.lt.s32.totalorder %s4210_s14, %s4206_s17 }
 0x274   :  { %p4213_p0 = por %p4212_p13, %p4211_p12 }
 0x276   :  { %p4214_p1 = pnand %p4213_p0, %p4207_p11 }
 0x278   :  { %4217 = shalt.err (!%p4214_p1)
}
 0x279   :  { %s5070_s15 = sld [smem:[#allocation94_spill]] }
 0x27a   :  { %414 = dma.hbm_to_vmem [thread:$0]  %s5069_s11, 16, %s412_s0, [#allocation50]  }
 0x27f   :  { %s4218_s22 = scalar_lea.hbm %s5070_s15, 16 }
 0x280   :  { %p4219_p2 = scmp.ne.s32.totalorder %s5070_s15, %s4218_s22  ;;  %p4222_p3 = scmp.lt.u32.totalorder %s4218_s22, %s5070_s15 }
 0x282   :  { %p4224_p4 = pnand %p4222_p3, %p4219_p2 }
 0x284   :  { %4227 = shalt.err (!%p4224_p4)
}
 0x285   :  { %s4424_s23 = smov [#allocation51]  }
 0x286   :  { %422 = dma.hbm_to_smem %s5070_s15, 16, %s4424_s23, [#allocation6]  }
 0x287   :  { %4316 = dma.done.wait [#allocation4], 32  }
 0x288   :  { %4317 = vsyncadd [#allocation4], 4294967264 }
 0x289   :  { %4318 = dma.done.wait [#allocation8], 288  }
 0x28a   :  { %4319 = vsyncadd [#allocation8], 4294967008 }
 0x28b   :  { %4320 = dma.done.wait [#allocation11], 64  }
 0x28c   :  { %4321 = vsyncadd [#allocation11], 4294967232 }
 0x28d   :  { %4322 = dma.done.wait [#allocation14], 64  }
 0x28e   :  { %4323 = vsyncadd [#allocation14], 4294967232 }
 0x28f   :  { %4324 = dma.done.wait [#allocation17], 48  }
 0x290   :  { %4325 = vsyncadd [#allocation17], 4294967248 }
 0x291   :  { %4326 = dma.done.wait [#allocation20], 48  }
 0x292   :  { %4327 = vsyncadd [#allocation20], 4294967248 }
 0x293   :  { %4328 = dma.done.wait [#allocation23], 528  }
 0x294   :  { %4329 = vsyncadd [#allocation23], 4294966768 }
 0x295   :  { %4330 = dma.done.wait [#allocation26], 32  }
 0x296   :  { %4331 = vsyncadd [#allocation26], 4294967264 }
 0x297   :  { %4332 = dma.done.wait [#allocation29], 1584  }
 0x298   :  { %4333 = vsyncadd [#allocation29], 4294965712 }
 0x299   :  { %4334 = dma.done.wait [#allocation32], 528  }
 0x29a   :  { %4335 = vsyncadd [#allocation32], 4294966768 }
 0x29b   :  { %4336 = dma.done.wait [#allocation35], 528  }
 0x29c   :  { %4337 = vsyncadd [#allocation35], 4294966768 }
 0x29d   :  { %4338 = dma.done.wait [#allocation38], 528  }
 0x29e   :  { %4339 = vsyncadd [#allocation38], 4294966768 }
 0x29f   :  { %4340 = dma.done.wait [#allocation41], 528  }
 0x2a0   :  { %4341 = vsyncadd [#allocation41], 4294966768 }
 0x2a1   :  { %4342 = dma.done.wait [#allocation44], 528  }
 0x2a2   :  { %4343 = vsyncadd [#allocation44], 4294966768 }
 0x2a3   :  { %4344 = dma.done.wait [#allocation47], 528  }
 0x2a4   :  { %4345 = vsyncadd [#allocation47], 4294966768 }
 0x2a5   :  { %4346 = dma.done.wait [#allocation50], 16  }
 0x2a6   :  { %4347 = vsyncadd [#allocation50], 4294967280 }
 0x2a7   :  { %4348 = dma.done.wait [#allocation6], 16  }
 0x2a8   :  { %4349 = vsyncadd [#allocation6], 4294967280 }
 0x2a9   :  { %516 = sfence }
 0x2aa   :  { %v518_v0 = vld [vmem:[#allocation15] sm:$0x3]  ;;  %vm530_vm0 = vcmask 1041408   ;;  %vm526_vm1 = vcmask 15360   ;;  %v4425_v1 = vmov 0.0   ;;  %vm4426_vm2 = vmmov 0  }
 0x2ab   :  { %3065 = vmatprep.subr.mxu0 %v4425_v1  ;;  %3067 = vmatprep.mubr.msk.f32.mxu0 %vm4426_vm2, %v4425_v1  ;;  %v517_v2 = vld [vmem:[#allocation3] sm:$0x3]  ;;  %v698_v3 = vld [vmem:[#allocation21] sm:$0x3]  ;;  %v606_v5 = vld [vmem:[#allocation18] sm:$0x3]  ;;  %v788_v17 = vlaneseq }
 0x2ac   :  { %v604_v4 = vld [vmem:[#allocation7] sm:$0xff]  ;;  %3066 = vmatpush3.msk.msra.mxu0 %vm530_vm0, %v518_v0  ;;  %v871_v7 = vld [vmem:[#allocation24 + $0x8] sm:$0xff]  ;;  %3070 = vmatprep.subr.msk.mxu1 %vm530_vm0, %v606_v5  ;;  %v4427_v10 = vmov 0.0|0.0   ;;  %v872_v11 = vld [vmem:[#allocation24 + $0x10] sm:$0xff]  ;;  %vm875_vm3 = vcmask 261120   ;;  %s4430_s16 = smov 64  }
 0x2ad   :  { %3072 = vmatprep.mubr.msk.f32.mxu1 %vm526_vm1, %v604_v4  ;;  %v870_v6 = vld [vmem:[#allocation24] sm:$0xff]  ;;  %3068 = vmatmul.mubr.msk.f32.vlgmr.msra.gmra.mrb[0].mxu0 %vm526_vm1, %v517_v2  ;;  %v873_v12 = vld [vmem:[#allocation24 + $0x18] sm:$0xff]  ;;  %v4428_v15 = vmov 1983009808   ;;  %v4809_v19 = vshrl.u32 %v788_v17, 7  ;;  %s4431_s24 = smov 32  }
 0x2ae   :  { %3075 = vmatprep.subr.msk.mxu0 %vm530_vm0, %v698_v3  ;;  %3077 = vmatprep.mubr.msk.f32.mxu0 %vm526_vm1, %v604_v4  ;;  %v605_v8 = vld [vmem:[#allocation7 + $0x8] sm:$0xff]  ;;  %v4780_v9 = vpack.c.bf16 %v871_v7, %v870_v6  ;;  %v4789_v13 = vpack.c.bf16 %v873_v12, %v872_v11  ;;  %v2922_v14 = vld [vmem:[#allocation25] ss:$0 sm:$0xff]  ;;  %v786_v16 = vunpack.c.l.s4 %v4428_v15  ;;  %v4429_v21 = vmov 1934713408   ;;  %s1690_s19 = sld [smem:[#allocation51]] }
 0x2af   :  { %3076 = vmatpush3.msk.msra.mxu0 %vm530_vm0, %v698_v3  ;;  %3071 = vmatpush3.msk.msra.mxu1 %vm530_vm0, %v606_v5  ;;  %v817_v22 = vunpack.c.l.s4 %v4429_v21  ;;  %v2914_v24 = vld [vmem:[#allocation22] ss:$0 sm:$0xff]  ;;  %v2923_v57 = vld [vmem:[#allocation27] ss:$0 sm:$0xff]  ;;  %s4432_s26 = smov 96   ;;  %s2943_s8 = sld [smem:[#allocation51 + $0x1]] }
 0x2b0   :  { %3273 = vmatprep.subr.bf16.mxu0 %v4427_v10  ;;  %3267 = vmatprep.subr.bf16.mxu1 %v4427_v10  ;;  %v787_v18 = vunpack.c.0.s8 %v786_v16  ;;  %s2947_s25 = sld [smem:[#allocation51 + $0x2]]  ;;  %vm2797_vm4 = vcmask 254976   ;;  %s2967_s6 = sld [smem:[#allocation51 + $0x3]]  ;;  %vm2651_vm5 = vcmask 1041409   ;;  %vm2654_vm6 = vcmask 58368  }
 0x2b1   :  { %3078 = vmatmul.mubr.msk.f32.vlgmr.msra.gmra.mrb[2].mxu0 %vm526_vm1, %v605_v8  ;;  %3073 = vmatmul.mubr.msk.f32.vlgmr.msra.gmra.mrb[0].mxu1 %vm526_vm1, %v605_v8  ;;  %v818_v27 = vunpack.c.0.s8 %v817_v22  ;;  %s4435_s2 = smov [#allocation53]  }
 0x2b2   :  { %3275 = vmatpush3.bf16.msra.mxu0 %v4780_v9  ;;  %3269 = vmatpush3.bf16.msra.mxu1 %v4780_v9  ;;  %v790_v25 = vsub.s32 %v787_v18, %v4809_v19  ;;  %s2817_s20 = sshll.u32 %s4435_s2, 4  ;;  %s2818_s20 = int_to_ptr.vmem [resolvable:$true] %s2817_s20 }
 0x2b3   :  { %3088 = vmatprep.mubr.msk.f32.mxu1 %vm4426_vm2, %v4425_v1  ;;  %3270 = vmatprep.subr.bf16.mxu1 %v4427_v10  ;;  %v821_v37 = vsub.s32 %v818_v27, %v4809_v19  ;;  %s4228_s29 = scalar_lea.vmem %s2818_s20, 32  ;;  %p4233_p6 = scmp.lt.s32.totalorder %s2818_s20, %s2818_s20 }
 0x2b4   :  { %3276 = vmatprep.subr.bf16.mxu0 %v4427_v10  ;;  %3099 = vmatprep.mubr.msk.f32.mxu0 %vm4426_vm2, %v4425_v1  ;;  %s1786_s18 = ssub.f32 1.0, %s1690_s19  ;;  %p4229_p5 = scmp.ne.s32.totalorder %s2818_s20, %s4228_s29 }
 0x2b5   :  { %s1900_s28 = ssub.f32 1.0, %s2943_s8  ;;  %p4234_p7 = scmp.lt.s32.totalorder %s4228_s29, %s4228_s29 }
 0x2b6   :  { %3278 = vmatpush3.bf16.msra.mxu0 %v4789_v13  ;;  %3272 = vmatpush3.bf16.msra.mxu1 %v4789_v13  ;;  %s2014_s1 = ssub.f32 1.0, %s2947_s25 }
 0x2b7   :  { %3285 = vmatprep.subr.bf16.mxu0 %v4427_v10  ;;  %3279 = vmatprep.subr.bf16.mxu1 %v4427_v10  ;;  %p4235_p8 = por %p4234_p7, %p4233_p6 }
 0x2b9   :  { %3089 = vmatmul.mubr.msk.f32.vlgmr.msra.gmra.mrb[2].mxu1 %vm875_vm3, %v2922_v14  ;;  %p4236_p9 = pnand %p4235_p8, %p4229_p5 }
 0x2ba   :  { %3281 = vmatpush3.bf16.msra.mxu1 %v4780_v9  ;;  %3110 = vmatprep.mubr.msk.f32.mxu1 %vm4426_vm2, %v4425_v1 }
 0x2bb   :  { %3282 = vmatprep.subr.bf16.mxu1 %v4427_v10 }
 0x2be   :  { %3284 = vmatpush3.bf16.msra.mxu1 %v4789_v13 }
 0x2bf   :  { %3291 = vmatprep.subr.bf16.mxu1 %v4427_v10 }
 0x380   :  { %v4811_v20 = vpop.f32.mrb[0].mxu0 }
 0x381   :  { %v3069_v23 = vpop.f32.mrb[1].mxu0 }
 0x384   :  { %v3079_v26 = vpop.f32.mrb[2].mxu0  ;;  %v4814_v30 = vpop.f32.mrb[0].mxu1 }
 0x385   :  { %v781_v28 = vadd.f32 %v3079_v26, %v2914_v24  ;;  %v775_v29 = vpop.f32.mrb[3].mxu0  ;;  %v4816_v32 = vpop.f32.mrb[1].mxu1 }
 0x386   :  { %v776_v31 = vadd.f32 %v2914_v24, %v775_v29 }
 0x387   :  { %v799_v33 = vcombine.high %v781_v28, %v4425_v1  ;;  %v806_v34 = vrot.slane %v781_v28, %v790_v25 }
 0x388   :  { %v784_v35 = vcombine.high %v776_v31, %v4425_v1  ;;  %v791_v36 = vrot.slane %v776_v31, %v790_v25 }
 0x389   :  { %v813_v38 = vrot.slane %v799_v33, %v790_v25 }
 0x38a   :  { %v798_v39 = vrot.slane %v784_v35, %v790_v25  ;;  %v814_v40 = vcombine.low %v791_v36, %v806_v34  ;;  %v815_v41 = vcombine.high %v791_v36, %v806_v34 }
 0x38c   :  { %v822_v42 = vrot.slane %v814_v40, %v821_v37  ;;  %v829_v43 = vrot.slane %v815_v41, %v821_v37  ;;  %v830_v44 = vcombine.low %v798_v39, %v813_v38  ;;  %v831_v45 = vcombine.high %v798_v39, %v813_v38  ;;  %2918 = vst.sshfl [vmem:[#allocation2] sm:$0x11 pattern:$0x73516240] %v814_v40  ;;  %v944_v46 = vpop.f32.mrb[2].mxu1 }
 0x38d   :  { %2919 = vst.sshfl [vmem:[#allocation2 + $0x4] sm:$0x11 pattern:$0x73516240] %v815_v41  ;;  %v3090_v51 = vpop.f32.mrb[3].mxu1 }
 0x38e   :  { %v838_v47 = vrot.slane %v830_v44, %v821_v37  ;;  %v845_v48 = vrot.slane %v831_v45, %v821_v37  ;;  %v846_v49 = vcombine.high %v822_v42, %v4425_v1  ;;  %v847_v50 = vcombine.high %v829_v43, %v4425_v1  ;;  %2920 = vst.sshfl [vmem:[#allocation2 + $0x8] sm:$0x11 pattern:$0x73516240] %v830_v44 }
 0x38f   :  { %2921 = vst.sshfl [vmem:[#allocation2 + $0xc] sm:$0x11 pattern:$0x73516240] %v831_v45 }
 0x390   :  { %v848_v52 = vcombine.high %v838_v47, %v4425_v1  ;;  %v849_v53 = vcombine.high %v845_v48, %v4425_v1  ;;  %851 = vst [vmem:[#allocation2 + $0x2] sm:$0x3] %v846_v49  ;;  %853 = vst [vmem:[#allocation2 + $0x6] sm:$0x3] %v847_v50 }
 0x392   :  { %855 = vst [vmem:[#allocation2 + $0xa] sm:$0x3] %v848_v52  ;;  %857 = vst [vmem:[#allocation2 + $0xe] sm:$0x3] %v849_v53 }
 0x393   :  { %v874_v54 = vld [vmem:[#allocation2] sm:$0x3] }
 0x394   :  { %v948_v55 = vadd.f32 %v944_v46, %v874_v54  ;;  %v1079_v35 = vld [vmem:[#allocation2 + $0x4] sm:$0x3] }
 0x396   :  { %3466 = vtanh.f32 %v948_v55  ;;  %v2925_v58 = vmul.f32 -1.442695, %v948_v55 }
 0x397   :  { %v977_v11 = vld [vmem:[#allocation2 + $0x2] sm:$0x3]  ;;  %v1181_v53 = vld [vmem:[#allocation2 + $0x6] sm:$0x3] }
 0x398   :  { %3468 = vpow2.f32 %v2925_v58 }
 0x3a0   :  { %v3467_v56 = vpop.eup %3466 }
 0x3a1   :  { %961 = vrot.lane.b32.xlu0 %v3467_v56, %s4430_s16 }
 0x3a2   :  { %v3469_v59 = vpop.eup %3468 }
 0x3a3   :  { %v952_v60 = vadd.f32 1.0, %v3469_v59 }
 0x3a5   :  { %956 = vrot.lane.b32.xlu0 %v2923_v57, %s4431_s24  ;;  %3470 = vrcp.f32 %v952_v60 }
 0x3af   :  { %v3471_v61 = vpop.eup %3470 }
 0x413   :  { %v962_v62 = vpop.permute.xlu0 %961 }
 0x414   :  { %v964_v63 = vmul.f32 %v3471_v61, %v962_v62 }
 0x416   :  { %966 = vrot.lane.b32.xlu1 %v964_v63, %s4431_s24 }
 0x417   :  { %v957_v0 = vpop.permute.xlu0 %956 }
 0x418   :  { %v959_v2 = vmul.f32 %v3471_v61, %v957_v0 }
 0x488   :  { %v967_v3 = vpop.permute.xlu1 %966 }
 0x489   :  { %v969_v4 = vadd.f32 %v967_v3, %v959_v2 }
 0x48b   :  { %3472 = vtanh.f32 %v969_v4 }
 0x495   :  { %v3473_v5 = vpop.eup %3472 }
 0x496   :  { %972 = vrot.lane.b32.xlu1 %v3473_v5, %s4430_s16 }
 0x508   :  { %v973_v6 = vpop.permute.xlu1 %972 }
 0x509   :  { %v975_v7 = vmul.f32 %v3471_v61, %v973_v6 }
 0x50b   :  { %979 = vrot.lane.b32.xlu0 %v975_v7, %s4431_s24 }
 0x57d   :  { %v980_v8 = vpop.permute.xlu0 %979 }
 0x57e   :  { %3100 = vmatmul.mubr.msk.f32.vlgmr.msra.gmra.mrb[4].mxu0 %vm875_vm3, %v980_v8  ;;  %v1283_v8 = vld [vmem:[#allocation2 + $0x8] sm:$0x3] }
 0x57f   :  { %3287 = vmatpush3.bf16.msra.mxu0 %v4780_v9  ;;  %3121 = vmatprep.mubr.msk.f32.mxu0 %vm4426_vm2, %v4425_v1 }
 0x580   :  { %3288 = vmatprep.subr.bf16.mxu0 %v4427_v10 }
 0x583   :  { %3290 = vmatpush3.bf16.msra.mxu0 %v4789_v13 }
 0x584   :  { %3297 = vmatprep.subr.bf16.mxu0 %v4427_v10 }
 0x651   :  { %v1049_v12 = vpop.f32.mrb[4].mxu0 }
 0x652   :  { %v1053_v14 = vadd.f32 %v1049_v12, %v977_v11  ;;  %v3101_v15 = vpop.f32.mrb[5].mxu0 }
 0x654   :  { %3474 = vtanh.f32 %v1053_v14  ;;  %v2927_v18 = vmul.f32 -1.442695, %v1053_v14 }
 0x656   :  { %3476 = vpow2.f32 %v2927_v18 }
 0x65e   :  { %v3475_v16 = vpop.eup %3474 }
 0x65f   :  { %1063 = vrot.lane.b32.xlu1 %v3475_v16, %s4430_s16 }
 0x660   :  { %v3477_v21 = vpop.eup %3476 }
 0x661   :  { %v1057_v22 = vadd.f32 1.0, %v3477_v21 }
 0x663   :  { %3478 = vrcp.f32 %v1057_v22 }
 0x66d   :  { %v3479_v23 = vpop.eup %3478 }
 0x66e   :  { %v1061_v26 = vmul.f32 %v3479_v23, %v969_v4 }
 0x6d1   :  { %v1064_v24 = vpop.permute.xlu1 %1063 }
 0x6d2   :  { %v1066_v25 = vmul.f32 %v3479_v23, %v1064_v24 }
 0x6d4   :  { %1068 = vrot.lane.b32.xlu0 %v1066_v25, %s4431_s24 }
 0x746   :  { %v1069_v27 = vpop.permute.xlu0 %1068 }
 0x747   :  { %v1071_v28 = vadd.f32 %v1069_v27, %v1061_v26 }
 0x749   :  { %3480 = vtanh.f32 %v1071_v28 }
 0x753   :  { %v3481_v29 = vpop.eup %3480 }
 0x754   :  { %1074 = vrot.lane.b32.xlu1 %v3481_v29, %s4430_s16 }
 0x7c6   :  { %v1075_v31 = vpop.permute.xlu1 %1074 }
 0x7c7   :  { %v1077_v33 = vmul.f32 %v3479_v23, %v1075_v31 }
 0x7c9   :  { %1081 = vrot.lane.b32.xlu0 %v1077_v33, %s4431_s24 }
 0x83b   :  { %v1082_v34 = vpop.permute.xlu0 %1081 }
 0x83c   :  { %3111 = vmatmul.mubr.msk.f32.vlgmr.msra.gmra.mrb[4].mxu1 %vm875_vm3, %v1082_v34  ;;  %v1385_v34 = vld [vmem:[#allocation2 + $0xa] sm:$0x3] }
 0x83d   :  { %3293 = vmatpush3.bf16.msra.mxu1 %v4780_v9  ;;  %3132 = vmatprep.mubr.msk.f32.mxu1 %vm4426_vm2, %v4425_v1 }
 0x83e   :  { %3294 = vmatprep.subr.bf16.mxu1 %v4427_v10 }
 0x841   :  { %3296 = vmatpush3.bf16.msra.mxu1 %v4789_v13 }
 0x842   :  { %3303 = vmatprep.subr.bf16.mxu1 %v4427_v10 }
 0x90f   :  { %v1151_v36 = vpop.f32.mrb[4].mxu1 }
 0x910   :  { %v1155_v37 = vadd.f32 %v1151_v36, %v1079_v35  ;;  %v3112_v38 = vpop.f32.mrb[5].mxu1 }
 0x912   :  { %3482 = vtanh.f32 %v1155_v37  ;;  %v2929_v40 = vmul.f32 -1.442695, %v1155_v37 }
 0x914   :  { %3484 = vpow2.f32 %v2929_v40 }
 0x91c   :  { %v3483_v39 = vpop.eup %3482 }
 0x91d   :  { %1165 = vrot.lane.b32.xlu1 %v3483_v39, %s4430_s16 }
 0x91e   :  { %v3485_v41 = vpop.eup %3484 }
 0x91f   :  { %v1159_v42 = vadd.f32 1.0, %v3485_v41 }
 0x921   :  { %3486 = vrcp.f32 %v1159_v42 }
 0x92b   :  { %v3487_v43 = vpop.eup %3486 }
 0x92c   :  { %v1163_v46 = vmul.f32 %v3487_v43, %v1071_v28 }
 0x98f   :  { %v1166_v44 = vpop.permute.xlu1 %1165 }
 0x990   :  { %v1168_v45 = vmul.f32 %v3487_v43, %v1166_v44 }
 0x992   :  { %1170 = vrot.lane.b32.xlu0 %v1168_v45, %s4431_s24 }
 0xa04   :  { %v1171_v47 = vpop.permute.xlu0 %1170 }
 0xa05   :  { %v1173_v48 = vadd.f32 %v1171_v47, %v1163_v46  ;;  %v1691_v46 = vld [vmem:[#allocation28] sm:$0xff]  ;;  %v1692_v47 = vld [vmem:[#allocation28 + $0x8] sm:$0xff] }
 0xa07   :  { %3488 = vtanh.f32 %v1173_v48 }
 0xa11   :  { %v3489_v49 = vpop.eup %3488 }
 0xa12   :  { %1176 = vrot.lane.b32.xlu1 %v3489_v49, %s4430_s16 }
 0xa84   :  { %v1177_v50 = vpop.permute.xlu1 %1176 }
 0xa85   :  { %v1179_v51 = vmul.f32 %v3487_v43, %v1177_v50 }
 0xa87   :  { %1183 = vrot.lane.b32.xlu0 %v1179_v51, %s4431_s24 }
 0xaf9   :  { %v1184_v52 = vpop.permute.xlu0 %1183 }
 0xafa   :  { %3122 = vmatmul.mubr.msk.f32.vlgmr.msra.gmra.mrb[6].mxu0 %vm875_vm3, %v1184_v52  ;;  %v1693_v52 = vld [vmem:[#allocation28 + $0x10] sm:$0xff] }
 0xafb   :  { %3299 = vmatpush3.bf16.msra.mxu0 %v4780_v9  ;;  %3143 = vmatprep.mubr.msk.f32.mxu0 %vm4426_vm2, %v4425_v1 }
 0xafc   :  { %3300 = vmatprep.subr.bf16.mxu0 %v4427_v10 }
 0xaff   :  { %3302 = vmatpush3.bf16.msra.mxu0 %v4789_v13 }
 0xb00   :  { %3309 = vmatprep.subr.bf16.mxu0 %v4427_v10 }
 0xbcd   :  { %v1253_v54 = vpop.f32.mrb[6].mxu0 }
 0xbce   :  { %v1257_v55 = vadd.f32 %v1253_v54, %v1181_v53  ;;  %v3123_v56 = vpop.f32.mrb[7].mxu0  ;;  %v1694_v53 = vld [vmem:[#allocation28 + $0x18] sm:$0xff]  ;;  %v2910_v54 = vld [vmem:[#allocation19] ss:$0 sm:$0xff] }
 0xbcf   :  { %v690_v56 = vadd.f32 %v2910_v54, %v4816_v32 }
 0xbd0   :  { %3490 = vtanh.f32 %v1257_v55  ;;  %v2931_v58 = vmul.f32 -1.442695, %v1257_v55  ;;  %v3319_v55 = vpack.c.bf16 %v1694_v53, %v1693_v52  ;;  %v2944_v53 = vld [vmem:[#allocation30 + $0x1] ss:$0 sm:$0xff] }
 0xbd2   :  { %3492 = vpow2.f32 %v2931_v58  ;;  %v695_v58 = vadd.f32 %v4814_v30, %v2910_v54 }
 0xbda   :  { %v3491_v57 = vpop.eup %3490 }
 0xbdb   :  { %1267 = vrot.lane.b32.xlu1 %v3491_v57, %s4430_s16 }
 0xbdc   :  { %v3493_v59 = vpop.eup %3492 }
 0xbdd   :  { %v1261_v60 = vadd.f32 1.0, %v3493_v59  ;;  %v1487_v59 = vld [vmem:[#allocation2 + $0xc] sm:$0x3] }
 0xbdf   :  { %3494 = vrcp.f32 %v1261_v60 }
 0xbe9   :  { %v3495_v61 = vpop.eup %3494 }
 0xbea   :  { %v1265_v0 = vmul.f32 %v3495_v61, %v1173_v48  ;;  %v3315_v48 = vpack.c.bf16 %v1692_v47, %v1691_v46  ;;  %v2907_v47 = vld [vmem:[#allocation16] ss:$0 sm:$0xff] }
 0xc4d   :  { %v1268_v62 = vpop.permute.xlu1 %1267 }
 0xc4e   :  { %v1270_v63 = vmul.f32 %v3495_v61, %v1268_v62 }
 0xc50   :  { %1272 = vrot.lane.b32.xlu0 %v1270_v63, %s4431_s24  ;;  %v2940_v63 = vld [vmem:[#allocation30] ss:$0 sm:$0xff] }
 0xcc2   :  { %v1273_v2 = vpop.permute.xlu0 %1272 }
 0xcc3   :  { %v1275_v3 = vadd.f32 %v1273_v2, %v1265_v0  ;;  %v1783_v0 = vstv %s1690_s19 }
 0xcc5   :  { %3496 = vtanh.f32 %v1275_v3 }
 0xccf   :  { %v3497_v4 = vpop.eup %3496 }
 0xcd0   :  { %1278 = vrot.lane.b32.xlu1 %v3497_v4, %s4430_s16 }
 0xd42   :  { %v1279_v5 = vpop.permute.xlu1 %1278 }
 0xd43   :  { %v1281_v6 = vmul.f32 %v3495_v61, %v1279_v5  ;;  %v1789_v5 = vstv %s1786_s18 }
 0xd45   :  { %1285 = vrot.lane.b32.xlu0 %v1281_v6, %s4431_s24 }
 0xdb7   :  { %v1286_v7 = vpop.permute.xlu0 %1285 }
 0xdb8   :  { %3133 = vmatmul.mubr.msk.f32.vlgmr.msra.gmra.mrb[6].mxu1 %vm875_vm3, %v1286_v7 }
 0xdb9   :  { %3305 = vmatpush3.bf16.msra.mxu1 %v4780_v9  ;;  %3154 = vmatprep.mubr.msk.f32.mxu1 %vm4426_vm2, %v4425_v1 }
 0xdba   :  { %3306 = vmatprep.subr.bf16.mxu1 %v4427_v10 }
 0xdbd   :  { %3308 = vmatpush3.bf16.msra.mxu1 %v4789_v13 }
 0xdbe   :  { %3316 = vmatprep.subr.bf16.mxu1 %v3315_v48 }
 0xe8b   :  { %v1355_v11 = vpop.f32.mrb[6].mxu1 }
 0xe8c   :  { %v1359_v12 = vadd.f32 %v1355_v11, %v1283_v8  ;;  %v3134_v14 = vpop.f32.mrb[7].mxu1 }
 0xe8e   :  { %3498 = vtanh.f32 %v1359_v12  ;;  %v2933_v16 = vmul.f32 -1.442695, %v1359_v12 }
 0xe90   :  { %3500 = vpow2.f32 %v2933_v16 }
 0xe98   :  { %v3499_v15 = vpop.eup %3498 }
 0xe99   :  { %1369 = vrot.lane.b32.xlu1 %v3499_v15, %s4430_s16 }
 0xe9a   :  { %v3501_v18 = vpop.eup %3500 }
 0xe9b   :  { %v1363_v21 = vadd.f32 1.0, %v3501_v18 }
 0xe9d   :  { %3502 = vrcp.f32 %v1363_v21 }
 0xea7   :  { %v3503_v22 = vpop.eup %3502 }
 0xea8   :  { %v1367_v25 = vmul.f32 %v3503_v22, %v1275_v3 }
 0xf0b   :  { %v1370_v23 = vpop.permute.xlu1 %1369 }
 0xf0c   :  { %v1372_v24 = vmul.f32 %v3503_v22, %v1370_v23 }
 0xf0e   :  { %1374 = vrot.lane.b32.xlu0 %v1372_v24, %s4431_s24 }
 0xf80   :  { %v1375_v26 = vpop.permute.xlu0 %1374 }
 0xf81   :  { %v1377_v27 = vadd.f32 %v1375_v26, %v1367_v25  ;;  %v1804_v25 = vld [vmem:[#allocation28 + $0x20] sm:$0xff]  ;;  %v1805_v26 = vld [vmem:[#allocation28 + $0x28] sm:$0xff] }
 0xf83   :  { %3504 = vtanh.f32 %v1377_v27 }
 0xf8d   :  { %v3505_v28 = vpop.eup %3504 }
 0xf8e   :  { %1380 = vrot.lane.b32.xlu1 %v3505_v28, %s4430_s16 }
0x1000   :  { %v1381_v29 = vpop.permute.xlu1 %1380 }
0x1001   :  { %v1383_v31 = vmul.f32 %v3503_v22, %v1381_v29 }
0x1003   :  { %1387 = vrot.lane.b32.xlu0 %v1383_v31, %s4431_s24 }
0x1075   :  { %v1388_v33 = vpop.permute.xlu0 %1387 }
0x1076   :  { %3144 = vmatmul.mubr.msk.f32.vlgmr.msra.gmra.mrb[8].mxu0 %vm875_vm3, %v1388_v33 }
0x1077   :  { %3311 = vmatpush3.bf16.msra.mxu0 %v4780_v9  ;;  %3165 = vmatprep.mubr.msk.f32.mxu0 %vm4426_vm2, %v4425_v1 }
0x1078   :  { %3312 = vmatprep.subr.bf16.mxu0 %v4427_v10 }
0x107b   :  { %3314 = vmatpush3.bf16.msra.mxu0 %v4789_v13 }
0x1149   :  { %v1457_v35 = vpop.f32.mrb[8].mxu0 }
0x114a   :  { %v1461_v36 = vadd.f32 %v1457_v35, %v1385_v34  ;;  %v3145_v37 = vpop.f32.mrb[9].mxu0  ;;  %v1806_v35 = vld [vmem:[#allocation28 + $0x30] sm:$0xff] }
0x114c   :  { %3506 = vtanh.f32 %v1461_v36  ;;  %v2935_v39 = vmul.f32 -1.442695, %v1461_v36  ;;  %v1807_v36 = vld [vmem:[#allocation28 + $0x38] sm:$0xff] }
0x114e   :  { %3508 = vpow2.f32 %v2935_v39 }
0x1156   :  { %v3507_v38 = vpop.eup %3506 }
0x1157   :  { %1471 = vrot.lane.b32.xlu1 %v3507_v38, %s4430_s16  ;;  %v3327_v38 = vpack.c.bf16 %v1807_v36, %v1806_v35  ;;  %v2200_v36 = vld [vmem:[#allocation37] sm:$0xff] }
0x1158   :  { %v3509_v40 = vpop.eup %3508 }
0x1159   :  { %v1465_v41 = vadd.f32 1.0, %v3509_v40 }
0x115b   :  { %3510 = vrcp.f32 %v1465_v41  ;;  %v2030_v41 = vld [vmem:[#allocation31] sm:$0xff] }
0x1165   :  { %v3511_v9 = vpop.eup %3510 }
0x1166   :  { %v1469_v44 = vmul.f32 %v3511_v9, %v1377_v27  ;;  %v3323_v27 = vpack.c.bf16 %v1805_v26, %v1804_v25  ;;  %v1920_v26 = vld [vmem:[#allocation28 + $0x50] sm:$0xff] }
0x1168   :  { %3324 = vmatprep.subr.bf16.mxu0 %v3323_v27 }
0x11c9   :  { %v1472_v42 = vpop.permute.xlu1 %1471 }
0x11ca   :  { %v1474_v43 = vmul.f32 %v3511_v9, %v1472_v42 }
0x11cc   :  { %1476 = vrot.lane.b32.xlu0 %v1474_v43, %s4431_s24 }
0x123e   :  { %v1477_v13 = vpop.permute.xlu0 %1476 }
0x123f   :  { %v1479_v45 = vadd.f32 %v1477_v13, %v1469_v44  ;;  %v2032_v13 = vld [vmem:[#allocation31 + $0x10] sm:$0xff] }
0x1241   :  { %3512 = vtanh.f32 %v1479_v45 }
0x124b   :  { %v3513_v49 = vpop.eup %3512 }
0x124c   :  { %1482 = vrot.lane.b32.xlu1 %v3513_v49, %s4430_s16  ;;  %v1589_v49 = vld [vmem:[#allocation2 + $0xe] sm:$0x3] }
0x12be   :  { %v1483_v50 = vpop.permute.xlu1 %1482 }
0x12bf   :  { %v1485_v51 = vmul.f32 %v3511_v9, %v1483_v50  ;;  %v2031_v9 = vld [vmem:[#allocation31 + $0x8] sm:$0xff] }
0x12c0   :  { %v3340_v44 = vpack.c.bf16 %v2031_v9, %v2030_v41  ;;  %v2202_v41 = vld [vmem:[#allocation37 + $0x10] sm:$0xff]  ;;  %v2203_v9 = vld [vmem:[#allocation37 + $0x18] sm:$0xff] }
0x12c1   :  { %1489 = vrot.lane.b32.xlu0 %v1485_v51, %s4431_s24 }
0x1333   :  { %v1490_v57 = vpop.permute.xlu0 %1489 }
0x1334   :  { %3155 = vmatmul.mubr.msk.f32.vlgmr.msra.gmra.mrb[8].mxu1 %vm875_vm3, %v1490_v57 }
0x1335   :  { %3318 = vmatpush3.bf16.msra.mxu1 %v3315_v48  ;;  %3176 = vmatprep.mubr.msk.f32.mxu1 %vm875_vm3, %v690_v56  ;;  %v601_v48 = vadd.f32 %v2907_v47, %v4811_v20 }
0x1336   :  { %3320 = vmatprep.subr.bf16.mxu1 %v3319_v55 }
0x1339   :  { %3322 = vmatpush3.bf16.msra.mxu1 %v3319_v55  ;;  %v1897_v55 = vstv %s2943_s8 }
0x133c   :  { %3177 = vmatmul.mubr.msk.f32.vlgmr.msra.gmra.mrb[10].mxu1 %vm875_vm3, %v695_v58  ;;  %v1903_v58 = vstv %s1900_s28 }
0x1407   :  { %v1559_v60 = vpop.f32.mrb[8].mxu1 }
0x1408   :  { %v1563_v61 = vadd.f32 %v1559_v60, %v1487_v59  ;;  %v3156_v62 = vpop.f32.mrb[9].mxu1 }
0x140a   :  { %3514 = vtanh.f32 %v1563_v61  ;;  %v2937_v12 = vmul.f32 -1.442695, %v1563_v61 }
0x140c   :  { %3516 = vpow2.f32 %v2937_v12  ;;  %v1918_v12 = vld [vmem:[#allocation28 + $0x40] sm:$0xff] }
0x140f   :  { %v3178_v32 = vpop.f32.mrb[10].mxu1 }
0x1410   :  { %v1780_v2 = vadd.f32 %v3178_v32, %v2940_v63  ;;  %v1774_v3 = vpop.f32.mrb[11].mxu1 }
0x1411   :  { %v1775_v4 = vadd.f32 %v2940_v63, %v1774_v3 }
0x1412   :  { %v1788_v6 = vmax.f32 %v1780_v2, 0.0  ;;  %v1785_v7 = vmul.f32 %v1783_v0, %v1780_v2 }
0x1413   :  { %v1784_v8 = vmul.f32 %v1783_v0, %v1775_v4  ;;  %v1787_v28 = vmax.f32 %v1775_v4, 0.0 }
0x1414   :  { %v3515_v30 = vpop.eup %3514  ;;  %v1791_v11 = vmul.f32 %v1789_v5, %v1788_v6 }
0x1415   :  { %1573 = vrot.lane.b32.xlu1 %v3515_v30, %s4430_s16  ;;  %v1790_v31 = vmul.f32 %v1789_v5, %v1787_v28  ;;  %v2114_v30 = vld [vmem:[#allocation34] sm:$0xff] }
0x1416   :  { %v3517_v14 = vpop.eup %3516 }
0x1417   :  { %v1567_v15 = vadd.f32 1.0, %v3517_v14 }
0x1419   :  { %3518 = vrcp.f32 %v1567_v15  ;;  %v1919_v15 = vld [vmem:[#allocation28 + $0x48] sm:$0xff] }
0x1423   :  { %v3519_v16 = vpop.eup %3518 }
0x1424   :  { %v1571_v22 = vmul.f32 %v3519_v16, %v1479_v45  ;;  %v2033_v45 = vld [vmem:[#allocation31 + $0x18] sm:$0xff] }
0x1425   :  { %v3343_v46 = vpack.c.bf16 %v2033_v45, %v2032_v13  ;;  %v2953_v13 = vld [vmem:[#allocation36] ss:$0 sm:$0xff] }
0x1487   :  { %v1574_v18 = vpop.permute.xlu1 %1573 }
0x1488   :  { %v1576_v21 = vmul.f32 %v3519_v16, %v1574_v18  ;;  %v2117_v18 = vld [vmem:[#allocation34 + $0x18] sm:$0xff] }
0x148a   :  { %1578 = vrot.lane.b32.xlu0 %v1576_v21, %s4431_s24  ;;  %v3331_v21 = vpack.c.bf16 %v1919_v15, %v1918_v12  ;;  %v2309_v12 = vld [vmem:[#allocation40 + $0x18] sm:$0xff] }
0x148c   :  { %3332 = vmatprep.subr.bf16.mxu1 %v3331_v21 }
0x148d   :  { %3334 = vmatpush3.bf16.msra.mxu1 %v3331_v21 }
0x14fc   :  { %v1579_v23 = vpop.permute.xlu0 %1578 }
0x14fd   :  { %v4890_v24 = vadd.f32 %v1579_v23, %v1571_v22 }
0x14ff   :  { %3520 = vtanh.f32 %v4890_v24 }
0x1509   :  { %v3521_v29 = vpop.eup %3520 }
0x150a   :  { %1584 = vrot.lane.b32.xlu1 %v3521_v29, %s4430_s16 }
0x150e   :  { %1794 = vrot.lane.b32.xlu1 %v1790_v31, %s4432_s26 }
0x157c   :  { %v1585_v33 = vpop.permute.xlu1 %1584 }
0x157d   :  { %v1587_v34 = vmul.f32 %v3519_v16, %v1585_v33  ;;  %v2116_v16 = vld [vmem:[#allocation34 + $0x10] sm:$0xff] }
0x157e   :  { %v3349_v22 = vpack.c.bf16 %v2117_v18, %v2116_v16 }
0x157f   :  { %1591 = vrot.lane.b32.xlu0 %v1587_v34, %s4431_s24 }
0x1580   :  { %v1795_v37 = vpop.permute.xlu1 %1794 }
0x1581   :  { %v1800_v39 = vadd.f32 %v1795_v37, %v1784_v8  ;;  %v2201_v37 = vld [vmem:[#allocation37 + $0x8] sm:$0xff] }
0x1583   :  { %1796 = vrot.lane.b32.xlu0 %v1791_v11, %s4432_s26  ;;  %v2115_v11 = vld [vmem:[#allocation34 + $0x8] sm:$0xff] }
0x1584   :  { %v3346_v14 = vpack.c.bf16 %v2115_v11, %v2114_v30  ;;  %v2308_v30 = vld [vmem:[#allocation40 + $0x10] sm:$0xff] }
0x15f1   :  { %v1592_v40 = vpop.permute.xlu0 %1591 }
0x15f2   :  { %3166 = vmatmul.mubr.msk.f32.vlgmr.msra.gmra.mrb[10].mxu0 %vm875_vm3, %v1592_v40 }
0x15f3   :  { %3326 = vmatpush3.bf16.msra.mxu0 %v3323_v27  ;;  %3187 = vmatprep.mubr.msk.f32.mxu0 %vm875_vm3, %v1800_v39  ;;  %v1921_v27 = vld [vmem:[#allocation28 + $0x58] sm:$0xff]  ;;  %v3352_v39 = vpack.c.bf16 %v2201_v37, %v2200_v36  ;;  %v2412_v37 = vld [vmem:[#allocation48 + $0x18] sm:$0xff] }
0x15f4   :  { %3328 = vmatprep.subr.bf16.mxu0 %v3327_v38  ;;  %v3335_v28 = vpack.c.bf16 %v1921_v27, %v1920_v26  ;;  %v2958_v27 = vld [vmem:[#allocation42] ss:$0 sm:$0xff] }
0x15f5   :  { %v1797_v42 = vpop.permute.xlu0 %1796 }
0x15f6   :  { %v1801_v43 = vadd.f32 %v1797_v42, %v1785_v7  ;;  %3336 = vmatprep.subr.bf16.mxu1 %v3335_v28  ;;  %v3355_v42 = vpack.c.bf16 %v2203_v9, %v2202_v41 }
0x15f7   :  { %3330 = vmatpush3.bf16.msra.mxu0 %v3327_v38  ;;  %3338 = vmatpush3.bf16.msra.mxu1 %v3335_v28 }
0x15f8   :  { %3339 = vmatprep.subr.bf16.mxu0 %v4427_v10  ;;  %3351 = vmatprep.subr.bf16.mxu1 %v4427_v10 }
0x15fa   :  { %3188 = vmatmul.mubr.msk.f32.vlgmr.msra.gmra.mrb[12].mxu0 %vm875_vm3, %v1801_v43 }
0x15fb   :  { %3341 = vmatpush3.bf16.msra.mxu0 %v3340_v44  ;;  %3209 = vmatprep.mubr.msk.f32.mxu0 %vm4426_vm2, %v4425_v1  ;;  %v2951_v44 = vld [vmem:[#allocation33] ss:$0 sm:$0xff] }
0x15fc   :  { %3342 = vmatprep.subr.bf16.mxu0 %v4427_v10  ;;  %v3377_v45 = vadd.f32 %v2953_v13, %v2951_v44 }
0x15ff   :  { %3344 = vmatpush3.bf16.msra.mxu0 %v3343_v46 }
0x1600   :  { %3345 = vmatprep.subr.bf16.mxu0 %v4427_v10 }
0x1602   :  { %3210 = vmatmul.mubr.msk.f32.vlgmr.msra.gmra.mrb[14].mxu0 %vm875_vm3, %v601_v48 }
0x1603   :  { %3220 = vmatprep.mubr.msk.f32.mxu0 %vm4426_vm2, %v4425_v1  ;;  %3347 = vmatpush3.bf16.msra.mxu0 %v3346_v14  ;;  %v3361_v14 = vpack.c.bf16 %v2309_v12, %v2308_v30 }
0x1604   :  { %3348 = vmatprep.subr.bf16.mxu0 %v4427_v10 }
0x1607   :  { %3350 = vmatpush3.bf16.msra.mxu0 %v3349_v22 }
0x1608   :  { %3363 = vmatprep.subr.bf16.mxu0 %v4427_v10 }
0x16c5   :  { %v1661_v50 = vpop.f32.mrb[10].mxu0 }
0x16c6   :  { %v1665_v51 = vadd.f32 %v1661_v50, %v1589_v49  ;;  %v3167_v52 = vpop.f32.mrb[11].mxu0  ;;  %v2948_v49 = vld [vmem:[#allocation30 + $0x2] ss:$0 sm:$0xff] }
0x16c8   :  { %3522 = vtanh.f32 %v1665_v51  ;;  %v2939_v32 = vmul.f32 -1.442695, %v1665_v51  ;;  %v2011_v51 = vstv %s2947_s25 }
0x16ca   :  { %3524 = vpow2.f32 %v2939_v32 }
0x16cd   :  { %v3189_v54 = vpop.f32.mrb[12].mxu0 }
0x16ce   :  { %v1894_v56 = vadd.f32 %v3189_v54, %v2944_v53  ;;  %v1888_v57 = vpop.f32.mrb[13].mxu0 }
0x16cf   :  { %v1889_v20 = vadd.f32 %v2944_v53, %v1888_v57 }
0x16d0   :  { %v1902_v59 = vmax.f32 %v1894_v56, 0.0  ;;  %v1899_v60 = vmul.f32 %v1897_v55, %v1894_v56 }
0x16d1   :  { %v1898_v61 = vmul.f32 %v1897_v55, %v1889_v20  ;;  %v1901_v23 = vmax.f32 %v1889_v20, 0.0  ;;  %v2017_v55 = vstv %s2014_s1 }
0x16d2   :  { %v3523_v62 = vpop.eup %3522  ;;  %v1905_v63 = vmul.f32 %v1903_v58, %v1902_v59 }
0x16d3   :  { %1675 = vrot.lane.b32.xlu1 %v3523_v62, %s4430_s16  ;;  %v1904_v25 = vmul.f32 %v1903_v58, %v1901_v23 }
0x16d4   :  { %v3525_v0 = vpop.eup %3524 }
0x16d5   :  { %v1669_v2 = vadd.f32 1.0, %v3525_v0 }
0x16d7   :  { %3526 = vrcp.f32 %v1669_v2 }
0x16e1   :  { %v3527_v3 = vpop.eup %3526 }
0x16e2   :  { %v1673_v6 = vmul.f32 %v3527_v3, %v4890_v24 }
0x1745   :  { %v1676_v4 = vpop.permute.xlu1 %1675 }
0x1746   :  { %v1678_v5 = vmul.f32 %v3527_v3, %v1676_v4 }
0x1748   :  { %1680 = vrot.lane.b32.xlu0 %v1678_v5, %s4431_s24 }
0x17ba   :  { %v1681_v7 = vpop.permute.xlu0 %1680 }
0x17bb   :  { %v4912_v8 = vadd.f32 %v1681_v7, %v1673_v6  ;;  %v2306_v6 = vld [vmem:[#allocation40] sm:$0xff]  ;;  %v2307_v7 = vld [vmem:[#allocation40 + $0x8] sm:$0xff] }
0x17bc   :  { %v3358_v11 = vpack.c.bf16 %v2307_v7, %v2306_v6 }
0x17bd   :  { %3528 = vtanh.f32 %v4912_v8 }
0x17c7   :  { %v3529_v24 = vpop.eup %3528 }
0x17c8   :  { %1686 = vrot.lane.b32.xlu1 %v3529_v24, %s4430_s16 }
0x17cc   :  { %1908 = vrot.lane.b32.xlu1 %v1904_v25, %s4432_s26 }
0x17d0   :  { %2212 = vrot.lane.b32.xlu1 %v4912_v8, %s4432_s26 }
0x183a   :  { %v1687_v29 = vpop.permute.xlu1 %1686 }
0x183b   :  { %v1689_v31 = vmul.f32 %v3527_v3, %v1687_v29 }
0x183d   :  { %2126 = vrot.lane.b32.xlu0 %v1689_v31, %s4431_s24 }
0x183e   :  { %v1909_v33 = vpop.permute.xlu1 %1908 }
0x183f   :  { %v1914_v34 = vadd.f32 %v1909_v33, %v1898_v61  ;;  %v2955_v61 = vld [vmem:[#allocation39] ss:$0 sm:$0xff]  ;;  %v2409_v33 = vld [vmem:[#allocation48] sm:$0xff] }
0x1841   :  { %1910 = vrot.lane.b32.xlu0 %v1905_v63, %s4432_s26  ;;  %3198 = vmatprep.mubr.msk.f32.mxu1 %vm875_vm3, %v1914_v34  ;;  %v2410_v34 = vld [vmem:[#allocation48 + $0x8] sm:$0xff] }
0x1842   :  { %v2213_v43 = vpop.permute.xlu1 %2212  ;;  %v3364_v36 = vpack.c.bf16 %v2410_v34, %v2409_v33 }
0x18af   :  { %v2127_v35 = vpop.permute.xlu0 %2126 }
0x18b0   :  { %3221 = vmatmul.mubr.msk.f32.vlgmr.msra.gmra.mrb[14].mxu0 %vm875_vm3, %v2127_v35  ;;  %v2411_v35 = vld [vmem:[#allocation48 + $0x10] sm:$0xff] }
0x18b1   :  { %3253 = vmatprep.mubr.msk.f32.mxu0 %vm4426_vm2, %v4425_v1  ;;  %3365 = vmatpush3.bf16.msra.mxu0 %v3364_v36  ;;  %v3367_v41 = vpack.c.bf16 %v2412_v37, %v2411_v35 }
0x18b2   :  { %3366 = vmatprep.subr.bf16.mxu0 %v4427_v10 }
0x18b3   :  { %v1911_v38 = vpop.permute.xlu0 %1910 }
0x18b4   :  { %v1915_v40 = vadd.f32 %v1911_v38, %v1899_v60  ;;  %v2495_v38 = vld [vmem:[#allocation45] sm:$0xff] }
0x18b5   :  { %3368 = vmatpush3.bf16.msra.mxu0 %v3367_v41 }
0x18b6   :  { %3199 = vmatmul.mubr.msk.f32.vlgmr.msra.gmra.mrb[12].mxu1 %vm875_vm3, %v1915_v40 }
0x18b7   :  { %3353 = vmatpush3.bf16.msra.mxu1 %v3352_v39  ;;  %3231 = vmatprep.mubr.msk.f32.mxu1 %vm4426_vm2, %v4425_v1  ;;  %v2496_v39 = vld [vmem:[#allocation45 + $0x8] sm:$0xff] }
0x18b8   :  { %3354 = vmatprep.subr.bf16.mxu1 %v4427_v10  ;;  %v3369_v40 = vpack.c.bf16 %v2496_v39, %v2495_v38 }
0x18bb   :  { %3356 = vmatpush3.bf16.msra.mxu1 %v3355_v42 }
0x18bc   :  { %3357 = vmatprep.subr.bf16.mxu1 %v4427_v10 }
0x18be   :  { %3232 = vmatmul.mubr.msk.f32.vlgmr.msra.gmra.mrb[14].mxu1 %vm875_vm3, %v2213_v43 }
0x18bf   :  { %3242 = vmatprep.mubr.msk.f32.mxu1 %vm4426_vm2, %v4425_v1  ;;  %3359 = vmatpush3.bf16.msra.mxu1 %v3358_v11 }
0x18c0   :  { %3360 = vmatprep.subr.bf16.mxu1 %v4427_v10  ;;  %v2661_v10 = vld [vmem:[#allocation9] sm:$0x3] }
0x18c3   :  { %3362 = vmatpush3.bf16.msra.mxu1 %v3361_v14 }
0x18c4   :  { %3370 = vmatprep.subr.bf16.mxu1 %v3369_v40 }
0x1983   :  { %v2196_v46 = vpop.f32.mrb[14].mxu0 }
0x1984   :  { %v4936_v47 = vadd.f32 %v3377_v45, %v2196_v46  ;;  %v3222_v48 = vpop.f32.mrb[15].mxu0  ;;  %v2497_v45 = vld [vmem:[#allocation45 + $0x10] sm:$0xff]  ;;  %v2498_v46 = vld [vmem:[#allocation45 + $0x18] sm:$0xff] }
0x1985   :  { %v3373_v48 = vpack.c.bf16 %v2498_v46, %v2497_v45 }
0x1986   :  { %3530 = vtanh.f32 %v4936_v47 }
0x1989   :  { %v3200_v50 = vpop.f32.mrb[12].mxu1 }
0x198a   :  { %v2008_v52 = vadd.f32 %v3200_v50, %v2948_v49  ;;  %v2002_v53 = vpop.f32.mrb[13].mxu1 }
0x198b   :  { %v2003_v54 = vadd.f32 %v2948_v49, %v2002_v53  ;;  %v4958_v49 = vsub.s32 0, %v4809_v19 }
0x198c   :  { %v2016_v56 = vmax.f32 %v2008_v52, 0.0  ;;  %v4939_v1 = vmul.f32 %v2011_v51, %v2008_v52 }
0x198d   :  { %v2012_v57 = vmul.f32 %v2011_v51, %v2003_v54  ;;  %v2015_v21 = vmax.f32 %v2003_v54, 0.0  ;;  %v2666_v50 = vrot.slane %v2661_v10, %v4958_v49 }
0x198e   :  { %v4941_v20 = vmul.f32 %v2017_v55, %v2016_v56 }
0x198f   :  { %v2018_v23 = vmul.f32 %v2017_v55, %v2015_v21 }
0x1990   :  { %v3531_v58 = vpop.eup %3530 }
0x1991   :  { %v2282_v59 = vpop.f32.mrb[14].mxu1  ;;  %2297 = vrot.lane.b32.xlu0 %v3531_v58, %s4430_s16 }
0x1992   :  { %v3233_v60 = vpop.f32.mrb[15].mxu1  ;;  %v2283_v62 = vadd.f32 %v2955_v61, %v2282_v59 }
0x1993   :  { %v2961_v60 = vld [vmem:[#allocation49] ss:$0 sm:$0xff] }
0x1994   :  { %v2287_v63 = vadd.f32 %v4936_v47, %v2283_v62 }
0x1996   :  { %v2957_v32 = vmul.f32 -1.442695, %v2287_v63 }
0x1998   :  { %3532 = vpow2.f32 %v2957_v32 }
0x19a2   :  { %v3533_v0 = vpop.eup %3532 }
0x19a3   :  { %v2291_v2 = vadd.f32 1.0, %v3533_v0 }
0x19a5   :  { %3534 = vrcp.f32 %v2291_v2 }
0x19af   :  { %v3535_v3 = vpop.eup %3534 }
0x19b0   :  { %v2294_v15 = vmul.f32 %v3535_v3, %v4912_v8 }
0x1a03   :  { %v2298_v4 = vpop.permute.xlu0 %2297 }
0x1a04   :  { %v2300_v5 = vmul.f32 %v3535_v3, %v2298_v4  ;;  %v2963_v3 = vld [vmem:[#allocation46] ss:$0 sm:$0xff] }
0x1a06   :  { %2302 = vrot.lane.b32.xlu1 %v2300_v5, %s4431_s24 }
0x1a78   :  { %v2303_v16 = vpop.permute.xlu1 %2302 }
0x1a79   :  { %v2305_v18 = vadd.f32 %v2303_v16, %v2294_v15  ;;  %v2966_v15 = vld [vmem:[#allocation43] ss:$0 sm:$0xff] }
0x1a7b   :  { %3536 = vtanh.f32 %v2305_v18  ;;  %2318 = vrot.lane.b32.xlu0 %v2305_v18, %s4432_s26 }
0x1a85   :  { %v3537_v22 = vpop.eup %3536 }
0x1a86   :  { %2405 = vrot.lane.b32.xlu0 %v3537_v22, %s4430_s16 }
0x1a8a   :  { %2022 = vrot.lane.b32.xlu0 %v2018_v23, %s4432_s26 }
0x1a8e   :  { %2668 = vbcast.lane.b32.xlu0 %v2666_v50, 256 }
0x1aed   :  { %v2319_v24 = vpop.permute.xlu0 %2318 }
0x1aee   :  { %3243 = vmatmul.mubr.msk.f32.vlgmr.msra.gmra.mrb[16].mxu1 %vm875_vm3, %v2319_v24  ;;  %2800 = vst.msk [vmem:[#allocation55] sm:$0x3] %vm2797_vm4, %v2319_v24 }
0x1aef   :  { %3372 = vmatpush3.bf16.msra.mxu1 %v3369_v40 }
0x1af0   :  { %3374 = vmatprep.subr.bf16.mxu1 %v3373_v48 }
0x1af3   :  { %3376 = vmatpush3.bf16.msra.mxu1 %v3373_v48 }
0x1af8   :  { %v2406_v25 = vpop.permute.xlu0 %2405 }
0x1afc   :  { %v2023_v8 = vpop.permute.xlu0 %2022 }
0x1afd   :  { %v2028_v26 = vadd.f32 %v2023_v8, %v2012_v57  ;;  %v4433_v57 = vmov 1966171168   ;;  %v2682_v8 = vstv %s2967_s6 }
0x1afe   :  { %v2589_v58 = vunpack.c.l.s4 %v4433_v57 }
0x1aff   :  { %3264 = vmatprep.mubr.msk.f32.mxu1 %vm875_vm3, %v2028_v26 }
0x1b00   :  { %v2590_v59 = vunpack.c.0.s8 %v2589_v58  ;;  %v2669_v33 = vpop.permute.xlu0 %2668 }
0x1b02   :  { %v2593_v61 = vsub.s32 %v2590_v59, %v4809_v19 }
0x1bc1   :  { %v2388_v28 = vpop.f32.mrb[16].mxu1 }
0x1bc2   :  { %v2389_v29 = vadd.f32 %v2958_v27, %v2388_v28  ;;  %v3244_v31 = vpop.f32.mrb[17].mxu1 }
0x1bc3   :  { %v2642_v31 = vand.u32 127, %v788_v17 }
0x1bc4   :  { %2393 = vrot.lane.b32.xlu1 %v2389_v29, %s4432_s26  ;;  %v4434_v29 = vmov 0  }
0x1bc5   :  { %3464 = vset.pattern.permute.xlu0 %v4434_v29  ;;  %3465 = vset.pattern.permute.xlu1 %v4434_v29  ;;  %v4981_v35 = vsub.s32 %v2642_v31, %v4809_v19 }
0x1c36   :  { %v2394_v9 = vpop.permute.xlu1 %2393 }
0x1c37   :  { %v2396_v42 = vadd.f32 %v4936_v47, %v2394_v9  ;;  %v4963_v47 = vsub.s32 1, %v4809_v19 }
0x1c39   :  { %v2960_v43 = vmul.f32 -1.442695, %v2396_v42  ;;  %v2673_v53 = vrot.slane %v2661_v10, %v4963_v47 }
0x1c3b   :  { %3538 = vpow2.f32 %v2960_v43 }
0x1c45   :  { %v3539_v44 = vpop.eup %3538 }
0x1c46   :  { %v2400_v13 = vadd.f32 1.0, %v3539_v44 }
0x1c48   :  { %3540 = vrcp.f32 %v2400_v13 }
0x1c52   :  { %v3541_v51 = vpop.eup %3540 }
0x1c53   :  { %v2408_v52 = vmul.f32 %v3541_v51, %v2406_v25  ;;  %v2681_v25 = vld [vmem:[#allocation10] sm:$0x3] }
0x1c54   :  { %v2683_v26 = vmul.f32 %v2682_v8, %v2681_v25 }
0x1c55   :  { %2421 = vrot.lane.b32.xlu1 %v2408_v52, %s4431_s24 }
0x1c56   :  { %v2695_v27 = vrot.slane %v2683_v26, %v4963_v47  ;;  %v2688_v28 = vrot.slane %v2683_v26, %v4958_v49 }
0x1c59   :  { %2024 = vrot.lane.b32.xlu1 %v4941_v20, %s4432_s26 }
0x1c5d   :  { %2675 = vbcast.lane.b32.xlu1 %v2673_v53, 256 }
0x1cc7   :  { %v2422_v54 = vpop.permute.xlu1 %2421 }
0x1cc8   :  { %3254 = vmatmul.mubr.msk.f32.vlgmr.msra.gmra.mrb[16].mxu0 %vm875_vm3, %v2422_v54  ;;  %2798 = vst.msk [vmem:[#allocation53] sm:$0x3] %vm2797_vm4, %v2422_v54 }
0x1ccb   :  { %v2025_v55 = vpop.permute.xlu1 %2024 }
0x1ccc   :  { %v2029_v56 = vadd.f32 %v2025_v55, %v4939_v1 }
0x1cce   :  { %3265 = vmatmul.mubr.msk.f32.vlgmr.msra.gmra.mrb[18].mxu1 %vm875_vm3, %v2029_v56 }
0x1ccf   :  { %v2676_v34 = vpop.permute.xlu1 %2675 }
0x1d9b   :  { %v2491_v20 = vpop.f32.mrb[16].mxu0 }
0x1d9c   :  { %v2492_v62 = vadd.f32 %v2961_v60, %v2491_v20  ;;  %v3255_v63 = vpop.f32.mrb[17].mxu0 }
0x1d9e   :  { %v2594_v32 = vrot.slane %v2492_v62, %v2593_v61 }
0x1da0   :  { %v2595_v0 = vcombine.high %v2594_v32, %v2594_v32  ;;  %v2602_v2 = vrot.slane %v2594_v32, %v2593_v61 }
0x1da1   :  { %v3266_v4 = vpop.f32.mrb[18].mxu1 }
0x1da2   :  { %v2609_v5 = vrot.slane %v2595_v0, %v2593_v61  ;;  %v2578_v6 = vpop.f32.mrb[19].mxu1  ;;  %v2613_v1 = vrot.slane %v2602_v2, %v4958_v49  ;;  %v2584_v30 = vadd.f32 %v3266_v4, %v2963_v3 }
0x1da3   :  { %v2579_v7 = vadd.f32 %v2963_v3, %v2578_v6 }
0x1da4   :  { %v2617_v11 = vrot.slane %v2609_v5, %v4958_v49 }
0x1da5   :  { %v2620_v12 = vadd.f32 %v2613_v1, %v2579_v7 }
0x1da6   :  { %v2621_v14 = vadd.f32 %v2617_v11, %v2584_v30 }
0x1da7   :  { %3542 = vtanh.f32 %v2620_v12 }
0x1da8   :  { %3544 = vtanh.f32 %v2621_v14 }
0x1db1   :  { %v3543_v16 = vpop.eup %3542 }
0x1db2   :  { %v3545_v18 = vpop.eup %3544  ;;  %v2631_v21 = vmul.f32 %v3543_v16, %v2966_v15 }
0x1db3   :  { %v2632_v22 = vmul.f32 %v3545_v18, %v2966_v15 }
0x1db4   :  { %v2633_v23 = vsel %vm875_vm3, %v2631_v21, 0.0 }
0x1db5   :  { %2634 = vadd.xlane.f32.xlu0 %v2633_v23  ;;  %v2636_v24 = vsel %vm875_vm3, %v2632_v22, 0.0 }
0x1db6   :  { %2637 = vadd.xlane.f32.xlu1 %v2636_v24 }
0x1dc7   :  { %2697 = vbcast.lane.b32.xlu1 %v2695_v27, 256 }
0x1dcb   :  { %2690 = vbcast.lane.b32.xlu0 %v2688_v28, 256 }
0x1e42   :  { %v2635_v36 = vpop.xlane.xlu0 %2634 }
0x1e43   :  { %v2646_v37 = vrot.slane %v2635_v36, %v4981_v35  ;;  %3546 = vtanh.f32 %v2635_v36  ;;  %v2638_v38 = vpop.xlane.xlu1 %2637 }
0x1e44   :  { %v2650_v39 = vrot.slane %v2638_v38, %v4981_v35  ;;  %3548 = vtanh.f32 %v2638_v38 }
0x1e46   :  { %v2652_v40 = vsel %vm2651_vm5, %v2650_v39, %v2646_v37  ;;  %v2691_v42 = vpop.permute.xlu0 %2690 }
0x1e47   :  { %2655 = vst.msk [vmem:[#allocation56] sm:$0x3] %vm2654_vm6, %v2652_v40  ;;  %v2698_v44 = vpop.permute.xlu1 %2697 }
0x1e4d   :  { %v3547_v17 = vpop.eup %3546 }
0x1e4e   :  { %v3549_v41 = vpop.eup %3548  ;;  %v2659_v9 = vmul.f32 10.0, %v3547_v17 }
0x1e4f   :  { %v2660_v19 = vmul.f32 10.0, %v3549_v41 }
0x1e50   :  { %v2679_v43 = vadd.f32 %v2669_v33, %v2659_v9 }
0x1e51   :  { %v2680_v13 = vadd.f32 %v2676_v34, %v2660_v19 }
0x1e52   :  { %v2701_v45 = vadd.f32 %v2691_v42, %v2679_v43 }
0x1e53   :  { %v2702_v46 = vadd.f32 %v2698_v44, %v2680_v13 }
0x1e54   :  { %2706 = vperm.xlu0 %3464, %v2701_v45  }
0x1e55   :  { %2709 = vperm.xlu1 %3465, %v2702_v46  }
0x1ed3   :  { %v2707_v48 = vpop.permute.xlu0 %2706 }
0x1ed4   :  { %v2714_v10 = vrot.slane %v2707_v48, %v4981_v35  ;;  %v2710_v50 = vpop.permute.xlu1 %2709 }
0x1ed5   :  { %v2718_v51 = vrot.slane %v2710_v50, %v4981_v35 }
0x1ed7   :  { %v2719_v52 = vsel %vm2651_vm5, %v2718_v51, %v2714_v10 }
0x1ed8   :  { %v2721_v53 = vsel %vm2654_vm6, %v2719_v52, -inf }
0x1ed9   :  { %2722 = vmax.xlane.f32.xlu1 %v2721_v53 }
0x1f66   :  { %v2723_v54 = vpop.xlane.xlu1 %2722 }
0x1f67   :  { %v2728_v55 = vrot.slane %v2723_v54, %v4958_v49  ;;  %v2732_v56 = vrot.slane %v2723_v54, %v4963_v47 }
0x1f69   :  { %v2735_v57 = vsub.f32 %v2701_v45, %v2728_v55  ;;  %v2736_v58 = vsub.f32 %v2702_v46, %v2732_v56 }
0x1f6b   :  { %v2737_v59 = vmul.f32 1.442695, %v2735_v57  ;;  %v2739_v60 = vmul.f32 1.442695, %v2736_v58 }
0x1f6d   :  { %3550 = vpow2.f32 %v2737_v59 }
0x1f6e   :  { %3552 = vpow2.f32 %v2739_v60 }
0x1f77   :  { %v3551_v61 = vpop.eup %3550 }
0x1f78   :  { %2744 = vperm.xlu0 %3464, %v3551_v61   ;;  %v3553_v20 = vpop.eup %3552 }
0x1f7c   :  { %2747 = vperm.xlu0 %3464, %v3553_v20  }
0x1ff7   :  { %v2745_v62 = vpop.permute.xlu0 %2744 }
0x1ff8   :  { %v2752_v32 = vrot.slane %v2745_v62, %v4981_v35 }
0x1ffb   :  { %v2748_v63 = vpop.permute.xlu0 %2747 }
0x1ffc   :  { %v2756_v0 = vrot.slane %v2748_v63, %v4981_v35 }
0x1ffe   :  { %v2757_v2 = vsel %vm2651_vm5, %v2756_v0, %v2752_v32 }
0x1fff   :  { %v2759_v3 = vsel %vm2654_vm6, %v2757_v2, 0.0 }
0x2000   :  { %2760 = vadd.xlane.f32.xlu0 %v2759_v3 }
0x208d   :  { %v2761_v4 = vpop.xlane.xlu0 %2760 }
0x208e   :  { %v2766_v5 = vrot.slane %v2761_v4, %v4958_v49  ;;  %v2770_v6 = vrot.slane %v2761_v4, %v4963_v47 }
0x2090   :  { %3554 = vrcp.f32 %v2766_v5 }
0x2091   :  { %3556 = vrcp.f32 %v2770_v6 }
0x209a   :  { %v3555_v1 = vpop.eup %3554 }
0x209b   :  { %v3557_v7 = vpop.eup %3556  ;;  %v2774_v30 = vmul.f32 %v3555_v1, %v3551_v61 }
0x209c   :  { %v2776_v11 = vmul.f32 %v3557_v7, %v3553_v20 }
0x209d   :  { %2780 = vperm.xlu1 %3465, %v2774_v30  }
0x209e   :  { %2783 = vperm.xlu0 %3464, %v2776_v11  }
0x209f   :  { %4239 = shalt.err (!%p4236_p9)
}
0x20a0   :  { %s4240_s3 = scalar_lea.hbm %s4607_s27, 32 }
0x20a1   :  { %p4241_p10 = scmp.ne.s32.totalorder %s4607_s27, %s4240_s3  ;;  %p4244_p11 = scmp.lt.u32.totalorder %s4240_s3, %s4607_s27 }
0x20a3   :  { %p4246_p12 = pnand %p4244_p11, %p4241_p10 }
0x20a5   :  { %4249 = shalt.err (!%p4246_p12)
}
0x20a6   :  { %2820 = dma.vmem_to_hbm [thread:$0]  %s2818_s20, 32, %s4607_s27, [#allocation54]  }
0x20a7   :  { %s4436_s7 = smov [#allocation55]   ;;  %s4437_s9 = smov [#allocation56]  }
0x20a8   :  { %s2827_s10 = sshll.u32 %s4436_s7, 4  ;;  %s2837_s21 = sshll.u32 %s4437_s9, 4  ;;  %s2828_s10 = int_to_ptr.vmem [resolvable:$true] %s2827_s10  ;;  %s2838_s21 = int_to_ptr.vmem [resolvable:$true] %s2837_s21 }
0x20a9   :  { %s4250_s11 = scalar_lea.vmem %s2828_s10, 32  ;;  %p4255_p0 = scmp.lt.s32.totalorder %s2828_s10, %s2828_s10 }
0x20aa   :  { %p4251_p13 = scmp.ne.s32.totalorder %s2828_s10, %s4250_s11  ;;  %p4256_p1 = scmp.lt.s32.totalorder %s4250_s11, %s4250_s11 }
0x20ac   :  { %p4257_p2 = por %p4256_p1, %p4255_p0 }
0x20ae   :  { %p4258_p3 = pnand %p4257_p2, %p4251_p13 }
0x20b0   :  { %4261 = shalt.err (!%p4258_p3)
}
0x20b1   :  { %s4262_s4 = scalar_lea.hbm %s4612_s13, 32 }
0x20b2   :  { %p4263_p4 = scmp.ne.s32.totalorder %s4612_s13, %s4262_s4  ;;  %p4266_p5 = scmp.lt.u32.totalorder %s4262_s4, %s4612_s13 }
0x20b4   :  { %p4268_p6 = pnand %p4266_p5, %p4263_p4 }
0x20b6   :  { %4271 = shalt.err (!%p4268_p6)
}
0x20b7   :  { %2830 = dma.vmem_to_hbm [thread:$0]  %s2828_s10, 32, %s4612_s13, [#allocation54]  }
0x20b8   :  { %s4272_s27 = scalar_lea.vmem %s2838_s21, 32  ;;  %p4277_p8 = scmp.lt.s32.totalorder %s2838_s21, %s2838_s21 }
0x20b9   :  { %p4273_p7 = scmp.ne.s32.totalorder %s2838_s21, %s4272_s27  ;;  %p4278_p9 = scmp.lt.s32.totalorder %s4272_s27, %s4272_s27 }
0x20bb   :  { %p4279_p10 = por %p4278_p9, %p4277_p8 }
0x20bd   :  { %p4280_p11 = pnand %p4279_p10, %p4273_p7 }
0x20bf   :  { %4283 = shalt.err (!%p4280_p11)
}
0x20c0   :  { %s4284_s0 = scalar_lea.hbm %s4617_s12, 32 }
0x20c1   :  { %p4285_p12 = scmp.ne.s32.totalorder %s4617_s12, %s4284_s0  ;;  %p4288_p13 = scmp.lt.u32.totalorder %s4284_s0, %s4617_s12 }
0x20c3   :  { %p4290_p0 = pnand %p4288_p13, %p4285_p12 }
0x20c5   :  { %4293 = shalt.err (!%p4290_p0)
}
0x20c6   :  { %2840 = dma.vmem_to_hbm [thread:$0]  %s2838_s21, 32, %s4617_s12, [#allocation57]  }
0x20c7   :  { %s4438_s13 = smov [#allocation52]  }
0x20c8   :  { %s2807_s30 = sshll.u32 %s4438_s13, 4  ;;  %s2808_s30 = int_to_ptr.vmem [resolvable:$true] %s2807_s30 }
0x20c9   :  { %s4294_s17 = scalar_lea.vmem %s2808_s30, 32  ;;  %p4299_p2 = scmp.lt.s32.totalorder %s2808_s30, %s2808_s30 }
0x20ca   :  { %p4295_p1 = scmp.ne.s32.totalorder %s2808_s30, %s4294_s17  ;;  %p4300_p3 = scmp.lt.s32.totalorder %s4294_s17, %s4294_s17 }
0x20cc   :  { %p4301_p4 = por %p4300_p3, %p4299_p2 }
0x20ce   :  { %p4302_p5 = pnand %p4301_p4, %p4295_p1 }
0x211c   :  { %v2781_v49 = vpop.permute.xlu1 %2780 }
0x211d   :  { %v2784_v47 = vpop.permute.xlu0 %2783  ;;  %v2788_v12 = vrot.slane %v2781_v49, %v4981_v35 }
0x211e   :  { %v2792_v14 = vrot.slane %v2784_v47, %v4981_v35 }
0x2120   :  { %v2793_v15 = vsel %vm2651_vm5, %v2792_v14, %v2788_v12 }
0x2121   :  { %2795 = vst.msk [vmem:[#allocation52] sm:$0x3] %vm2654_vm6, %v2793_v15 }
0x2122   :  { %4305 = shalt.err (!%p4302_p5)
}
0x2123   :  { %s4306_s12 = scalar_lea.hbm %s4602_s5, 32 }
0x2124   :  { %p4307_p6 = scmp.ne.s32.totalorder %s4602_s5, %s4306_s12  ;;  %p4310_p7 = scmp.lt.u32.totalorder %s4306_s12, %s4602_s5 }
0x2126   :  { %p4312_p8 = pnand %p4310_p7, %p4307_p6 }
0x2128   :  { %4315 = shalt.err (!%p4312_p8)
}
0x2129   :  { %2810 = dma.vmem_to_hbm [thread:$0]  %s2808_s30, 32, %s4602_s5, [#allocation5]  }
0x212a   :  { %4350 = dma.done.wait [#allocation5], 32  }
0x212b   :  { %4351 = vsyncadd [#allocation5], 4294967264 }
0x212c   :  { %4352 = dma.done.wait [#allocation54], 64  }
0x212d   :  { %4353 = vsyncadd [#allocation54], 4294967232 }
0x212e   :  { %4354 = dma.done.wait [#allocation57], 32  }
0x212f   :  { %4355 = vsyncadd [#allocation57], 4294967264 }
0x2130   :  { %2853 = vsyncpa [#allocation4], 1 }
0x2131   :  { %2854 = vsyncpa [#allocation8], 1 }
0x2132   :  { %2855 = vsyncpa [#allocation11], 1 }
0x2133   :  { %2856 = vsyncpa [#allocation14], 1 }
0x2134   :  { %2857 = vsyncpa [#allocation17], 1 }
0x2135   :  { %2858 = vsyncpa [#allocation20], 1 }
0x2136   :  { %2859 = vsyncpa [#allocation23], 1 }
0x2137   :  { %2860 = vsyncpa [#allocation26], 1 }
0x2138   :  { %2861 = vsyncpa [#allocation29], 1 }
0x2139   :  { %2862 = vsyncpa [#allocation32], 1 }
0x213a   :  { %2863 = vsyncpa [#allocation35], 1 }
0x213b   :  { %2864 = vsyncpa [#allocation38], 1 }
0x213c   :  { %2865 = vsyncpa [#allocation41], 1 }
0x213d   :  { %2866 = vsyncpa [#allocation44], 1 }
0x213e   :  { %2867 = vsyncpa [#allocation47], 1 }
0x213f   :  { %2868 = vsyncpa [#allocation50], 1 }
0x2140   :  { %2869 = vsyncpa [#allocation5], 1 }
0x2141   :  { %2870 = vsyncpa [#allocation54], 1 }
0x2142   :  { %2871 = vsyncpa [#allocation57], 1 }
0x2143   :  { %2872 = vsyncpa [#allocation6], 1 }

</bundles_post_ra>
